<compile_context>
chip_gen: v7x
topology: tpu7x:2x2x1
jax: 0.10.0
libtpu: 0.0.40
codegen_flags: <defaults>
</compile_context>

<pallas_src>
import jax
import jax.numpy as jnp
from jax import lax
from jax.experimental import pallas as pl
from jax.experimental.pallas import tpu as pltpu

BN_EPS = 1e-5

LAYER_DRUG = 3
DIM_DRUG = 128
DIM_DRUG_CELL = 256
REG_HIDDEN = 512
IN_FEAT = 77
FEAT_PAD = 128            # lane-dense K for the first GIN matmul (zero pad is inert)
NEG_INF = -1e30


# ----------------------------------------------------------------------------
# Single fused kernel: whole forward pass
# ----------------------------------------------------------------------------
def fused_forward_kernel(adj_ref, x_ref, maskadd_ref,
                         w1s_ref, b1s_ref, w2s_ref, b2s_ref,
                         bnscale_ref, bnshift_ref,
                         wes_ref, be_ref,
                         wr1_ref, br1_ref, wr2_ref, br2_ref, wr3_ref, br3_ref,
                         out_ref):
    adj = adj_ref[...]            # [N, N]  (I + A), loaded once, reused by all layers
    maskadd = maskadd_ref[...]    # [G, N]  0.0 where node belongs to graph g, -1e30 else
    h = x_ref[...]                # [N, 128]  (zero-padded from 77 features)
    num_graphs = maskadd.shape[0]

    # drug_emb matmul accumulator:
    #   z = concat_i(pooled_i) @ we  ==  sum_i pooled_i @ we_i   (JK('cat') fold)
    z = jnp.zeros((num_graphs, DIM_DRUG_CELL), jnp.float32)

    for i in range(LAYER_DRUG):   # static unroll over the 3 GIN layers
        # GINConv(eps=0): (1+eps)*x_i + sum_{j in N(i)} x_j  ==  (I + A) @ h
        agg = jnp.dot(adj, h, preferred_element_type=jnp.float32)
        # GIN MLP = Linear -> ReLU -> Linear
        t = jnp.dot(agg, w1s_ref[i], preferred_element_type=jnp.float32) + b1s_ref[i]
        t = jnp.maximum(t, 0.0)
        t = jnp.dot(t, w2s_ref[i], preferred_element_type=jnp.float32) + b2s_ref[i]
        # F.relu(conv(x, edge_index))
        t = jnp.maximum(t, 0.0)
        # BatchNorm1d (eval): folded to a single affine scale/shift
        h = t * bnscale_ref[i] + bnshift_ref[i]
        # global_max_pool of this layer's activations (additive membership mask)
        pooled = jnp.max(h[None, :, :] + maskadd[:, :, None], axis=1)   # [G, 128]
        # accumulate this layer's slice of the drug_emb matmul
        z = z + jnp.dot(pooled, wes_ref[i], preferred_element_type=jnp.float32)

    # drug_emb: Linear(384,256) -> ReLU   (Dropout is identity in eval mode)
    z = jnp.maximum(z + be_ref[...], 0.0)

    # regression: Linear -> ELU -> Linear -> ELU -> Linear  (Dropouts identity)
    z = jnp.dot(z, wr1_ref[...], preferred_element_type=jnp.float32) + br1_ref[...]
    z = jnp.where(z > 0.0, z, jnp.exp(jnp.minimum(z, 0.0)) - 1.0)       # ELU(alpha=1)
    z = jnp.dot(z, wr2_ref[...], preferred_element_type=jnp.float32) + br2_ref[...]
    z = jnp.where(z > 0.0, z, jnp.exp(jnp.minimum(z, 0.0)) - 1.0)
    out_ref[...] = jnp.dot(z, wr3_ref[...], preferred_element_type=jnp.float32) + br3_ref[...]


# ----------------------------------------------------------------------------
# Parameter init (deterministic, PyTorch-Linear-style uniform bounds)
# ----------------------------------------------------------------------------
def _init_linear(key, fan_in, fan_out):
    kw, kb = jax.random.split(key)
    bound = 1.0 / (fan_in ** 0.5)
    w = jax.random.uniform(kw, (fan_in, fan_out), jnp.float32, -bound, bound)
    b = jax.random.uniform(kb, (1, fan_out), jnp.float32, -bound, bound)
    return w, b


def init_params(key):
    keys = jax.random.split(key, 16)
    params = {"gin": []}
    for i in range(LAYER_DRUG):
        fin = IN_FEAT if i == 0 else DIM_DRUG
        w1, b1 = _init_linear(keys[2 * i], fin, DIM_DRUG)
        w2, b2 = _init_linear(keys[2 * i + 1], DIM_DRUG, DIM_DRUG)
        kbn = jax.random.split(keys[6 + i], 3)
        params["gin"].append({
            "w1": w1, "b1": b1, "w2": w2, "b2": b2,
            "gamma": jax.random.uniform(kbn[0], (1, DIM_DRUG), jnp.float32, 0.5, 1.5),
            "beta": jax.random.uniform(kbn[1], (1, DIM_DRUG), jnp.float32, -0.1, 0.1),
            "rmean": jax.random.uniform(kbn[2], (1, DIM_DRUG), jnp.float32, -0.1, 0.1),
            "rvar": jnp.ones((1, DIM_DRUG), jnp.float32),
        })
    params["we"], params["be"] = _init_linear(keys[9], DIM_DRUG * LAYER_DRUG, DIM_DRUG_CELL)
    params["wr1"], params["br1"] = _init_linear(keys[10], DIM_DRUG_CELL, REG_HIDDEN)
    params["wr2"], params["br2"] = _init_linear(keys[11], REG_HIDDEN, REG_HIDDEN)
    params["wr3"], params["br3"] = _init_linear(keys[12], REG_HIDDEN, 1)
    # TODO(synk): self.Transformer is constructed in MyModel.__init__ but never
    # used in MyModel.forward, so it is intentionally not instantiated here.
    return params


def pack_params(params):
    """Stack / pad / fold parameters into the fused-kernel argument layout."""
    w1_list = []
    for g in params["gin"]:
        w1 = g["w1"]
        if w1.shape[0] < FEAT_PAD:   # layer 0: zero-pad K 77 -> 128
            w1 = jnp.pad(w1, ((0, FEAT_PAD - w1.shape[0]), (0, 0)))
        w1_list.append(w1)
    w1s = jnp.stack(w1_list)                                     # [3, 128, 128]
    b1s = jnp.stack([g["b1"] for g in params["gin"]])            # [3, 1, 128]
    w2s = jnp.stack([g["w2"] for g in params["gin"]])            # [3, 128, 128]
    b2s = jnp.stack([g["b2"] for g in params["gin"]])            # [3, 1, 128]
    # Fold eval-mode BatchNorm into a single affine (exact for inference).
    inv = [lax.rsqrt(g["rvar"] + BN_EPS) for g in params["gin"]]
    bnscale = jnp.stack([g["gamma"] * inv[i] for i, g in enumerate(params["gin"])])
    bnshift = jnp.stack([g["beta"] - g["rmean"] * g["gamma"] * inv[i]
                         for i, g in enumerate(params["gin"])])
    # Split drug_emb weight (384x256) into per-layer 128x256 slabs (JK fold).
    wes = jnp.stack([params["we"][i * DIM_DRUG:(i + 1) * DIM_DRUG, :]
                     for i in range(LAYER_DRUG)])                # [3, 128, 256]
    return (w1s, b1s, w2s, b2s, bnscale, bnshift, wes, params["be"],
            params["wr1"], params["br1"], params["wr2"], params["br2"],
            params["wr3"], params["br3"])


# ----------------------------------------------------------------------------
# Full forward (single pallas_call)
# ----------------------------------------------------------------------------
def mymodel_forward(x, edge_index, batch, num_graphs, params):
    n = x.shape[0]
    # Dense (I + A) aggregation operator from edge_index (messages flow src -> dst).
    src, dst = edge_index[0], edge_index[1]
    adj = jnp.zeros((n, n), jnp.float32).at[dst, src].add(1.0)
    adj_plus_i = adj + jnp.eye(n, dtype=jnp.float32)
    # Additive per-graph membership mask for global_max_pool.
    maskadd = jnp.where(batch[None, :] == jnp.arange(num_graphs)[:, None],
                        0.0, NEG_INF).astype(jnp.float32)        # [G, N]
    # Lane-dense input features (zeros contribute nothing to the dot).
    x_pad = jnp.pad(x, ((0, 0), (0, FEAT_PAD - IN_FEAT)))

    args = (adj_plus_i, x_pad, maskadd) + pack_params(params)
    return pl.pallas_call(
        fused_forward_kernel,
        out_shape=jax.ShapeDtypeStruct((num_graphs, 1), jnp.float32),
        in_specs=[pl.BlockSpec(memory_space=pltpu.MemorySpace.VMEM)] * len(args),
        out_specs=pl.BlockSpec(memory_space=pltpu.MemorySpace.VMEM),
        compiler_params=pltpu.CompilerParams(vmem_limit_bytes=64 << 20),
    )(*args)


if __name__ == "__main__":
    key = jax.random.PRNGKey(0)
    k_param, k_x, k_e = jax.random.split(key, 3)

    # 2 graphs x 16 nodes each, 77-dim atom features (as in the PyG drug graphs).
    num_graphs = 2
    nodes_per_graph = 16
    n = num_graphs * nodes_per_graph
    x = jax.random.normal(k_x, (n, IN_FEAT), jnp.float32)
    batch = jnp.repeat(jnp.arange(num_graphs, dtype=jnp.int32), nodes_per_graph)

    # Deterministic edges: a ring inside each graph plus a few random intra-graph edges.
    ring_src, ring_dst = [], []
    for g in range(num_graphs):
        base = g * nodes_per_graph
        for i in range(nodes_per_graph):
            ring_src.append(base + i)
            ring_dst.append(base + (i + 1) % nodes_per_graph)
    ring_src = jnp.array(ring_src, jnp.int32)
    ring_dst = jnp.array(ring_dst, jnp.int32)
    ks, kd = jax.random.split(k_e)
    extra = 32
    graph_of_edge = jax.random.randint(ks, (extra,), 0, num_graphs)
    rnd_src = graph_of_edge * nodes_per_graph + jax.random.randint(ks, (extra,), 0, nodes_per_graph)
    rnd_dst = graph_of_edge * nodes_per_graph + jax.random.randint(kd, (extra,), 0, nodes_per_graph)
    edge_index = jnp.stack([jnp.concatenate([ring_src, rnd_src]),
                            jnp.concatenate([ring_dst, rnd_dst])], axis=0)  # [2, 64]

    params = init_params(k_param)
    forward = jax.jit(mymodel_forward, static_argnums=(3,))
    out = forward(x, edge_index, batch, num_graphs, params)
    out = jax.block_until_ready(out)
    assert out.shape == (num_graphs, 1) and out.dtype == jnp.float32
    assert bool(jnp.all(jnp.isfinite(out)))
    print("KERNEL_OK")
</pallas_src>

<mosaic_0001>
module attributes {stable_mosaic.version = 11 : i64} {
  func.func private @main(%arg0: i32) attributes {dimension_semantics = [#tpu.dimension_semantics<core_parallel>], iteration_bounds = array<i64: 2>, tpu.core_type = #tpu.core_type<sc_scalar_subcore>, window_params = []} {
    return
  }
}

module attributes {stable_mosaic.version = 11 : i64} {
  func.func private @main(%arg0: i32) attributes {dimension_semantics = [#tpu.dimension_semantics<core_parallel>], iteration_bounds = array<i64: 2>, tpu.core_type = #tpu.core_type<sc_scalar_subcore>, window_params = []} {
    return
  }
}

module attributes {stable_mosaic.version = 11 : i64} {
  func.func @fused_forward_kernel(%arg0: memref<32x32xf32, #tpu.memory_space<vmem>>, %arg1: memref<32x128xf32, #tpu.memory_space<vmem>>, %arg2: memref<2x32xf32, #tpu.memory_space<vmem>>, %arg3: memref<3x128x128xf32, #tpu.memory_space<vmem>>, %arg4: memref<3x1x128xf32, #tpu.memory_space<vmem>>, %arg5: memref<3x128x128xf32, #tpu.memory_space<vmem>>, %arg6: memref<3x1x128xf32, #tpu.memory_space<vmem>>, %arg7: memref<3x1x128xf32, #tpu.memory_space<vmem>>, %arg8: memref<3x1x128xf32, #tpu.memory_space<vmem>>, %arg9: memref<3x128x256xf32, #tpu.memory_space<vmem>>, %arg10: memref<1x256xf32, #tpu.memory_space<vmem>>, %arg11: memref<256x512xf32, #tpu.memory_space<vmem>>, %arg12: memref<1x512xf32, #tpu.memory_space<vmem>>, %arg13: memref<512x512xf32, #tpu.memory_space<vmem>>, %arg14: memref<1x512xf32, #tpu.memory_space<vmem>>, %arg15: memref<512x1xf32, #tpu.memory_space<vmem>>, %arg16: memref<1x1xf32, #tpu.memory_space<vmem>>, %arg17: memref<2x1xf32, #tpu.memory_space<vmem>>) attributes {dimension_semantics = [], scalar_prefetch = 0 : i64, scratch_operands = 0 : i64, tpu.core_type = #tpu.core_type<tc>} {
    %c0 = arith.constant 0 : index
    %c0_0 = arith.constant 0 : index
    %0 = vector.load %arg0[%c0, %c0_0] : memref<32x32xf32, #tpu.memory_space<vmem>>, vector<32x32xf32>
    %c0_1 = arith.constant 0 : index
    %c0_2 = arith.constant 0 : index
    %1 = vector.load %arg2[%c0_1, %c0_2] : memref<2x32xf32, #tpu.memory_space<vmem>>, vector<2x32xf32>
    %c0_3 = arith.constant 0 : index
    %c0_4 = arith.constant 0 : index
    %2 = vector.load %arg1[%c0_3, %c0_4] : memref<32x128xf32, #tpu.memory_space<vmem>>, vector<32x128xf32>
    %cst = arith.constant 0.000000e+00 : f32
    %3 = vector.broadcast %cst : f32 to vector<2x256xf32>
    %cst_5 = arith.constant dense<0.000000e+00> : vector<32x128xf32>
    %4 = tpu.matmul %0, %2, %cst_5 {dimension_numbers = #tpu.dot_dimension_numbers<[1], [0], [0], [1], [0, 0, 1, 1], [], []>} : vector<32x32xf32>, vector<32x128xf32>, vector<32x128xf32> -> vector<32x128xf32>
    %c0_6 = arith.constant 0 : index
    %c0_7 = arith.constant 0 : index
    %c0_8 = arith.constant 0 : index
    %5 = vector.load %arg3[%c0_6, %c0_7, %c0_8] : memref<3x128x128xf32, #tpu.memory_space<vmem>>, vector<1x128x128xf32>
    %6 = vector.shape_cast %5 : vector<1x128x128xf32> to vector<128x128xf32>
    %cst_9 = arith.constant dense<0.000000e+00> : vector<32x128xf32>
    %7 = tpu.matmul %4, %6, %cst_9 {dimension_numbers = #tpu.dot_dimension_numbers<[1], [0], [0], [1], [0, 0, 1, 1], [], []>} : vector<32x128xf32>, vector<128x128xf32>, vector<32x128xf32> -> vector<32x128xf32>
    %c0_10 = arith.constant 0 : index
    %c0_11 = arith.constant 0 : index
    %c0_12 = arith.constant 0 : index
    %8 = vector.load %arg4[%c0_10, %c0_11, %c0_12] : memref<3x1x128xf32, #tpu.memory_space<vmem>>, vector<1x1x128xf32>
    %9 = vector.shape_cast %8 : vector<1x1x128xf32> to vector<1x128xf32>
    %10 = vector.broadcast %9 : vector<1x128xf32> to vector<32x128xf32>
    %11 = arith.addf %7, %10 : vector<32x128xf32>
    %cst_13 = arith.constant 0.000000e+00 : f32
    %12 = vector.broadcast %cst_13 : f32 to vector<32x128xf32>
    %13 = arith.maximumf %11, %12 : vector<32x128xf32>
    %c0_14 = arith.constant 0 : index
    %c0_15 = arith.constant 0 : index
    %c0_16 = arith.constant 0 : index
    %14 = vector.load %arg5[%c0_14, %c0_15, %c0_16] : memref<3x128x128xf32, #tpu.memory_space<vmem>>, vector<1x128x128xf32>
    %15 = vector.shape_cast %14 : vector<1x128x128xf32> to vector<128x128xf32>
    %cst_17 = arith.constant dense<0.000000e+00> : vector<32x128xf32>
    %16 = tpu.matmul %13, %15, %cst_17 {dimension_numbers = #tpu.dot_dimension_numbers<[1], [0], [0], [1], [0, 0, 1, 1], [], []>} : vector<32x128xf32>, vector<128x128xf32>, vector<32x128xf32> -> vector<32x128xf32>
    %c0_18 = arith.constant 0 : index
    %c0_19 = arith.constant 0 : index
    %c0_20 = arith.constant 0 : index
    %17 = vector.load %arg6[%c0_18, %c0_19, %c0_20] : memref<3x1x128xf32, #tpu.memory_space<vmem>>, vector<1x1x128xf32>
    %18 = vector.shape_cast %17 : vector<1x1x128xf32> to vector<1x128xf32>
    %19 = vector.broadcast %18 : vector<1x128xf32> to vector<32x128xf32>
    %20 = arith.addf %16, %19 : vector<32x128xf32>
    %cst_21 = arith.constant 0.000000e+00 : f32
    %21 = vector.broadcast %cst_21 : f32 to vector<32x128xf32>
    %22 = arith.maximumf %20, %21 : vector<32x128xf32>
    %c0_22 = arith.constant 0 : index
    %c0_23 = arith.constant 0 : index
    %c0_24 = arith.constant 0 : index
    %23 = vector.load %arg7[%c0_22, %c0_23, %c0_24] : memref<3x1x128xf32, #tpu.memory_space<vmem>>, vector<1x1x128xf32>
    %24 = vector.shape_cast %23 : vector<1x1x128xf32> to vector<1x128xf32>
    %25 = vector.broadcast %24 : vector<1x128xf32> to vector<32x128xf32>
    %26 = arith.mulf %22, %25 : vector<32x128xf32>
    %c0_25 = arith.constant 0 : index
    %c0_26 = arith.constant 0 : index
    %c0_27 = arith.constant 0 : index
    %27 = vector.load %arg8[%c0_25, %c0_26, %c0_27] : memref<3x1x128xf32, #tpu.memory_space<vmem>>, vector<1x1x128xf32>
    %28 = vector.shape_cast %27 : vector<1x1x128xf32> to vector<1x128xf32>
    %29 = vector.broadcast %28 : vector<1x128xf32> to vector<32x128xf32>
    %30 = arith.addf %26, %29 : vector<32x128xf32>
    %31 = vector.shape_cast %30 : vector<32x128xf32> to vector<1x32x128xf32>
    %32 = vector.shape_cast %1 : vector<2x32xf32> to vector<2x32x1xf32>
    %33 = vector.broadcast %31 : vector<1x32x128xf32> to vector<2x32x128xf32>
    %34 = vector.broadcast %32 : vector<2x32x1xf32> to vector<2x32x128xf32>
    %35 = arith.addf %33, %34 : vector<2x32x128xf32>
    %cst_28 = arith.constant dense<0xFF800000> : vector<2x128xf32>
    %36 = vector.multi_reduction <maximumf>, %35, %cst_28 [1] : vector<2x32x128xf32> to vector<2x128xf32>
    %c0_29 = arith.constant 0 : index
    %c0_30 = arith.constant 0 : index
    %c0_31 = arith.constant 0 : index
    %37 = vector.load %arg9[%c0_29, %c0_30, %c0_31] : memref<3x128x256xf32, #tpu.memory_space<vmem>>, vector<1x128x256xf32>
    %38 = vector.shape_cast %37 : vector<1x128x256xf32> to vector<128x256xf32>
    %cst_32 = arith.constant dense<0.000000e+00> : vector<2x256xf32>
    %39 = tpu.matmul %36, %38, %cst_32 {dimension_numbers = #tpu.dot_dimension_numbers<[1], [0], [0], [1], [0, 0, 1, 1], [], []>} : vector<2x128xf32>, vector<128x256xf32>, vector<2x256xf32> -> vector<2x256xf32>
    %40 = arith.addf %3, %39 : vector<2x256xf32>
    %cst_33 = arith.constant dense<0.000000e+00> : vector<32x128xf32>
    %41 = tpu.matmul %0, %30, %cst_33 {dimension_numbers = #tpu.dot_dimension_numbers<[1], [0], [0], [1], [0, 0, 1, 1], [], []>} : vector<32x32xf32>, vector<32x128xf32>, vector<32x128xf32> -> vector<32x128xf32>
    %c1 = arith.constant 1 : index
    %c0_34 = arith.constant 0 : index
    %c0_35 = arith.constant 0 : index
    %42 = vector.load %arg3[%c1, %c0_34, %c0_35] : memref<3x128x128xf32, #tpu.memory_space<vmem>>, vector<1x128x128xf32>
    %43 = vector.shape_cast %42 : vector<1x128x128xf32> to vector<128x128xf32>
    %cst_36 = arith.constant dense<0.000000e+00> : vector<32x128xf32>
    %44 = tpu.matmul %41, %43, %cst_36 {dimension_numbers = #tpu.dot_dimension_numbers<[1], [0], [0], [1], [0, 0, 1, 1], [], []>} : vector<32x128xf32>, vector<128x128xf32>, vector<32x128xf32> -> vector<32x128xf32>
    %c1_37 = arith.constant 1 : index
    %c0_38 = arith.constant 0 : index
    %c0_39 = arith.constant 0 : index
    %45 = vector.load %arg4[%c1_37, %c0_38, %c0_39] : memref<3x1x128xf32, #tpu.memory_space<vmem>>, vector<1x1x128xf32>
    %46 = vector.shape_cast %45 : vector<1x1x128xf32> to vector<1x128xf32>
    %47 = vector.broadcast %46 : vector<1x128xf32> to vector<32x128xf32>
    %48 = arith.addf %44, %47 : vector<32x128xf32>
    %cst_40 = arith.constant 0.000000e+00 : f32
    %49 = vector.broadcast %cst_40 : f32 to vector<32x128xf32>
    %50 = arith.maximumf %48, %49 : vector<32x128xf32>
    %c1_41 = arith.constant 1 : index
    %c0_42 = arith.constant 0 : index
    %c0_43 = arith.constant 0 : index
    %51 = vector.load %arg5[%c1_41, %c0_42, %c0_43] : memref<3x128x128xf32, #tpu.memory_space<vmem>>, vector<1x128x128xf32>
    %52 = vector.shape_cast %51 : vector<1x128x128xf32> to vector<128x128xf32>
    %cst_44 = arith.constant dense<0.000000e+00> : vector<32x128xf32>
    %53 = tpu.matmul %50, %52, %cst_44 {dimension_numbers = #tpu.dot_dimension_numbers<[1], [0], [0], [1], [0, 0, 1, 1], [], []>} : vector<32x128xf32>, vector<128x128xf32>, vector<32x128xf32> -> vector<32x128xf32>
    %c1_45 = arith.constant 1 : index
    %c0_46 = arith.constant 0 : index
    %c0_47 = arith.constant 0 : index
    %54 = vector.load %arg6[%c1_45, %c0_46, %c0_47] : memref<3x1x128xf32, #tpu.memory_space<vmem>>, vector<1x1x128xf32>
    %55 = vector.shape_cast %54 : vector<1x1x128xf32> to vector<1x128xf32>
    %56 = vector.broadcast %55 : vector<1x128xf32> to vector<32x128xf32>
    %57 = arith.addf %53, %56 : vector<32x128xf32>
    %cst_48 = arith.constant 0.000000e+00 : f32
    %58 = vector.broadcast %cst_48 : f32 to vector<32x128xf32>
    %59 = arith.maximumf %57, %58 : vector<32x128xf32>
    %c1_49 = arith.constant 1 : index
    %c0_50 = arith.constant 0 : index
    %c0_51 = arith.constant 0 : index
    %60 = vector.load %arg7[%c1_49, %c0_50, %c0_51] : memref<3x1x128xf32, #tpu.memory_space<vmem>>, vector<1x1x128xf32>
    %61 = vector.shape_cast %60 : vector<1x1x128xf32> to vector<1x128xf32>
    %62 = vector.broadcast %61 : vector<1x128xf32> to vector<32x128xf32>
    %63 = arith.mulf %59, %62 : vector<32x128xf32>
    %c1_52 = arith.constant 1 : index
    %c0_53 = arith.constant 0 : index
    %c0_54 = arith.constant 0 : index
    %64 = vector.load %arg8[%c1_52, %c0_53, %c0_54] : memref<3x1x128xf32, #tpu.memory_space<vmem>>, vector<1x1x128xf32>
    %65 = vector.shape_cast %64 : vector<1x1x128xf32> to vector<1x128xf32>
    %66 = vector.broadcast %65 : vector<1x128xf32> to vector<32x128xf32>
    %67 = arith.addf %63, %66 : vector<32x128xf32>
    %68 = vector.shape_cast %67 : vector<32x128xf32> to vector<1x32x128xf32>
    %69 = vector.shape_cast %1 : vector<2x32xf32> to vector<2x32x1xf32>
    %70 = vector.broadcast %68 : vector<1x32x128xf32> to vector<2x32x128xf32>
    %71 = vector.broadcast %69 : vector<2x32x1xf32> to vector<2x32x128xf32>
    %72 = arith.addf %70, %71 : vector<2x32x128xf32>
    %cst_55 = arith.constant dense<0xFF800000> : vector<2x128xf32>
    %73 = vector.multi_reduction <maximumf>, %72, %cst_55 [1] : vector<2x32x128xf32> to vector<2x128xf32>
    %c1_56 = arith.constant 1 : index
    %c0_57 = arith.constant 0 : index
    %c0_58 = arith.constant 0 : index
    %74 = vector.load %arg9[%c1_56, %c0_57, %c0_58] : memref<3x128x256xf32, #tpu.memory_space<vmem>>, vector<1x128x256xf32>
    %75 = vector.shape_cast %74 : vector<1x128x256xf32> to vector<128x256xf32>
    %cst_59 = arith.constant dense<0.000000e+00> : vector<2x256xf32>
    %76 = tpu.matmul %73, %75, %cst_59 {dimension_numbers = #tpu.dot_dimension_numbers<[1], [0], [0], [1], [0, 0, 1, 1], [], []>} : vector<2x128xf32>, vector<128x256xf32>, vector<2x256xf32> -> vector<2x256xf32>
    %77 = arith.addf %40, %76 : vector<2x256xf32>
    %cst_60 = arith.constant dense<0.000000e+00> : vector<32x128xf32>
    %78 = tpu.matmul %0, %67, %cst_60 {dimension_numbers = #tpu.dot_dimension_numbers<[1], [0], [0], [1], [0, 0, 1, 1], [], []>} : vector<32x32xf32>, vector<32x128xf32>, vector<32x128xf32> -> vector<32x128xf32>
    %c2 = arith.constant 2 : index
    %c0_61 = arith.constant 0 : index
    %c0_62 = arith.constant 0 : index
    %79 = vector.load %arg3[%c2, %c0_61, %c0_62] : memref<3x128x128xf32, #tpu.memory_space<vmem>>, vector<1x128x128xf32>
    %80 = vector.shape_cast %79 : vector<1x128x128xf32> to vector<128x128xf32>
    %cst_63 = arith.constant dense<0.000000e+00> : vector<32x128xf32>
    %81 = tpu.matmul %78, %80, %cst_63 {dimension_numbers = #tpu.dot_dimension_numbers<[1], [0], [0], [1], [0, 0, 1, 1], [], []>} : vector<32x128xf32>, vector<128x128xf32>, vector<32x128xf32> -> vector<32x128xf32>
    %c2_64 = arith.constant 2 : index
    %c0_65 = arith.constant 0 : index
    %c0_66 = arith.constant 0 : index
    %82 = vector.load %arg4[%c2_64, %c0_65, %c0_66] : memref<3x1x128xf32, #tpu.memory_space<vmem>>, vector<1x1x128xf32>
    %83 = vector.shape_cast %82 : vector<1x1x128xf32> to vector<1x128xf32>
    %84 = vector.broadcast %83 : vector<1x128xf32> to vector<32x128xf32>
    %85 = arith.addf %81, %84 : vector<32x128xf32>
    %cst_67 = arith.constant 0.000000e+00 : f32
    %86 = vector.broadcast %cst_67 : f32 to vector<32x128xf32>
    %87 = arith.maximumf %85, %86 : vector<32x128xf32>
    %c2_68 = arith.constant 2 : index
    %c0_69 = arith.constant 0 : index
    %c0_70 = arith.constant 0 : index
    %88 = vector.load %arg5[%c2_68, %c0_69, %c0_70] : memref<3x128x128xf32, #tpu.memory_space<vmem>>, vector<1x128x128xf32>
    %89 = vector.shape_cast %88 : vector<1x128x128xf32> to vector<128x128xf32>
    %cst_71 = arith.constant dense<0.000000e+00> : vector<32x128xf32>
    %90 = tpu.matmul %87, %89, %cst_71 {dimension_numbers = #tpu.dot_dimension_numbers<[1], [0], [0], [1], [0, 0, 1, 1], [], []>} : vector<32x128xf32>, vector<128x128xf32>, vector<32x128xf32> -> vector<32x128xf32>
    %c2_72 = arith.constant 2 : index
    %c0_73 = arith.constant 0 : index
    %c0_74 = arith.constant 0 : index
    %91 = vector.load %arg6[%c2_72, %c0_73, %c0_74] : memref<3x1x128xf32, #tpu.memory_space<vmem>>, vector<1x1x128xf32>
    %92 = vector.shape_cast %91 : vector<1x1x128xf32> to vector<1x128xf32>
    %93 = vector.broadcast %92 : vector<1x128xf32> to vector<32x128xf32>
    %94 = arith.addf %90, %93 : vector<32x128xf32>
    %cst_75 = arith.constant 0.000000e+00 : f32
    %95 = vector.broadcast %cst_75 : f32 to vector<32x128xf32>
    %96 = arith.maximumf %94, %95 : vector<32x128xf32>
    %c2_76 = arith.constant 2 : index
    %c0_77 = arith.constant 0 : index
    %c0_78 = arith.constant 0 : index
    %97 = vector.load %arg7[%c2_76, %c0_77, %c0_78] : memref<3x1x128xf32, #tpu.memory_space<vmem>>, vector<1x1x128xf32>
    %98 = vector.shape_cast %97 : vector<1x1x128xf32> to vector<1x128xf32>
    %99 = vector.broadcast %98 : vector<1x128xf32> to vector<32x128xf32>
    %100 = arith.mulf %96, %99 : vector<32x128xf32>
    %c2_79 = arith.constant 2 : index
    %c0_80 = arith.constant 0 : index
    %c0_81 = arith.constant 0 : index
    %101 = vector.load %arg8[%c2_79, %c0_80, %c0_81] : memref<3x1x128xf32, #tpu.memory_space<vmem>>, vector<1x1x128xf32>
    %102 = vector.shape_cast %101 : vector<1x1x128xf32> to vector<1x128xf32>
    %103 = vector.broadcast %102 : vector<1x128xf32> to vector<32x128xf32>
    %104 = arith.addf %100, %103 : vector<32x128xf32>
    %105 = vector.shape_cast %104 : vector<32x128xf32> to vector<1x32x128xf32>
    %106 = vector.shape_cast %1 : vector<2x32xf32> to vector<2x32x1xf32>
    %107 = vector.broadcast %105 : vector<1x32x128xf32> to vector<2x32x128xf32>
    %108 = vector.broadcast %106 : vector<2x32x1xf32> to vector<2x32x128xf32>
    %109 = arith.addf %107, %108 : vector<2x32x128xf32>
    %cst_82 = arith.constant dense<0xFF800000> : vector<2x128xf32>
    %110 = vector.multi_reduction <maximumf>, %109, %cst_82 [1] : vector<2x32x128xf32> to vector<2x128xf32>
    %c2_83 = arith.constant 2 : index
    %c0_84 = arith.constant 0 : index
    %c0_85 = arith.constant 0 : index
    %111 = vector.load %arg9[%c2_83, %c0_84, %c0_85] : memref<3x128x256xf32, #tpu.memory_space<vmem>>, vector<1x128x256xf32>
    %112 = vector.shape_cast %111 : vector<1x128x256xf32> to vector<128x256xf32>
    %cst_86 = arith.constant dense<0.000000e+00> : vector<2x256xf32>
    %113 = tpu.matmul %110, %112, %cst_86 {dimension_numbers = #tpu.dot_dimension_numbers<[1], [0], [0], [1], [0, 0, 1, 1], [], []>} : vector<2x128xf32>, vector<128x256xf32>, vector<2x256xf32> -> vector<2x256xf32>
    %114 = arith.addf %77, %113 : vector<2x256xf32>
    %c0_87 = arith.constant 0 : index
    %c0_88 = arith.constant 0 : index
    %115 = vector.load %arg10[%c0_87, %c0_88] : memref<1x256xf32, #tpu.memory_space<vmem>>, vector<1x256xf32>
    %116 = vector.broadcast %115 : vector<1x256xf32> to vector<2x256xf32>
    %117 = arith.addf %114, %116 : vector<2x256xf32>
    %cst_89 = arith.constant 0.000000e+00 : f32
    %118 = vector.broadcast %cst_89 : f32 to vector<2x256xf32>
    %119 = arith.maximumf %117, %118 : vector<2x256xf32>
    %c0_90 = arith.constant 0 : index
    %c0_91 = arith.constant 0 : index
    %120 = vector.load %arg11[%c0_90, %c0_91] : memref<256x512xf32, #tpu.memory_space<vmem>>, vector<256x512xf32>
    %cst_92 = arith.constant dense<0.000000e+00> : vector<2x512xf32>
    %121 = tpu.matmul %119, %120, %cst_92 {dimension_numbers = #tpu.dot_dimension_numbers<[1], [0], [0], [1], [0, 0, 1, 1], [], []>} : vector<2x256xf32>, vector<256x512xf32>, vector<2x512xf32> -> vector<2x512xf32>
    %c0_93 = arith.constant 0 : index
    %c0_94 = arith.constant 0 : index
    %122 = vector.load %arg12[%c0_93, %c0_94] : memref<1x512xf32, #tpu.memory_space<vmem>>, vector<1x512xf32>
    %123 = vector.broadcast %122 : vector<1x512xf32> to vector<2x512xf32>
    %124 = arith.addf %121, %123 : vector<2x512xf32>
    %cst_95 = arith.constant 0.000000e+00 : f32
    %125 = vector.broadcast %cst_95 : f32 to vector<2x512xf32>
    %126 = arith.cmpf ogt, %124, %125 : vector<2x512xf32>
    %cst_96 = arith.constant 0.000000e+00 : f32
    %127 = vector.broadcast %cst_96 : f32 to vector<2x512xf32>
    %128 = arith.minimumf %124, %127 : vector<2x512xf32>
    %129 = math.exp %128 : vector<2x512xf32>
    %cst_97 = arith.constant 1.000000e+00 : f32
    %130 = vector.broadcast %cst_97 : f32 to vector<2x512xf32>
    %131 = arith.subf %129, %130 : vector<2x512xf32>
    %132 = arith.select %126, %124, %131 : vector<2x512xi1>, vector<2x512xf32>
    %c0_98 = arith.constant 0 : index
    %c0_99 = arith.constant 0 : index
    %133 = vector.load %arg13[%c0_98, %c0_99] : memref<512x512xf32, #tpu.memory_space<vmem>>, vector<512x512xf32>
    %cst_100 = arith.constant dense<0.000000e+00> : vector<2x512xf32>
    %134 = tpu.matmul %132, %133, %cst_100 {dimension_numbers = #tpu.dot_dimension_numbers<[1], [0], [0], [1], [0, 0, 1, 1], [], []>} : vector<2x512xf32>, vector<512x512xf32>, vector<2x512xf32> -> vector<2x512xf32>
    %c0_101 = arith.constant 0 : index
    %c0_102 = arith.constant 0 : index
    %135 = vector.load %arg14[%c0_101, %c0_102] : memref<1x512xf32, #tpu.memory_space<vmem>>, vector<1x512xf32>
    %136 = vector.broadcast %135 : vector<1x512xf32> to vector<2x512xf32>
    %137 = arith.addf %134, %136 : vector<2x512xf32>
    %cst_103 = arith.constant 0.000000e+00 : f32
    %138 = vector.broadcast %cst_103 : f32 to vector<2x512xf32>
    %139 = arith.cmpf ogt, %137, %138 : vector<2x512xf32>
    %cst_104 = arith.constant 0.000000e+00 : f32
    %140 = vector.broadcast %cst_104 : f32 to vector<2x512xf32>
    %141 = arith.minimumf %137, %140 : vector<2x512xf32>
    %142 = math.exp %141 : vector<2x512xf32>
    %cst_105 = arith.constant 1.000000e+00 : f32
    %143 = vector.broadcast %cst_105 : f32 to vector<2x512xf32>
    %144 = arith.subf %142, %143 : vector<2x512xf32>
    %145 = arith.select %139, %137, %144 : vector<2x512xi1>, vector<2x512xf32>
    %c0_106 = arith.constant 0 : index
    %c0_107 = arith.constant 0 : index
    %146 = vector.load %arg15[%c0_106, %c0_107] : memref<512x1xf32, #tpu.memory_space<vmem>>, vector<512x1xf32>
    %cst_108 = arith.constant dense<0.000000e+00> : vector<2x1xf32>
    %147 = tpu.matmul %145, %146, %cst_108 {dimension_numbers = #tpu.dot_dimension_numbers<[1], [0], [0], [1], [0, 0, 1, 1], [], []>} : vector<2x512xf32>, vector<512x1xf32>, vector<2x1xf32> -> vector<2x1xf32>
    %c0_109 = arith.constant 0 : index
    %c0_110 = arith.constant 0 : index
    %148 = vector.load %arg16[%c0_109, %c0_110] : memref<1x1xf32, #tpu.memory_space<vmem>>, vector<1x1xf32>
    %149 = vector.broadcast %148 : vector<1x1xf32> to vector<2x1xf32>
    %150 = arith.addf %147, %149 : vector<2x1xf32>
    %c0_111 = arith.constant 0 : index
    %c0_112 = arith.constant 0 : index
    %151 = vector.load %arg17[%c0_111, %c0_112] : memref<2x1xf32, #tpu.memory_space<vmem>>, vector<2x1xf32>
    tpu.vector_store %arg17[%c0_111, %c0_112], %150 {strides = array<i32>} : memref<2x1xf32, #tpu.memory_space<vmem>>, vector<2x1xf32>,
    return
  }
}

</mosaic_0001>

<bundles_post_ra>
// kernel: mymodel_forward.1
= control target key start
LH: loop header
LB: loop body
LE: loop exit
PB: predicated region body
PF: predicated region fallthrough
CT: control target
= control target key end

     0   :  { %s5093_s0 = inlined_call_operand.hbm [shape: f32[32,32], index: 0, kind: input, shape index: {}]   ;;  %s5094_s1 = inlined_call_operand.hbm [shape: f32[32,128], index: 1, kind: input, shape index: {}]   ;;  %s5095_s2 = inlined_call_operand.hbm [shape: f32[2,32], index: 2, kind: input, shape index: {}]   ;;  %s5096_s3 = inlined_call_operand.hbm [shape: f32[3,128,128], index: 3, kind: input, shape index: {}]   ;;  %s5097_s4 = inlined_call_operand.hbm [shape: f32[3,1,128], index: 4, kind: input, shape index: {}]   ;;  %s5098_s5 = inlined_call_operand.hbm [shape: f32[3,128,128], index: 5, kind: input, shape index: {}]   ;;  %s5099_s6 = inlined_call_operand.hbm [shape: f32[3,1,128], index: 6, kind: input, shape index: {}]   ;;  %s5100_s7 = inlined_call_operand.hbm [shape: f32[3,1,128], index: 7, kind: input, shape index: {}]   ;;  %s5101_s8 = inlined_call_operand.hbm [shape: f32[3,1,128], index: 8, kind: input, shape index: {}]   ;;  %s5102_s9 = inlined_call_operand.hbm [shape: f32[3,128,256], index: 9, kind: input, shape index: {}]   ;;  %s5103_s10 = inlined_call_operand.hbm [shape: f32[1,256], index: 10, kind: input, shape index: {}]   ;;  %s5104_s11 = inlined_call_operand.hbm [shape: f32[256,512], index: 11, kind: input, shape index: {}]   ;;  %s5105_s12 = inlined_call_operand.hbm [shape: f32[1,512], index: 12, kind: input, shape index: {}]   ;;  %s5106_s13 = inlined_call_operand.hbm [shape: f32[512,512], index: 13, kind: input, shape index: {}]   ;;  %s5107_s14 = inlined_call_operand.hbm [shape: f32[1,512], index: 14, kind: input, shape index: {}]   ;;  %s5108_s15 = inlined_call_operand.hbm [shape: f32[512,1], index: 15, kind: input, shape index: {}]   ;;  %s5109_s16 = inlined_call_operand.<no memory space> [shape: f32[1,1], index: 16, kind: input, shape index: {}]   ;;  %s5110_s17 = inlined_call_operand.hbm [shape: f32[2,1], index: 17, kind: output, shape index: {}]  }
   0x1   :  { %5113 = sst [smem:[#allocation40_spill]] %s5093_s0  ;;  %v22_v0 = vstv %s5109_s16 }
   0x2   :  { %5114 = sst [smem:[#allocation41_spill]] %s5094_s1  ;;  %23 = vst [vmem:[#allocation2] sm:$0x1] %v22_v0 }
   0x3   :  { %24 = vsyncpa [#allocation4], 0 }
   0x4   :  { %25 = vsyncpa [#allocation7], 0 }
   0x5   :  { %26 = vsyncpa [#allocation10], 0 }
   0x6   :  { %27 = vsyncpa [#allocation13], 0 }
   0x7   :  { %28 = vsyncpa [#allocation16], 0 }
   0x8   :  { %29 = vsyncpa [#allocation19], 0 }
   0x9   :  { %30 = vsyncpa [#allocation22], 0 }
   0xa   :  { %31 = vsyncpa [#allocation25], 0 }
   0xb   :  { %32 = vsyncpa [#allocation28], 0 }
   0xc   :  { %33 = vsyncpa [#allocation5], 0  ;;  %s4615_s26 = smov [#allocation6]   ;;  %s4616_s28 = smov [#allocation9]  }
   0xd   :  { %s51_s27 = sshll.u32 %s4615_s26, 4  ;;  %s73_s29 = sshll.u32 %s4616_s28, 4  ;;  %s52_s27 = int_to_ptr.vmem [resolvable:$true] %s51_s27  ;;  %s4733_s29 = int_to_ptr.vmem [resolvable:$true] %s73_s29 }
   0xe   :  { %s5115_s30 = sld [smem:[#allocation41_spill]] }
  0x14   :  { %s4221_s18 = scalar_lea.hbm %s5115_s30, 512 }
  0x15   :  { %p4222_p0 = scmp.ne.s32.totalorder %s5115_s30, %s4221_s18  ;;  %p4225_p1 = scmp.lt.u32.totalorder %s4221_s18, %s5115_s30 }
  0x17   :  { %p4227_p2 = pnand %p4225_p1, %p4222_p0 }
  0x19   :  { %4230 = shalt.err (!%p4227_p2)
}
  0x1a   :  { %s4231_s22 = scalar_lea.vmem %s52_s27, 512  ;;  %p4236_p4 = scmp.lt.s32.totalorder %s52_s27, %s52_s27 }
  0x1b   :  { %p4232_p3 = scmp.ne.s32.totalorder %s52_s27, %s4231_s22  ;;  %p4237_p5 = scmp.lt.s32.totalorder %s4231_s22, %s4231_s22 }
  0x1d   :  { %p4238_p6 = por %p4237_p5, %p4236_p4 }
  0x1f   :  { %p4239_p7 = pnand %p4238_p6, %p4232_p3 }
  0x21   :  { %4242 = shalt.err (!%p4239_p7)
}
  0x22   :  { %s4617_s23 = smov 128   ;;  %s4618_s24 = smov 8  }
  0x23   :  { %57 = dma.hbm_to_vmem [thread:$0]  %s5115_s30, 512, %s52_s27, [#allocation7], %s4617_s23, %s4617_s23, %s4618_s24  }
  0x24   :  { %s4243_s16 = scalar_lea.hbm %s5096_s3, 6144 }
  0x25   :  { %p4244_p8 = scmp.ne.s32.totalorder %s5096_s3, %s4243_s16  ;;  %p4247_p9 = scmp.lt.u32.totalorder %s4243_s16, %s5096_s3 }
  0x27   :  { %p4249_p10 = pnand %p4247_p9, %p4244_p8 }
  0x29   :  { %4252 = shalt.err (!%p4249_p10)
}
  0x2a   :  { %s4253_s21 = scalar_lea.vmem %s4733_s29, 6144  ;;  %p4258_p12 = scmp.lt.s32.totalorder %s4733_s29, %s4733_s29 }
  0x2b   :  { %p4254_p11 = scmp.ne.s32.totalorder %s4733_s29, %s4253_s21  ;;  %p4259_p13 = scmp.lt.s32.totalorder %s4253_s21, %s4253_s21 }
  0x2d   :  { %p4260_p0 = por %p4259_p13, %p4258_p12 }
  0x2f   :  { %p4261_p1 = pnand %p4260_p0, %p4254_p11 }
  0x31   :  { %4264 = shalt.err (!%p4261_p1)
}
  0x32   :  { %79 = dma.hbm_to_vmem [thread:$0]  %s5096_s3, 6144, %s4733_s29, [#allocation10], %s4617_s23, %s4617_s23, %s4618_s24  }
  0x33   :  { %s4619_s22 = smov [#allocation12]   ;;  %s4265_s0 = scalar_lea.hbm %s5098_s5, 6144 }
  0x34   :  { %s97_s25 = sshll.u32 %s4619_s22, 4  ;;  %p4266_p2 = scmp.ne.s32.totalorder %s5098_s5, %s4265_s0  ;;  %s98_s25 = int_to_ptr.vmem [resolvable:$true] %s97_s25 }
  0x35   :  { %p4269_p3 = scmp.lt.u32.totalorder %s4265_s0, %s5098_s5 }
  0x37   :  { %p4271_p4 = pnand %p4269_p3, %p4266_p2 }
  0x39   :  { %4274 = shalt.err (!%p4271_p4)
}
  0x3a   :  { %s4275_s20 = scalar_lea.vmem %s98_s25, 6144  ;;  %p4280_p6 = scmp.lt.s32.totalorder %s98_s25, %s98_s25 }
  0x3b   :  { %p4276_p5 = scmp.ne.s32.totalorder %s98_s25, %s4275_s20  ;;  %p4281_p7 = scmp.lt.s32.totalorder %s4275_s20, %s4275_s20 }
  0x3d   :  { %p4282_p8 = por %p4281_p7, %p4280_p6 }
  0x3f   :  { %p4283_p9 = pnand %p4282_p8, %p4276_p5 }
  0x41   :  { %4286 = shalt.err (!%p4283_p9)
}
  0x42   :  { %103 = dma.hbm_to_vmem [thread:$0]  %s5098_s5, 6144, %s98_s25, [#allocation13], %s4617_s23, %s4617_s23, %s4618_s24  }
  0x43   :  { %s4620_s21 = smov [#allocation15]   ;;  %s4621_s30 = smov [#allocation18]  }
  0x44   :  { %s121_s27 = sshll.u32 %s4620_s21, 4  ;;  %s145_s22 = sshll.u32 %s4621_s30, 4  ;;  %s122_s27 = int_to_ptr.vmem [resolvable:$true] %s121_s27  ;;  %s146_s22 = int_to_ptr.vmem [resolvable:$true] %s145_s22 }
  0x45   :  { %s4287_s0 = scalar_lea.hbm %s5100_s7, 48 }
  0x46   :  { %p4288_p10 = scmp.ne.s32.totalorder %s5100_s7, %s4287_s0  ;;  %p4291_p11 = scmp.lt.u32.totalorder %s4287_s0, %s5100_s7 }
  0x48   :  { %p4293_p12 = pnand %p4291_p11, %p4288_p10 }
  0x4a   :  { %4296 = shalt.err (!%p4293_p12)
}
  0x4b   :  { %s4297_s5 = scalar_lea.vmem %s122_s27, 48  ;;  %s4301_s25 = scalar_lea.vmem %s122_s27, 64 }
  0x4c   :  { %p4298_p13 = scmp.ne.s32.totalorder %s122_s27, %s4297_s5  ;;  %p4302_p0 = scmp.lt.s32.totalorder %s122_s27, %s122_s27 }
  0x4d   :  { %p4303_p1 = scmp.lt.s32.totalorder %s4301_s25, %s4297_s5 }
  0x4f   :  { %p4304_p2 = por %p4303_p1, %p4302_p0 }
  0x51   :  { %p4305_p3 = pnand %p4304_p2, %p4298_p13 }
  0x53   :  { %4308 = shalt.err (!%p4305_p3)
}
  0x54   :  { %s4622_s20 = smov 16   ;;  %s4623_s3 = smov 1  }
  0x55   :  { %127 = dma.hbm_to_vmem [thread:$0]  %s5100_s7, 48, %s122_s27, [#allocation16], %s4622_s20, %s4622_s20, %s4623_s3  }
  0x56   :  { %s4309_s28 = scalar_lea.hbm %s5102_s9, 12288 }
  0x57   :  { %p4310_p4 = scmp.ne.s32.totalorder %s5102_s9, %s4309_s28  ;;  %p4313_p5 = scmp.lt.u32.totalorder %s4309_s28, %s5102_s9 }
  0x59   :  { %p4315_p6 = pnand %p4313_p5, %p4310_p4 }
  0x5b   :  { %4318 = shalt.err (!%p4315_p6)
}
  0x5c   :  { %s4319_s1 = scalar_lea.vmem %s146_s22, 12288  ;;  %p4324_p8 = scmp.lt.s32.totalorder %s146_s22, %s146_s22 }
  0x5d   :  { %p4320_p7 = scmp.ne.s32.totalorder %s146_s22, %s4319_s1  ;;  %p4325_p9 = scmp.lt.s32.totalorder %s4319_s1, %s4319_s1 }
  0x5f   :  { %p4326_p10 = por %p4325_p9, %p4324_p8 }
  0x61   :  { %p4327_p11 = pnand %p4326_p10, %p4320_p7 }
  0x63   :  { %4330 = shalt.err (!%p4327_p11)
}
  0x64   :  { %s4624_s7 = smov 256   ;;  %s4625_s25 = smov [#allocation21]  }
  0x65   :  { %151 = dma.hbm_to_vmem [thread:$0]  %s5102_s9, 12288, %s146_s22, [#allocation19], %s4624_s7, %s4624_s7, %s4622_s20  }
  0x66   :  { %s167_s29 = sshll.u32 %s4625_s25, 4  ;;  %s4331_s26 = scalar_lea.hbm %s5104_s11, 16384  ;;  %s168_s29 = int_to_ptr.vmem [resolvable:$true] %s167_s29 }
  0x67   :  { %p4332_p12 = scmp.ne.s32.totalorder %s5104_s11, %s4331_s26  ;;  %p4335_p13 = scmp.lt.u32.totalorder %s4331_s26, %s5104_s11 }
  0x69   :  { %p4337_p0 = pnand %p4335_p13, %p4332_p12 }
  0x6b   :  { %4340 = shalt.err (!%p4337_p0)
}
  0x6c   :  { %s4341_s19 = scalar_lea.vmem %s168_s29, 16384  ;;  %p4346_p2 = scmp.lt.s32.totalorder %s168_s29, %s168_s29 }
  0x6d   :  { %p4342_p1 = scmp.ne.s32.totalorder %s168_s29, %s4341_s19  ;;  %p4347_p3 = scmp.lt.s32.totalorder %s4341_s19, %s4341_s19 }
  0x6f   :  { %p4348_p4 = por %p4347_p3, %p4346_p2 }
  0x71   :  { %p4349_p5 = pnand %p4348_p4, %p4342_p1 }
  0x73   :  { %4352 = shalt.err (!%p4349_p5)
}
  0x74   :  { %s4626_s9 = smov 512   ;;  %s4627_s22 = smov 32  }
  0x75   :  { %173 = dma.hbm_to_vmem [thread:$0]  %s5104_s11, 16384, %s168_s29, [#allocation22], %s4626_s9, %s4626_s9, %s4627_s22  }
  0x76   :  { %s4628_s27 = smov [#allocation24]   ;;  %s4629_s25 = smov [#allocation3]  }
  0x77   :  { %s189_s5 = sshll.u32 %s4628_s27, 4  ;;  %s39_s21 = sshll.u32 %s4629_s25, 4  ;;  %s190_s5 = int_to_ptr.vmem [resolvable:$true] %s189_s5  ;;  %s40_s21 = int_to_ptr.vmem [resolvable:$true] %s39_s21 }
  0x78   :  { %s4353_s28 = scalar_lea.hbm %s5106_s13, 32768 }
  0x79   :  { %p4354_p6 = scmp.ne.s32.totalorder %s5106_s13, %s4353_s28  ;;  %p4357_p7 = scmp.lt.u32.totalorder %s4353_s28, %s5106_s13 }
  0x7b   :  { %p4359_p8 = pnand %p4357_p7, %p4354_p6 }
  0x7d   :  { %4362 = shalt.err (!%p4359_p8)
}
  0x7e   :  { %s4363_s11 = scalar_lea.vmem %s190_s5, 32768  ;;  %p4368_p10 = scmp.lt.s32.totalorder %s190_s5, %s190_s5 }
  0x7f   :  { %p4364_p9 = scmp.ne.s32.totalorder %s190_s5, %s4363_s11  ;;  %p4369_p11 = scmp.lt.s32.totalorder %s4363_s11, %s4363_s11 }
  0x81   :  { %p4370_p12 = por %p4369_p11, %p4368_p10 }
  0x83   :  { %p4371_p13 = pnand %p4370_p12, %p4364_p9 }
  0x85   :  { %4374 = shalt.err (!%p4371_p13)
}
  0x86   :  { %195 = dma.hbm_to_vmem [thread:$0]  %s5106_s13, 32768, %s190_s5, [#allocation25], %s4626_s9, %s4626_s9, %s4627_s22  }
  0x87   :  { %s5116_s25 = sld [smem:[#allocation40_spill]] }
  0x8d   :  { %s4375_s30 = scalar_lea.hbm %s5116_s25, 512 }
  0x8e   :  { %p4376_p0 = scmp.ne.s32.totalorder %s5116_s25, %s4375_s30  ;;  %p4379_p1 = scmp.lt.u32.totalorder %s4375_s30, %s5116_s25 }
  0x90   :  { %p4381_p2 = pnand %p4379_p1, %p4376_p0 }
  0x92   :  { %4384 = shalt.err (!%p4381_p2)
}
  0x93   :  { %s4385_s18 = scalar_lea.vmem %s40_s21, 512  ;;  %p4390_p4 = scmp.lt.s32.totalorder %s40_s21, %s40_s21 }
  0x94   :  { %p4386_p3 = scmp.ne.s32.totalorder %s40_s21, %s4385_s18  ;;  %p4391_p5 = scmp.lt.s32.totalorder %s4385_s18, %s4385_s18 }
  0x96   :  { %p4392_p6 = por %p4391_p5, %p4390_p4 }
  0x98   :  { %p4393_p7 = pnand %p4392_p6, %p4386_p3 }
  0x9a   :  { %4396 = shalt.err (!%p4393_p7)
}
  0x9b   :  { %45 = dma.hbm_to_vmem [thread:$0]  %s5116_s25, 512, %s40_s21, [#allocation4], %s4617_s23, %s4617_s23, %s4618_s24  }
  0x9c   :  { %s4630_s22 = smov [#allocation8]   ;;  %s4631_s19 = smov [#allocation11]  }
  0x9d   :  { %s64_s5 = sshll.u32 %s4630_s22, 4  ;;  %s85_s11 = sshll.u32 %s4631_s19, 4  ;;  %s65_s5 = int_to_ptr.vmem [resolvable:$true] %s64_s5  ;;  %s86_s11 = int_to_ptr.vmem [resolvable:$true] %s85_s11 }
  0x9e   :  { %s4397_s7 = scalar_lea.hbm %s5095_s2, 32 }
  0x9f   :  { %p4398_p8 = scmp.ne.s32.totalorder %s5095_s2, %s4397_s7  ;;  %p4401_p9 = scmp.lt.u32.totalorder %s4397_s7, %s5095_s2 }
  0xa1   :  { %p4403_p10 = pnand %p4401_p9, %p4398_p8 }
  0xa3   :  { %4406 = shalt.err (!%p4403_p10)
}
  0xa4   :  { %s4407_s21 = scalar_lea.vmem %s65_s5, 32  ;;  %p4412_p12 = scmp.lt.s32.totalorder %s65_s5, %s65_s5 }
  0xa5   :  { %p4408_p11 = scmp.ne.s32.totalorder %s65_s5, %s4407_s21  ;;  %p4413_p13 = scmp.lt.s32.totalorder %s4407_s21, %s4407_s21 }
  0xa7   :  { %p4414_p0 = por %p4413_p13, %p4412_p12 }
  0xa9   :  { %p4415_p1 = pnand %p4414_p0, %p4408_p11 }
  0xab   :  { %4418 = shalt.err (!%p4415_p1)
}
  0xac   :  { %67 = dma.hbm_to_vmem [thread:$0]  %s5095_s2, 32, %s65_s5, [#allocation7]  }
  0xad   :  { %s4419_s13 = scalar_lea.hbm %s5097_s4, 48 }
  0xae   :  { %p4420_p2 = scmp.ne.s32.totalorder %s5097_s4, %s4419_s13  ;;  %p4423_p3 = scmp.lt.u32.totalorder %s4419_s13, %s5097_s4 }
  0xb0   :  { %p4425_p4 = pnand %p4423_p3, %p4420_p2 }
  0xb2   :  { %4428 = shalt.err (!%p4425_p4)
}
  0xb3   :  { %s4429_s1 = scalar_lea.vmem %s86_s11, 48  ;;  %s4433_s7 = scalar_lea.vmem %s86_s11, 64 }
  0xb4   :  { %p4430_p5 = scmp.ne.s32.totalorder %s86_s11, %s4429_s1  ;;  %p4434_p6 = scmp.lt.s32.totalorder %s86_s11, %s86_s11 }
  0xb5   :  { %p4435_p7 = scmp.lt.s32.totalorder %s4433_s7, %s4429_s1 }
  0xb7   :  { %p4436_p8 = por %p4435_p7, %p4434_p6 }
  0xb9   :  { %p4437_p9 = pnand %p4436_p8, %p4430_p5 }
  0xbb   :  { %4440 = shalt.err (!%p4437_p9)
}
  0xbc   :  { %91 = dma.hbm_to_vmem [thread:$0]  %s5097_s4, 48, %s86_s11, [#allocation10], %s4622_s20, %s4622_s20, %s4623_s3  }
  0xbd   :  { %s4632_s27 = smov [#allocation14]   ;;  %s4633_s26 = smov [#allocation17]  }
  0xbe   :  { %s109_s30 = sshll.u32 %s4632_s27, 4  ;;  %s133_s28 = sshll.u32 %s4633_s26, 4  ;;  %s110_s30 = int_to_ptr.vmem [resolvable:$true] %s109_s30  ;;  %s134_s28 = int_to_ptr.vmem [resolvable:$true] %s133_s28 }
  0xbf   :  { %s4441_s0 = scalar_lea.hbm %s5099_s6, 48 }
  0xc0   :  { %p4442_p10 = scmp.ne.s32.totalorder %s5099_s6, %s4441_s0  ;;  %p4445_p11 = scmp.lt.u32.totalorder %s4441_s0, %s5099_s6 }
  0xc2   :  { %p4447_p12 = pnand %p4445_p11, %p4442_p10 }
  0xc4   :  { %4450 = shalt.err (!%p4447_p12)
}
  0xc5   :  { %s4451_s4 = scalar_lea.vmem %s110_s30, 48  ;;  %s4455_s11 = scalar_lea.vmem %s110_s30, 64 }
  0xc6   :  { %p4452_p13 = scmp.ne.s32.totalorder %s110_s30, %s4451_s4  ;;  %p4456_p0 = scmp.lt.s32.totalorder %s110_s30, %s110_s30 }
  0xc7   :  { %p4457_p1 = scmp.lt.s32.totalorder %s4455_s11, %s4451_s4 }
  0xc9   :  { %p4458_p2 = por %p4457_p1, %p4456_p0 }
  0xcb   :  { %p4459_p3 = pnand %p4458_p2, %p4452_p13 }
  0xcd   :  { %4462 = shalt.err (!%p4459_p3)
}
  0xce   :  { %115 = dma.hbm_to_vmem [thread:$0]  %s5099_s6, 48, %s110_s30, [#allocation13], %s4622_s20, %s4622_s20, %s4623_s3  }
  0xcf   :  { %s4463_s7 = scalar_lea.hbm %s5101_s8, 48 }
  0xd0   :  { %p4464_p4 = scmp.ne.s32.totalorder %s5101_s8, %s4463_s7  ;;  %p4467_p5 = scmp.lt.u32.totalorder %s4463_s7, %s5101_s8 }
  0xd2   :  { %p4469_p6 = pnand %p4467_p5, %p4464_p4 }
  0xd4   :  { %4472 = shalt.err (!%p4469_p6)
}
  0xd5   :  { %s4473_s21 = scalar_lea.vmem %s134_s28, 48  ;;  %s4477_s25 = scalar_lea.vmem %s134_s28, 64 }
  0xd6   :  { %p4474_p7 = scmp.ne.s32.totalorder %s134_s28, %s4473_s21  ;;  %p4478_p8 = scmp.lt.s32.totalorder %s134_s28, %s134_s28 }
  0xd7   :  { %p4479_p9 = scmp.lt.s32.totalorder %s4477_s25, %s4473_s21 }
  0xd9   :  { %p4480_p10 = por %p4479_p9, %p4478_p8 }
  0xdb   :  { %p4481_p11 = pnand %p4480_p10, %p4474_p7 }
  0xdd   :  { %4484 = shalt.err (!%p4481_p11)
}
  0xde   :  { %139 = dma.hbm_to_vmem [thread:$0]  %s5101_s8, 48, %s134_s28, [#allocation16], %s4622_s20, %s4622_s20, %s4623_s3  }
  0xdf   :  { %s4634_s0 = smov [#allocation20]   ;;  %s4635_s18 = smov [#allocation23]  }
  0xe0   :  { %s158_s16 = sshll.u32 %s4634_s0, 4  ;;  %s180_s13 = sshll.u32 %s4635_s18, 4  ;;  %s159_s16 = int_to_ptr.vmem [resolvable:$true] %s158_s16  ;;  %s181_s13 = int_to_ptr.vmem [resolvable:$true] %s180_s13 }
  0xe1   :  { %s4485_s11 = scalar_lea.hbm %s5103_s10, 32 }
  0xe2   :  { %p4486_p12 = scmp.ne.s32.totalorder %s5103_s10, %s4485_s11  ;;  %p4489_p13 = scmp.lt.u32.totalorder %s4485_s11, %s5103_s10 }
  0xe4   :  { %p4491_p0 = pnand %p4489_p13, %p4486_p12 }
  0xe6   :  { %4494 = shalt.err (!%p4491_p0)
}
  0xe7   :  { %s4495_s8 = scalar_lea.vmem %s159_s16, 32  ;;  %p4500_p2 = scmp.lt.s32.totalorder %s159_s16, %s159_s16 }
  0xe8   :  { %p4496_p1 = scmp.ne.s32.totalorder %s159_s16, %s4495_s8  ;;  %p4501_p3 = scmp.lt.s32.totalorder %s4495_s8, %s4495_s8 }
  0xea   :  { %p4502_p4 = por %p4501_p3, %p4500_p2 }
  0xec   :  { %p4503_p5 = pnand %p4502_p4, %p4496_p1 }
  0xee   :  { %4506 = shalt.err (!%p4503_p5)
}
  0xef   :  { %161 = dma.hbm_to_vmem [thread:$0]  %s5103_s10, 32, %s159_s16, [#allocation19]  }
  0xf0   :  { %s4507_s2 = scalar_lea.hbm %s5105_s12, 64 }
  0xf1   :  { %p4508_p6 = scmp.ne.s32.totalorder %s5105_s12, %s4507_s2  ;;  %p4511_p7 = scmp.lt.u32.totalorder %s4507_s2, %s5105_s12 }
  0xf3   :  { %p4513_p8 = pnand %p4511_p7, %p4508_p6 }
  0xf5   :  { %4516 = shalt.err (!%p4513_p8)
}
  0xf6   :  { %s4517_s25 = scalar_lea.vmem %s181_s13, 64  ;;  %p4522_p10 = scmp.lt.s32.totalorder %s181_s13, %s181_s13 }
  0xf7   :  { %p4518_p9 = scmp.ne.s32.totalorder %s181_s13, %s4517_s25  ;;  %p4523_p11 = scmp.lt.s32.totalorder %s4517_s25, %s4517_s25 }
  0xf9   :  { %p4524_p12 = por %p4523_p11, %p4522_p10 }
  0xfb   :  { %p4525_p13 = pnand %p4524_p12, %p4518_p9 }
  0xfd   :  { %4528 = shalt.err (!%p4525_p13)
}
  0xfe   :  { %183 = dma.hbm_to_vmem [thread:$0]  %s5105_s12, 64, %s181_s13, [#allocation22]  }
  0xff   :  { %s4636_s30 = smov [#allocation26]   ;;  %s4637_s16 = smov [#allocation27]  }
 0x100   :  { %s202_s0 = sshll.u32 %s4636_s30, 4  ;;  %s211_s18 = sshll.u32 %s4637_s16, 4  ;;  %s203_s0 = int_to_ptr.vmem [resolvable:$true] %s202_s0  ;;  %s212_s18 = int_to_ptr.vmem [resolvable:$true] %s211_s18 }
 0x101   :  { %s4529_s11 = scalar_lea.hbm %s5107_s14, 64 }
 0x102   :  { %p4530_p0 = scmp.ne.s32.totalorder %s5107_s14, %s4529_s11  ;;  %p4533_p1 = scmp.lt.u32.totalorder %s4529_s11, %s5107_s14 }
 0x104   :  { %p4535_p2 = pnand %p4533_p1, %p4530_p0 }
 0x106   :  { %4538 = shalt.err (!%p4535_p2)
}
 0x107   :  { %s4539_s12 = scalar_lea.vmem %s203_s0, 64  ;;  %p4544_p4 = scmp.lt.s32.totalorder %s203_s0, %s203_s0 }
 0x108   :  { %p4540_p3 = scmp.ne.s32.totalorder %s203_s0, %s4539_s12  ;;  %p4545_p5 = scmp.lt.s32.totalorder %s4539_s12, %s4539_s12 }
 0x10a   :  { %p4546_p6 = por %p4545_p5, %p4544_p4 }
 0x10c   :  { %p4547_p7 = pnand %p4546_p6, %p4540_p3 }
 0x10e   :  { %4550 = shalt.err (!%p4547_p7)
}
 0x10f   :  { %205 = dma.hbm_to_vmem [thread:$0]  %s5107_s14, 64, %s203_s0, [#allocation25]  }
 0x110   :  { %s4551_s28 = scalar_lea.hbm %s5108_s15, 8192 }
 0x111   :  { %p4552_p8 = scmp.ne.s32.totalorder %s5108_s15, %s4551_s28  ;;  %p4555_p9 = scmp.lt.u32.totalorder %s4551_s28, %s5108_s15 }
 0x113   :  { %p4557_p10 = pnand %p4555_p9, %p4552_p8 }
 0x115   :  { %4560 = shalt.err (!%p4557_p10)
}
 0x116   :  { %s4561_s26 = scalar_lea.vmem %s212_s18, 8192  ;;  %p4566_p12 = scmp.lt.s32.totalorder %s212_s18, %s212_s18 }
 0x117   :  { %p4562_p11 = scmp.ne.s32.totalorder %s212_s18, %s4561_s26  ;;  %p4567_p13 = scmp.lt.s32.totalorder %s4561_s26, %s4561_s26 }
 0x119   :  { %p4568_p0 = por %p4567_p13, %p4566_p12 }
 0x11b   :  { %p4569_p1 = pnand %p4568_p0, %p4562_p11 }
 0x11d   :  { %4572 = shalt.err (!%p4569_p1)
}
 0x11e   :  { %217 = dma.hbm_to_vmem [thread:$0]  %s5108_s15, 8192, %s212_s18, [#allocation28], %s4617_s23, %s4617_s23, %s4618_s24  }
 0x11f   :  { %4595 = dma.done.wait [#allocation4], 512  }
 0x120   :  { %4596 = vsyncadd [#allocation4], 4294966784 }
 0x121   :  { %4597 = dma.done.wait [#allocation7], 544  }
 0x122   :  { %4598 = vsyncadd [#allocation7], 4294966752 }
 0x123   :  { %4599 = dma.done.wait [#allocation10], 6192  }
 0x124   :  { %4600 = vsyncadd [#allocation10], 4294961104 }
 0x125   :  { %4601 = dma.done.wait [#allocation13], 6192  }
 0x126   :  { %4602 = vsyncadd [#allocation13], 4294961104 }
 0x127   :  { %4603 = dma.done.wait [#allocation16], 96  }
 0x128   :  { %4604 = vsyncadd [#allocation16], 4294967200 }
 0x129   :  { %4605 = dma.done.wait [#allocation19], 12320  }
 0x12a   :  { %4606 = vsyncadd [#allocation19], 4294954976 }
 0x12b   :  { %4607 = dma.done.wait [#allocation22], 16448  }
 0x12c   :  { %4608 = vsyncadd [#allocation22], 4294950848 }
 0x12d   :  { %4609 = dma.done.wait [#allocation25], 32832  }
 0x12e   :  { %4610 = vsyncadd [#allocation25], 4294934464 }
 0x12f   :  { %4611 = dma.done.wait [#allocation28], 8192  }
 0x130   :  { %4612 = vsyncadd [#allocation28], 4294959104  ;;  %vm277_vm0 = vcmask 261120   ;;  %v273_v1 = vld [vmem:[#allocation6] sm:$0xff]  ;;  %v274_v2 = vld [vmem:[#allocation6 + $0x8] sm:$0xff]  ;;  %v621_v63 = vlaneseq  ;;  %vm1115_vm1 = vcmask 1041409  }
 0x131   :  { %v275_v3 = vld [vmem:[#allocation6 + $0x10] sm:$0xff]  ;;  %v3408_v4 = vpack.c.bf16 %v274_v2, %v273_v1  ;;  %v276_v5 = vld [vmem:[#allocation6 + $0x18] sm:$0xff]  ;;  %v4960_v6 = vld [vmem:[#allocation3] sm:$0xff]  ;;  %s4639_s15 = smov [#allocation29]   ;;  %vm2866_vm10 = vcmask 1024  }
 0x132   :  { %v3412_v7 = vpack.c.bf16 %v276_v5, %v275_v3  ;;  %3146 = vmatprep.mubr.msk.f32.mxu1 %vm277_vm0, %v4960_v6  ;;  %v375_v8 = vld [vmem:[#allocation9] sm:$0xff]  ;;  %v376_v9 = vld [vmem:[#allocation9 + $0x8] sm:$0xff]  ;;  %v377_v11 = vld [vmem:[#allocation9 + $0x10] sm:$0xff]  ;;  %v4978_v0 = vshrl.u32 %v621_v63, 7  ;;  %s2874_s23 = sshll.u32 %s4639_s15, 4  ;;  %s2875_s23 = int_to_ptr.vmem [resolvable:$true] %s2874_s23 }
 0x133   :  { %3409 = vmatprep.subr.bf16.mxu1 %v3408_v4  ;;  %v3416_v10 = vpack.c.bf16 %v376_v9, %v375_v8  ;;  %v378_v12 = vld [vmem:[#allocation9 + $0x18] sm:$0xff]  ;;  %v4964_v13 = vld [vmem:[#allocation3 + $0x8] sm:$0xff]  ;;  %v4966_v14 = vld [vmem:[#allocation3 + $0x10] sm:$0xff]  ;;  %s4573_s24 = scalar_lea.vmem %s2875_s23, 32  ;;  %p4578_p3 = scmp.lt.s32.totalorder %s2875_s23, %s2875_s23 }
 0x134   :  { %3411 = vmatpush3.bf16.msra.mxu1 %v3408_v4  ;;  %v3420_v15 = vpack.c.bf16 %v378_v12, %v377_v11  ;;  %v379_v16 = vld [vmem:[#allocation9 + $0x20] sm:$0xff]  ;;  %v380_v17 = vld [vmem:[#allocation9 + $0x28] sm:$0xff]  ;;  %v4972_v18 = vld [vmem:[#allocation3 + $0x18] sm:$0xff]  ;;  %v4981_v2 = vsub.s32 0, %v4978_v0  ;;  %v4985_v4 = vsub.s32 1, %v4978_v0  ;;  %p4574_p2 = scmp.ne.s32.totalorder %s2875_s23, %s4573_s24  ;;  %p4579_p4 = scmp.lt.s32.totalorder %s4573_s24, %s4573_s24 }
 0x135   :  { %3413 = vmatprep.subr.bf16.mxu1 %v3412_v7  ;;  %v3424_v19 = vpack.c.bf16 %v380_v17, %v379_v16  ;;  %v381_v20 = vld [vmem:[#allocation9 + $0x30] sm:$0xff]  ;;  %v382_v21 = vld [vmem:[#allocation9 + $0x38] sm:$0xff]  ;;  %v383_v23 = vld [vmem:[#allocation9 + $0x40] sm:$0xff] }
 0x136   :  { %v3428_v22 = vpack.c.bf16 %v382_v21, %v381_v20  ;;  %v384_v24 = vld [vmem:[#allocation9 + $0x48] sm:$0xff]  ;;  %v385_v26 = vld [vmem:[#allocation9 + $0x50] sm:$0xff]  ;;  %v386_v27 = vld [vmem:[#allocation9 + $0x58] sm:$0xff]  ;;  %p4580_p5 = por %p4579_p4, %p4578_p3 }
 0x137   :  { %v3432_v25 = vpack.c.bf16 %v384_v24, %v383_v23  ;;  %v3436_v28 = vpack.c.bf16 %v386_v27, %v385_v26  ;;  %v387_v29 = vld [vmem:[#allocation9 + $0x60] sm:$0xff]  ;;  %v388_v30 = vld [vmem:[#allocation9 + $0x68] sm:$0xff]  ;;  %v389_v32 = vld [vmem:[#allocation9 + $0x70] sm:$0xff] }
 0x138   :  { %3415 = vmatpush3.bf16.msra.mxu1 %v3412_v7  ;;  %v3440_v31 = vpack.c.bf16 %v388_v30, %v387_v29  ;;  %v390_v33 = vld [vmem:[#allocation9 + $0x78] sm:$0xff]  ;;  %v487_v35 = vld [vmem:[#allocation12] sm:$0xff]  ;;  %v488_v36 = vld [vmem:[#allocation12 + $0x8] sm:$0xff]  ;;  %p4581_p6 = pnand %p4580_p5, %p4574_p2 }
 0x139   :  { %3417 = vmatprep.subr.bf16.mxu1 %v3416_v10  ;;  %v3444_v34 = vpack.c.bf16 %v390_v33, %v389_v32  ;;  %v489_v37 = vld [vmem:[#allocation12 + $0x10] sm:$0xff]  ;;  %v3448_v38 = vpack.c.bf16 %v488_v36, %v487_v35  ;;  %v490_v39 = vld [vmem:[#allocation12 + $0x18] sm:$0xff]  ;;  %v491_v41 = vld [vmem:[#allocation12 + $0x20] sm:$0xff] }
 0x13a   :  { %v3452_v40 = vpack.c.bf16 %v490_v39, %v489_v37  ;;  %v492_v42 = vld [vmem:[#allocation12 + $0x28] sm:$0xff]  ;;  %v493_v44 = vld [vmem:[#allocation12 + $0x30] sm:$0xff]  ;;  %v494_v45 = vld [vmem:[#allocation12 + $0x38] sm:$0xff] }
 0x13b   :  { %3147 = vmatmul.mubr.msk.f32.vlgmr.msra.gmra.mrb[0].mxu1 %vm277_vm0, %v4964_v13  ;;  %3449 = vmatprep.subr.bf16.mxu0 %v3448_v38  ;;  %v3456_v43 = vpack.c.bf16 %v492_v42, %v491_v41  ;;  %v3460_v46 = vpack.c.bf16 %v494_v45, %v493_v44  ;;  %v495_v47 = vld [vmem:[#allocation12 + $0x40] sm:$0xff]  ;;  %v496_v48 = vld [vmem:[#allocation12 + $0x48] sm:$0xff]  ;;  %v497_v50 = vld [vmem:[#allocation12 + $0x50] sm:$0xff] }
 0x13c   :  { %3149 = vmatprep.mubr.msk.f32.mxu1 %vm277_vm0, %v4966_v14  ;;  %3419 = vmatpush3.bf16.msra.mxu1 %v3416_v10  ;;  %v3464_v49 = vpack.c.bf16 %v496_v48, %v495_v47  ;;  %v498_v51 = vld [vmem:[#allocation12 + $0x58] sm:$0xff]  ;;  %v499_v53 = vld [vmem:[#allocation12 + $0x60] sm:$0xff]  ;;  %v500_v54 = vld [vmem:[#allocation12 + $0x68] sm:$0xff] }
 0x13d   :  { %3421 = vmatprep.subr.bf16.mxu1 %v3420_v15  ;;  %3451 = vmatpush3.bf16.msra.mxu0 %v3448_v38  ;;  %v3468_v52 = vpack.c.bf16 %v498_v51, %v497_v50  ;;  %v3472_v55 = vpack.c.bf16 %v500_v54, %v499_v53  ;;  %v501_v60 = vld [vmem:[#allocation12 + $0x70] sm:$0xff]  ;;  %v502_v61 = vld [vmem:[#allocation12 + $0x78] sm:$0xff]  ;;  %v804_v24 = vld [vmem:[#allocation9 + $0x88] sm:$0xff] }
 0x13e   :  { %3453 = vmatprep.subr.bf16.mxu0 %v3452_v40  ;;  %v3476_v62 = vpack.c.bf16 %v502_v61, %v501_v60  ;;  %v272_v1 = vld [vmem:[#allocation8] sm:$0x3]  ;;  %v2895_v7 = vld [vmem:[#allocation11] ss:$0 sm:$0xff]  ;;  %v808_v30 = vld [vmem:[#allocation9 + $0xa8] sm:$0xff] }
 0x13f   :  { %3150 = vmatmul.mubr.msk.f32.gmra.mrb[2].mxu1 %vm277_vm0, %v4972_v18  ;;  %v624_v3 = vrot.slane %v272_v1, %v4981_v2  ;;  %v643_v5 = vrot.slane %v272_v1, %v4985_v4  ;;  %v803_v23 = vld [vmem:[#allocation9 + $0x80] sm:$0xff]  ;;  %v806_v27 = vld [vmem:[#allocation9 + $0x98] sm:$0xff]  ;;  %v809_v32 = vld [vmem:[#allocation9 + $0xb0] sm:$0xff] }
 0x140   :  { %3423 = vmatpush3.bf16.msra.mxu1 %v3420_v15  ;;  %v3488_v26 = vpack.c.bf16 %v804_v24, %v803_v23  ;;  %v807_v29 = vld [vmem:[#allocation9 + $0xa0] sm:$0xff]  ;;  %v810_v33 = vld [vmem:[#allocation9 + $0xb8] sm:$0xff]  ;;  %v812_v36 = vld [vmem:[#allocation9 + $0xc8] sm:$0xff] }
 0x141   :  { %3425 = vmatprep.subr.bf16.mxu1 %v3424_v19  ;;  %3455 = vmatpush3.bf16.msra.mxu0 %v3452_v40  ;;  %v811_v35 = vld [vmem:[#allocation9 + $0xc0] sm:$0xff]  ;;  %v813_v38 = vld [vmem:[#allocation9 + $0xd0] sm:$0xff]  ;;  %v814_v39 = vld [vmem:[#allocation9 + $0xd8] sm:$0xff] }
 0x142   :  { %3457 = vmatprep.subr.bf16.mxu0 %v3456_v43  ;;  %634 = vbcast.lane.b32.xlu1 %v624_v3, 272  ;;  %v3504_v37 = vpack.c.bf16 %v812_v36, %v811_v35  ;;  %v3508_v40 = vpack.c.bf16 %v814_v39, %v813_v38  ;;  %v815_v41 = vld [vmem:[#allocation9 + $0xe0] sm:$0xff]  ;;  %v816_v42 = vld [vmem:[#allocation9 + $0xe8] sm:$0xff]  ;;  %v817_v44 = vld [vmem:[#allocation9 + $0xf0] sm:$0xff] }
 0x143   :  { %626 = vbcast.lane.b32.xlu0 %v624_v3, 256  ;;  %v818_v45 = vld [vmem:[#allocation9 + $0xf8] sm:$0xff] }
 0x144   :  { %3427 = vmatpush3.bf16.msra.mxu1 %v3424_v19 }
 0x145   :  { %3429 = vmatprep.subr.bf16.mxu1 %v3428_v22  ;;  %3459 = vmatpush3.bf16.msra.mxu0 %v3456_v43  ;;  %v3512_v43 = vpack.c.bf16 %v816_v42, %v815_v41 }
 0x146   :  { %3461 = vmatprep.subr.bf16.mxu0 %v3460_v46  ;;  %638 = vbcast.lane.b32.xlu1 %v624_v3, 280 }
 0x147   :  { %630 = vbcast.lane.b32.xlu0 %v624_v3, 264 }
 0x148   :  { %3431 = vmatpush3.bf16.msra.mxu1 %v3428_v22 }
 0x149   :  { %3433 = vmatprep.subr.bf16.mxu1 %v3432_v25  ;;  %3463 = vmatpush3.bf16.msra.mxu0 %v3460_v46  ;;  %v3516_v46 = vpack.c.bf16 %v818_v45, %v817_v44 }
 0x14a   :  { %3465 = vmatprep.subr.bf16.mxu0 %v3464_v49  ;;  %649 = vbcast.lane.b32.xlu1 %v643_v5, 264 }
 0x14b   :  { %645 = vbcast.lane.b32.xlu0 %v643_v5, 256 }
 0x14c   :  { %3435 = vmatpush3.bf16.msra.mxu1 %v3432_v25  ;;  %v805_v25 = vld [vmem:[#allocation9 + $0x90] sm:$0xff] }
 0x14d   :  { %3437 = vmatprep.subr.bf16.mxu1 %v3436_v28  ;;  %3467 = vmatpush3.bf16.msra.mxu0 %v3464_v49  ;;  %v2896_v49 = vld [vmem:[#allocation14] ss:$0 sm:$0xff] }
 0x14e   :  { %3469 = vmatprep.subr.bf16.mxu0 %v3468_v52  ;;  %657 = vbcast.lane.b32.xlu1 %v643_v5, 280 }
 0x14f   :  { %653 = vbcast.lane.b32.xlu0 %v643_v5, 272 }
 0x150   :  { %3439 = vmatpush3.bf16.msra.mxu1 %v3436_v28  ;;  %v3492_v28 = vpack.c.bf16 %v806_v27, %v805_v25 }
 0x151   :  { %3441 = vmatprep.subr.bf16.mxu1 %v3440_v31  ;;  %3471 = vmatpush3.bf16.msra.mxu0 %v3468_v52 }
 0x152   :  { %3473 = vmatprep.subr.bf16.mxu0 %v3472_v55 }
 0x154   :  { %3443 = vmatpush3.bf16.msra.mxu1 %v3440_v31  ;;  %v3496_v31 = vpack.c.bf16 %v808_v30, %v807_v29 }
 0x155   :  { %3445 = vmatprep.subr.bf16.mxu1 %v3444_v34  ;;  %3475 = vmatpush3.bf16.msra.mxu0 %v3472_v55  ;;  %v2897_v55 = vld [vmem:[#allocation15] ss:$0 sm:$0xff] }
 0x156   :  { %3477 = vmatprep.subr.bf16.mxu0 %v3476_v62 }
 0x158   :  { %3447 = vmatpush3.bf16.msra.mxu1 %v3444_v34  ;;  %v3500_v34 = vpack.c.bf16 %v810_v33, %v809_v32 }
 0x159   :  { %3479 = vmatpush3.bf16.msra.mxu0 %v3476_v62 }
 0x15a   :  { %3489 = vmatprep.subr.bf16.mxu0 %v3488_v26 }
 0x1b4   :  { %v4988_v47 = vpop.permute.xlu1 %634 }
 0x1b5   :  { %v4990_v48 = vpop.permute.xlu0 %626 }
 0x1b8   :  { %v4992_v50 = vpop.permute.xlu1 %638 }
 0x1b9   :  { %v4994_v51 = vpop.permute.xlu0 %630 }
 0x1bc   :  { %v4996_v61 = vpop.permute.xlu1 %649 }
 0x1bd   :  { %v4998_v3 = vpop.permute.xlu0 %645 }
 0x20e   :  { %v3148_v56 = vpop.f32.mrb[0].mxu1 }
 0x20f   :  { %v356_v57 = vpop.f32.mrb[1].mxu1 }
 0x210   :  { %3184 = vmatprep.mubr.f32.mxu1 %v356_v57 }
 0x211   :  { %3185 = vmatmul.mubr.f32.vlgmr.msra.gmra.mrb[4].mxu1 %v3148_v56 }
 0x212   :  { %v3151_v58 = vpop.f32.mrb[2].mxu1 }
 0x213   :  { %v366_v59 = vpop.f32.mrb[3].mxu1 }
 0x214   :  { %3187 = vmatprep.mubr.f32.mxu1 %v366_v59 }
 0x215   :  { %3188 = vmatmul.mubr.f32.gmra.mrb[6].mxu1 %v3151_v58  ;;  %v2898_v58 = vld [vmem:[#allocation17] ss:$0 sm:$0xff] }
 0x216   :  { %3236 = vmatprep.mubr.msk.f32.mxu1 %vm277_vm0, %v4960_v6 }
 0x2e4   :  { %v3186_v8 = vpop.f32.mrb[4].mxu1 }
 0x2e5   :  { %v470_v9 = vadd.f32 %v3186_v8, %v2895_v7  ;;  %v464_v10 = vpop.f32.mrb[5].mxu1 }
 0x2e6   :  { %v465_v11 = vadd.f32 %v2895_v7, %v464_v10 }
 0x2e7   :  { %v484_v16 = vmax.f32 %v470_v9, 0.0 }
 0x2e8   :  { %v3189_v12 = vpop.f32.mrb[6].mxu1  ;;  %v483_v15 = vmax.f32 %v465_v11, 0.0 }
 0x2e9   :  { %v480_v17 = vadd.f32 %v3189_v12, %v2895_v7  ;;  %v474_v19 = vpop.f32.mrb[7].mxu1 }
 0x2ea   :  { %v475_v20 = vadd.f32 %v2895_v7, %v474_v19  ;;  %3222 = vmatprep.mubr.f32.mxu0 %v483_v15 }
 0x2eb   :  { %3223 = vmatmul.mubr.f32.vlgmr.msra.gmra.mrb[0].mxu0 %v484_v16  ;;  %v486_v22 = vmax.f32 %v480_v17, 0.0  ;;  %v5000_v16 = vpop.permute.xlu1 %657 }
 0x2ec   :  { %v485_v21 = vmax.f32 %v475_v20, 0.0  ;;  %3491 = vmatpush3.bf16.msra.mxu0 %v3488_v26  ;;  %v5002_v20 = vpop.permute.xlu0 %653 }
 0x2ed   :  { %3493 = vmatprep.subr.bf16.mxu0 %v3492_v28 }
 0x2ee   :  { %3225 = vmatprep.mubr.f32.mxu0 %v485_v21 }
 0x2ef   :  { %3226 = vmatmul.mubr.f32.gmra.mrb[2].mxu0 %v486_v22 }
 0x2f0   :  { %3495 = vmatpush3.bf16.msra.mxu0 %v3492_v28 }
 0x2f1   :  { %3497 = vmatprep.subr.bf16.mxu0 %v3496_v31 }
 0x2f4   :  { %3499 = vmatpush3.bf16.msra.mxu0 %v3496_v31 }
 0x2f5   :  { %3501 = vmatprep.subr.bf16.mxu0 %v3500_v34 }
 0x2f8   :  { %3503 = vmatpush3.bf16.msra.mxu0 %v3500_v34 }
 0x2f9   :  { %3505 = vmatprep.subr.bf16.mxu0 %v3504_v37 }
 0x2fc   :  { %3507 = vmatpush3.bf16.msra.mxu0 %v3504_v37 }
 0x2fd   :  { %3509 = vmatprep.subr.bf16.mxu0 %v3508_v40 }
 0x300   :  { %3511 = vmatpush3.bf16.msra.mxu0 %v3508_v40 }
 0x301   :  { %3513 = vmatprep.subr.bf16.mxu0 %v3512_v43 }
 0x304   :  { %3515 = vmatpush3.bf16.msra.mxu0 %v3512_v43 }
 0x305   :  { %3517 = vmatprep.subr.bf16.mxu0 %v3516_v46 }
 0x308   :  { %3519 = vmatpush3.bf16.msra.mxu0 %v3516_v46 }
 0x3be   :  { %v3224_v52 = vpop.f32.mrb[0].mxu0 }
 0x3bf   :  { %v582_v53 = vadd.f32 %v3224_v52, %v2896_v49  ;;  %v576_v54 = vpop.f32.mrb[1].mxu0 }
 0x3c0   :  { %v577_v56 = vadd.f32 %v2896_v49, %v576_v54  ;;  %v917_v54 = vld [vmem:[#allocation12 + $0x80] sm:$0xff] }
 0x3c1   :  { %v596_v57 = vmax.f32 %v582_v53, 0.0 }
 0x3c2   :  { %v595_v59 = vmax.f32 %v577_v56, 0.0  ;;  %v3227_v60 = vpop.f32.mrb[2].mxu0  ;;  %v919_v56 = vld [vmem:[#allocation12 + $0x90] sm:$0xff] }
 0x3c3   :  { %v607_v62 = vmul.f32 %v2897_v55, %v596_v57  ;;  %v592_v63 = vadd.f32 %v3227_v60, %v2896_v49  ;;  %v586_v1 = vpop.f32.mrb[3].mxu0  ;;  %v921_v60 = vld [vmem:[#allocation12 + $0xa0] sm:$0xff] }
 0x3c4   :  { %v606_v5 = vmul.f32 %v2897_v55, %v595_v59  ;;  %v587_v7 = vadd.f32 %v2896_v49, %v586_v1  ;;  %v923_v1 = vld [vmem:[#allocation12 + $0xb0] sm:$0xff] }
 0x3c5   :  { %v618_v8 = vadd.f32 %v2898_v58, %v607_v62  ;;  %v598_v9 = vmax.f32 %v592_v63, 0.0  ;;  %v922_v62 = vld [vmem:[#allocation12 + $0xa8] sm:$0xff] }
 0x3c6   :  { %v617_v10 = vadd.f32 %v2898_v58, %v606_v5  ;;  %v597_v11 = vmax.f32 %v587_v7, 0.0  ;;  %v3528_v63 = vpack.c.bf16 %v922_v62, %v921_v60  ;;  %v924_v5 = vld [vmem:[#allocation12 + $0xb8] sm:$0xff]  ;;  %v1092_v60 = vld [vmem:[#allocation18 + $0x158] sm:$0xff] }
 0x3c7   :  { %v609_v12 = vmul.f32 %v2897_v55, %v598_v9  ;;  %v660_v21 = vadd.f32 %v4994_v51, %v618_v8  ;;  %v664_v25 = vadd.f32 %v4996_v61, %v618_v8  ;;  %v3532_v7 = vpack.c.bf16 %v924_v5, %v923_v1  ;;  %v926_v9 = vld [vmem:[#allocation12 + $0xc8] sm:$0xff]  ;;  %v1094_v5 = vld [vmem:[#allocation18 + $0x168] sm:$0xff] }
 0x3c8   :  { %v608_v15 = vmul.f32 %v2897_v55, %v597_v11  ;;  %v3480_v17 = vpack.c.bf16 %v618_v8, %v617_v10  ;;  %v659_v23 = vadd.f32 %v4990_v48, %v617_v10  ;;  %v663_v28 = vadd.f32 %v4998_v3, %v617_v10  ;;  %v918_v55 = vld [vmem:[#allocation12 + $0x88] sm:$0xff]  ;;  %v925_v8 = vld [vmem:[#allocation12 + $0xc0] sm:$0xff]  ;;  %v927_v11 = vld [vmem:[#allocation12 + $0xd0] sm:$0xff] }
 0x3c9   :  { %v620_v19 = vadd.f32 %v2898_v58, %v609_v12  ;;  %v3520_v57 = vpack.c.bf16 %v918_v55, %v917_v54  ;;  %v3536_v10 = vpack.c.bf16 %v926_v9, %v925_v8  ;;  %v928_v12 = vld [vmem:[#allocation12 + $0xd8] sm:$0xff]  ;;  %v1088_v54 = vld [vmem:[#allocation18 + $0x138] sm:$0xff]  ;;  %v1093_v9 = vld [vmem:[#allocation18 + $0x160] sm:$0xff] }
 0x3ca   :  { %v619_v22 = vadd.f32 %v2898_v58, %v608_v15  ;;  %3481 = vmatprep.subr.bf16.mxu1 %v3480_v17  ;;  %v920_v58 = vld [vmem:[#allocation12 + $0x98] sm:$0xff]  ;;  %v3540_v15 = vpack.c.bf16 %v928_v12, %v927_v11 }
 0x3cb   :  { %v662_v24 = vadd.f32 %v4992_v50, %v620_v19  ;;  %v666_v26 = vadd.f32 %v5000_v16, %v620_v19  ;;  %3483 = vmatpush3.bf16.msra.mxu1 %v3480_v17  ;;  %v3524_v59 = vpack.c.bf16 %v920_v58, %v919_v56  ;;  %v929_v17 = vld [vmem:[#allocation12 + $0xe0] sm:$0xff]  ;;  %v1085_v56 = vld [vmem:[#allocation18 + $0x120] sm:$0xff]  ;;  %v1098_v12 = vld [vmem:[#allocation18 + $0x188] sm:$0xff] }
 0x3cc   :  { %v661_v27 = vadd.f32 %v4988_v47, %v619_v22  ;;  %v665_v29 = vadd.f32 %v5002_v20, %v619_v22  ;;  %v3484_v30 = vpack.c.bf16 %v620_v19, %v619_v22  ;;  %v930_v19 = vld [vmem:[#allocation12 + $0xe8] sm:$0xff] }
 0x3cd   :  { %v668_v31 = vmax.f32 %v660_v21, %v662_v24  ;;  %v677_v32 = vmax.f32 %v664_v25, %v666_v26  ;;  %v3544_v21 = vpack.c.bf16 %v930_v19, %v929_v17  ;;  %v931_v26 = vld [vmem:[#allocation12 + $0xf0] sm:$0xff] }
 0x3ce   :  { %v667_v33 = vmax.f32 %v659_v23, %v661_v27  ;;  %v676_v34 = vmax.f32 %v663_v28, %v665_v29  ;;  %3485 = vmatprep.subr.bf16.mxu1 %v3484_v30  ;;  %v932_v27 = vld [vmem:[#allocation12 + $0xf8] sm:$0xff]  ;;  %v1097_v19 = vld [vmem:[#allocation18 + $0x180] sm:$0xff] }
 0x3cf   :  { %3487 = vmatpush3.bf16.msra.mxu1 %v3484_v30  ;;  %v3548_v28 = vpack.c.bf16 %v932_v27, %v931_v26  ;;  %v2903_v29 = vld [vmem:[#allocation11 + $0x1] ss:$0 sm:$0xff]  ;;  %v1101_v26 = vld [vmem:[#allocation18 + $0x1a0] sm:$0xff] }
 0x3d0   :  { %v669_v35 = vmax.f32 %v667_v33, %v668_v31  ;;  %v678_v36 = vmax.f32 %v676_v34, %v677_v32  ;;  %3521 = vmatprep.subr.bf16.mxu1 %v3520_v57  ;;  %v1103_v27 = vld [vmem:[#allocation18 + $0x1b0] sm:$0xff] }
 0x3d2   :  { %v679_v37 = vrot.slane %v678_v36, 4  ;;  %3237 = vmatmul.mubr.msk.f32.vlgmr.msra.gmra.mrb[8].mxu1 %vm277_vm0, %v4964_v13  ;;  %v670_v38 = vrot.slane %v669_v35, 4 }
 0x3d3   :  { %3239 = vmatprep.mubr.msk.f32.mxu1 %vm277_vm0, %v4966_v14  ;;  %3523 = vmatpush3.bf16.msra.mxu1 %v3520_v57  ;;  %v1087_v57 = vld [vmem:[#allocation18 + $0x130] sm:$0xff] }
 0x3d4   :  { %v680_v39 = vmax.f32 %v678_v36, %v679_v37  ;;  %v671_v40 = vmax.f32 %v669_v35, %v670_v38  ;;  %3525 = vmatprep.subr.bf16.mxu1 %v3524_v59  ;;  %v3558_v58 = vpack.c.bf16 %v1087_v57, %v1085_v56  ;;  %v2906_v57 = vld [vmem:[#allocation17 + $0x1] ss:$0 sm:$0xff] }
 0x3d6   :  { %v681_v41 = vrot.slane %v680_v39, 2  ;;  %3240 = vmatmul.mubr.msk.f32.gmra.mrb[10].mxu1 %vm277_vm0, %v4972_v18  ;;  %v672_v42 = vrot.slane %v671_v40, 2 }
 0x3d7   :  { %3527 = vmatpush3.bf16.msra.mxu1 %v3524_v59  ;;  %v1090_v59 = vld [vmem:[#allocation18 + $0x148] sm:$0xff] }
 0x3d8   :  { %v682_v43 = vmax.f32 %v680_v39, %v681_v41  ;;  %v673_v44 = vmax.f32 %v671_v40, %v672_v42  ;;  %3529 = vmatprep.subr.bf16.mxu1 %v3528_v63  ;;  %v1082_v42 = vld [vmem:[#allocation18 + $0x108] sm:$0xff]  ;;  %v3560_v62 = vpack.c.bf16 %v1092_v60, %v1090_v59 }
 0x3da   :  { %v674_v45 = vrot.slane %v673_v44, 1  ;;  %v683_v46 = vrot.slane %v682_v43, 1 }
 0x3db   :  { %3531 = vmatpush3.bf16.msra.mxu1 %v3528_v63  ;;  %v1091_v63 = vld [vmem:[#allocation18 + $0x150] sm:$0xff] }
 0x3dc   :  { %v675_v49 = vmax.f32 %v673_v44, %v674_v45  ;;  %v684_v52 = vmax.f32 %v682_v43, %v683_v46  ;;  %3533 = vmatprep.subr.bf16.mxu1 %v3532_v7  ;;  %v1084_v43 = vld [vmem:[#allocation18 + $0x118] sm:$0xff]  ;;  %v1081_v45 = vld [vmem:[#allocation18 + $0x100] sm:$0xff]  ;;  %v1083_v46 = vld [vmem:[#allocation18 + $0x110] sm:$0xff] }
 0x3dd   :  { %v3552_v44 = vpack.c.bf16 %v1084_v43, %v1082_v42  ;;  %v688_v42 = vld [vmem:[#allocation18 + $0x18] sm:$0xff] }
 0x3de   :  { %v5019_v53 = vsel %vm1115_vm1, %v684_v52, %v675_v49  ;;  %v3554_v49 = vpack.c.bf16 %v1083_v46, %v1081_v45  ;;  %v1086_v52 = vld [vmem:[#allocation18 + $0x128] sm:$0xff]  ;;  %v2904_v45 = vld [vmem:[#allocation14 + $0x1] ss:$0 sm:$0xff] }
 0x3df   :  { %3535 = vmatpush3.bf16.msra.mxu1 %v3532_v7  ;;  %3553 = vmatprep.subr.bf16.mxu0 %v3552_v44  ;;  %v3556_v55 = vpack.c.bf16 %v1088_v54, %v1086_v52  ;;  %v1096_v7 = vld [vmem:[#allocation18 + $0x178] sm:$0xff] }
 0x3e0   :  { %3537 = vmatprep.subr.bf16.mxu1 %v3536_v10  ;;  %v3564_v8 = vpack.c.bf16 %v1096_v7, %v1094_v5  ;;  %v2905_v54 = vld [vmem:[#allocation15 + $0x1] ss:$0 sm:$0xff] }
 0x3e3   :  { %3539 = vmatpush3.bf16.msra.mxu1 %v3536_v10  ;;  %v1095_v10 = vld [vmem:[#allocation18 + $0x170] sm:$0xff] }
 0x3e4   :  { %3541 = vmatprep.subr.bf16.mxu1 %v3540_v15  ;;  %v3566_v11 = vpack.c.bf16 %v1095_v10, %v1093_v9 }
 0x3e7   :  { %3543 = vmatpush3.bf16.msra.mxu1 %v3540_v15  ;;  %v1100_v15 = vld [vmem:[#allocation18 + $0x198] sm:$0xff] }
 0x3e8   :  { %3545 = vmatprep.subr.bf16.mxu1 %v3544_v21  ;;  %v3568_v17 = vpack.c.bf16 %v1100_v15, %v1098_v12  ;;  %v1351_v12 = vld [vmem:[#allocation9 + $0x108] sm:$0xff] }
 0x3eb   :  { %3547 = vmatpush3.bf16.msra.mxu1 %v3544_v21  ;;  %v1099_v21 = vld [vmem:[#allocation18 + $0x190] sm:$0xff] }
 0x3ec   :  { %3549 = vmatprep.subr.bf16.mxu1 %v3548_v28 }
 0x3ef   :  { %3551 = vmatpush3.bf16.msra.mxu1 %v3548_v28  ;;  %v3574_v28 = vpack.c.bf16 %v1103_v27, %v1101_v26 }
 0x4a5   :  { %v3238_v22 = vpop.f32.mrb[8].mxu1 }
 0x4a6   :  { %v783_v23 = vpop.f32.mrb[9].mxu1 }
 0x4a7   :  { %3274 = vmatprep.mubr.f32.mxu0 %v783_v23  ;;  %v1102_v23 = vld [vmem:[#allocation18 + $0x1a8] sm:$0xff] }
 0x4a8   :  { %3275 = vmatmul.mubr.f32.vlgmr.msra.gmra.mrb[4].mxu0 %v3238_v22  ;;  %v3570_v22 = vpack.c.bf16 %v1099_v21, %v1097_v19 }
 0x4a9   :  { %v3241_v24 = vpop.f32.mrb[10].mxu1  ;;  %3555 = vmatpush1.bf16.msra.mxu0 %v3554_v49 }
 0x4aa   :  { %v793_v25 = vpop.f32.mrb[11].mxu1  ;;  %3557 = vmatprep.subr.bf16.mxu0 %v3556_v55 }
 0x4ab   :  { %3277 = vmatprep.mubr.f32.mxu0 %v793_v25 }
 0x4ac   :  { %3278 = vmatmul.mubr.f32.gmra.mrb[6].mxu0 %v3241_v24  ;;  %v1104_v24 = vld [vmem:[#allocation18 + $0x1b8] sm:$0xff] }
 0x4ad   :  { %3559 = vmatpush1.bf16.msra.mxu0 %v3558_v58  ;;  %v3572_v25 = vpack.c.bf16 %v1104_v24, %v1102_v23 }
 0x4ae   :  { %3561 = vmatprep.subr.bf16.mxu0 %v3560_v62 }
 0x57b   :  { %v3276_v30 = vpop.f32.mrb[4].mxu0 }
 0x57c   :  { %v899_v31 = vadd.f32 %v3276_v30, %v2903_v29  ;;  %v893_v32 = vpop.f32.mrb[5].mxu0  ;;  %v1108_v30 = vld [vmem:[#allocation18 + $0x1d8] sm:$0xff] }
 0x57d   :  { %v894_v33 = vadd.f32 %v2903_v29, %v893_v32  ;;  %v1105_v32 = vld [vmem:[#allocation18 + $0x1c0] sm:$0xff] }
 0x57e   :  { %v913_v36 = vmax.f32 %v899_v31, 0.0 }
 0x57f   :  { %v912_v34 = vmax.f32 %v894_v33, 0.0  ;;  %v3279_v35 = vpop.f32.mrb[6].mxu0  ;;  %v1107_v33 = vld [vmem:[#allocation18 + $0x1d0] sm:$0xff] }
 0x580   :  { %v909_v37 = vadd.f32 %v3279_v35, %v2903_v29  ;;  %v903_v38 = vpop.f32.mrb[7].mxu0  ;;  %v1110_v35 = vld [vmem:[#allocation18 + $0x1e8] sm:$0xff] }
 0x581   :  { %v904_v39 = vadd.f32 %v2903_v29, %v903_v38  ;;  %3312 = vmatprep.mubr.f32.mxu1 %v912_v34  ;;  %v1106_v29 = vld [vmem:[#allocation18 + $0x1c8] sm:$0xff]  ;;  %v3578_v34 = vpack.c.bf16 %v1107_v33, %v1105_v32 }
 0x582   :  { %3313 = vmatmul.mubr.f32.vlgmr.msra.gmra.mrb[12].mxu1 %v913_v36  ;;  %v915_v41 = vmax.f32 %v909_v37, 0.0  ;;  %v3576_v31 = vpack.c.bf16 %v1108_v30, %v1106_v29  ;;  %v1112_v36 = vld [vmem:[#allocation18 + $0x1f8] sm:$0xff]  ;;  %v1109_v37 = vld [vmem:[#allocation18 + $0x1e0] sm:$0xff] }
 0x583   :  { %v914_v40 = vmax.f32 %v904_v39, 0.0  ;;  %v3580_v38 = vpack.c.bf16 %v1112_v36, %v1110_v35  ;;  %v1111_v39 = vld [vmem:[#allocation18 + $0x1f0] sm:$0xff]  ;;  %v1353_v35 = vld [vmem:[#allocation9 + $0x118] sm:$0xff] }
 0x584   :  { %v3582_v43 = vpack.c.bf16 %v1111_v39, %v1109_v37 }
 0x585   :  { %3315 = vmatprep.mubr.f32.mxu1 %v914_v40  ;;  %v4638_v40 = vmov 0.0  }
 0x586   :  { %3316 = vmatmul.mubr.f32.gmra.mrb[14].mxu1 %v915_v41  ;;  %1182 = vmatprep.mubr.f32.mxu0 %v4638_v40  ;;  %v686_v41 = vld [vmem:[#allocation18 + $0x8] sm:$0xff] }
 0x587   :  { %3326 = vmatprep.mubr.msk.f32.mxu1 %vm277_vm0, %v4960_v6  ;;  %v1089_v6 = vld [vmem:[#allocation18 + $0x140] sm:$0xff]  ;;  %v3584_v44 = vpack.c.bf16 %v688_v42, %v686_v41  ;;  %v1354_v42 = vld [vmem:[#allocation9 + $0x120] sm:$0xff] }
 0x588   :  { %v3562_v1 = vpack.c.bf16 %v1091_v63, %v1089_v6 }
 0x58a   :  { %3563 = vmatpush1.bf16.msra.mxu0 %v3562_v1 }
 0x58b   :  { %3565 = vmatprep.subr.bf16.mxu0 %v3564_v8 }
 0x58e   :  { %3567 = vmatpush1.bf16.msra.mxu0 %v3566_v11  ;;  %v1350_v11 = vld [vmem:[#allocation9 + $0x100] sm:$0xff] }
 0x58f   :  { %3569 = vmatprep.subr.bf16.mxu0 %v3568_v17  ;;  %v3624_v23 = vpack.c.bf16 %v1351_v12, %v1350_v11  ;;  %v691_v12 = vld [vmem:[#allocation18 + $0x30] sm:$0xff] }
 0x592   :  { %3571 = vmatpush1.bf16.msra.mxu0 %v3570_v22 }
 0x593   :  { %3573 = vmatprep.subr.bf16.mxu0 %v3572_v25 }
 0x596   :  { %3575 = vmatpush1.bf16.msra.mxu0 %v3574_v28 }
 0x597   :  { %3577 = vmatprep.subr.bf16.mxu0 %v3576_v31 }
 0x59a   :  { %3579 = vmatpush1.bf16.msra.mxu0 %v3578_v34  ;;  %v1352_v34 = vld [vmem:[#allocation9 + $0x110] sm:$0xff] }
 0x59b   :  { %3581 = vmatprep.subr.bf16.mxu0 %v3580_v38  ;;  %v3628_v41 = vpack.c.bf16 %v1353_v35, %v1352_v34  ;;  %v697_v34 = vld [vmem:[#allocation18 + $0x60] sm:$0xff] }
 0x59e   :  { %3583 = vmatpush1.bf16.msra.mxu0 %v3582_v43  ;;  %v1355_v43 = vld [vmem:[#allocation9 + $0x128] sm:$0xff] }
 0x59f   :  { %3585 = vmatprep.subr.bf16.mxu0 %v3584_v44 }
 0x655   :  { %v3314_v46 = vpop.f32.mrb[12].mxu1 }
 0x656   :  { %v1013_v49 = vadd.f32 %v3314_v46, %v2904_v45  ;;  %v1007_v52 = vpop.f32.mrb[13].mxu1 }
 0x657   :  { %v1008_v55 = vadd.f32 %v2904_v45, %v1007_v52  ;;  %v3632_v52 = vpack.c.bf16 %v1355_v43, %v1354_v42  ;;  %v704_v42 = vld [vmem:[#allocation18 + $0x98] sm:$0xff] }
 0x658   :  { %v1027_v56 = vmax.f32 %v1013_v49, 0.0 }
 0x659   :  { %v1026_v58 = vmax.f32 %v1008_v55, 0.0  ;;  %v3317_v59 = vpop.f32.mrb[14].mxu1  ;;  %v1357_v55 = vld [vmem:[#allocation9 + $0x138] sm:$0xff] }
 0x65a   :  { %v1039_v60 = vmul.f32 %v2905_v54, %v1027_v56  ;;  %v1023_v62 = vadd.f32 %v3317_v59, %v2904_v45  ;;  %v1017_v6 = vpop.f32.mrb[15].mxu1 }
 0x65b   :  { %v1038_v63 = vmul.f32 %v2905_v54, %v1026_v58  ;;  %v1018_v1 = vadd.f32 %v2904_v45, %v1017_v6 }
 0x65c   :  { %v1051_v5 = vadd.f32 %v2906_v57, %v1039_v60  ;;  %v1029_v7 = vmax.f32 %v1023_v62, 0.0  ;;  %v685_v60 = vld [vmem:[#allocation18] sm:$0xff]  ;;  %v687_v62 = vld [vmem:[#allocation18 + $0x10] sm:$0xff] }
 0x65d   :  { %v1050_v8 = vadd.f32 %v2906_v57, %v1038_v63  ;;  %v1028_v9 = vmax.f32 %v1018_v1, 0.0  ;;  %v692_v1 = vld [vmem:[#allocation18 + $0x38] sm:$0xff] }
 0x65e   :  { %v1041_v10 = vmul.f32 %v2905_v54, %v1029_v7  ;;  %v1055_v21 = vadd.f32 %v1051_v5, %v4994_v51  ;;  %v1059_v24 = vadd.f32 %v1051_v5, %v4996_v61  ;;  %v1359_v7 = vld [vmem:[#allocation9 + $0x148] sm:$0xff] }
 0x65f   :  { %v1040_v15 = vmul.f32 %v2905_v54, %v1028_v9  ;;  %v3616_v17 = vpack.c.bf16 %v1051_v5, %v1050_v8  ;;  %v1054_v25 = vadd.f32 %v1050_v8, %v4990_v48  ;;  %v1058_v28 = vadd.f32 %v1050_v8, %v4998_v3  ;;  %v1356_v54 = vld [vmem:[#allocation9 + $0x130] sm:$0xff]  ;;  %v1358_v5 = vld [vmem:[#allocation9 + $0x140] sm:$0xff] }
 0x660   :  { %v1053_v19 = vadd.f32 %v2906_v57, %v1041_v10  ;;  %v3586_v10 = vpack.c.bf16 %v687_v62, %v685_v60 }
 0x661   :  { %v1052_v22 = vadd.f32 %v2906_v57, %v1040_v15  ;;  %3617 = vmatprep.subr.bf16.mxu1 %v3616_v17  ;;  %v3640_v15 = vpack.c.bf16 %v1359_v7, %v1358_v5 }
 0x662   :  { %v1057_v26 = vadd.f32 %v1053_v19, %v4992_v50  ;;  %v1061_v27 = vadd.f32 %v1053_v19, %v5000_v16  ;;  %3619 = vmatpush3.bf16.msra.mxu1 %v3616_v17  ;;  %v1360_v17 = vld [vmem:[#allocation9 + $0x150] sm:$0xff] }
 0x663   :  { %v1056_v29 = vadd.f32 %v1052_v22, %v4988_v47  ;;  %v1060_v30 = vadd.f32 %v1052_v22, %v5002_v20  ;;  %v3620_v31 = vpack.c.bf16 %v1053_v19, %v1052_v22  ;;  %v1361_v19 = vld [vmem:[#allocation9 + $0x158] sm:$0xff] }
 0x664   :  { %v1063_v32 = vmax.f32 %v1055_v21, %v1057_v26  ;;  %v1072_v33 = vmax.f32 %v1059_v24, %v1061_v27  ;;  %v694_v22 = vld [vmem:[#allocation18 + $0x48] sm:$0xff]  ;;  %v3644_v26 = vpack.c.bf16 %v1361_v19, %v1360_v17 }
 0x665   :  { %v1062_v36 = vmax.f32 %v1054_v25, %v1056_v29  ;;  %v1071_v37 = vmax.f32 %v1058_v28, %v1060_v30  ;;  %3621 = vmatprep.subr.bf16.mxu1 %v3620_v31  ;;  %v693_v25 = vld [vmem:[#allocation18 + $0x40] sm:$0xff]  ;;  %v695_v28 = vld [vmem:[#allocation18 + $0x50] sm:$0xff]  ;;  %v1363_v30 = vld [vmem:[#allocation9 + $0x168] sm:$0xff] }
 0x666   :  { %3623 = vmatpush3.bf16.msra.mxu1 %v3620_v31  ;;  %v1362_v29 = vld [vmem:[#allocation9 + $0x160] sm:$0xff]  ;;  %v698_v31 = vld [vmem:[#allocation18 + $0x68] sm:$0xff] }
 0x667   :  { %v1064_v38 = vmax.f32 %v1062_v36, %v1063_v32  ;;  %v1073_v39 = vmax.f32 %v1071_v37, %v1072_v33  ;;  %3625 = vmatprep.subr.bf16.mxu1 %v3624_v23  ;;  %v700_v32 = vld [vmem:[#allocation18 + $0x78] sm:$0xff]  ;;  %v3594_v33 = vpack.c.bf16 %v695_v28, %v693_v25  ;;  %v3648_v35 = vpack.c.bf16 %v1363_v30, %v1362_v29  ;;  %v699_v37 = vld [vmem:[#allocation18 + $0x70] sm:$0xff] }
 0x668   :  { %v3596_v36 = vpack.c.bf16 %v700_v32, %v698_v31  ;;  %v3598_v43 = vpack.c.bf16 %v699_v37, %v697_v34  ;;  %v1467_v17 = vld [vmem:[#allocation12 + $0x118] sm:$0xff]  ;;  %v1472_v29 = vld [vmem:[#allocation12 + $0x140] sm:$0xff]  ;;  %v1473_v30 = vld [vmem:[#allocation12 + $0x148] sm:$0xff] }
 0x669   :  { %v1065_v44 = vrot.slane %v1064_v38, 4  ;;  %v1074_v45 = vrot.slane %v1073_v39, 4  ;;  %3327 = vmatmul.mubr.msk.f32.vlgmr.msra.gmra.mrb[16].mxu1 %vm277_vm0, %v4964_v13  ;;  %v3636_v13 = vpack.c.bf16 %v1357_v55, %v1356_v54  ;;  %v708_v54 = vld [vmem:[#allocation18 + $0xb8] sm:$0xff]  ;;  %v3672_v31 = vpack.c.bf16 %v1473_v30, %v1472_v29  ;;  %v1474_v32 = vld [vmem:[#allocation12 + $0x150] sm:$0xff]  ;;  %v1646_v29 = vld [vmem:[#allocation18 + $0x290] sm:$0xff] }
 0x66a   :  { %3329 = vmatprep.mubr.msk.f32.mxu1 %vm277_vm0, %v4966_v14  ;;  %3627 = vmatpush3.bf16.msra.mxu1 %v3624_v23  ;;  %v690_v14 = vld [vmem:[#allocation18 + $0x28] sm:$0xff]  ;;  %v696_v23 = vld [vmem:[#allocation18 + $0x58] sm:$0xff] }
 0x66b   :  { %v1066_v46 = vmax.f32 %v1064_v38, %v1065_v44  ;;  %v1075_v49 = vmax.f32 %v1073_v39, %v1074_v45  ;;  %3629 = vmatprep.subr.bf16.mxu1 %v3628_v41  ;;  %v3588_v11 = vpack.c.bf16 %v692_v1, %v690_v14  ;;  %v3592_v27 = vpack.c.bf16 %v696_v23, %v694_v22  ;;  %v1364_v38 = vld [vmem:[#allocation9 + $0x170] sm:$0xff]  ;;  %v1365_v39 = vld [vmem:[#allocation9 + $0x178] sm:$0xff]  ;;  %v716_v1 = vld [vmem:[#allocation18 + $0xf8] sm:$0xff] }
 0x66c   :  { %v3652_v44 = vpack.c.bf16 %v1365_v39, %v1364_v38  ;;  %v709_v14 = vld [vmem:[#allocation18 + $0xc0] sm:$0xff]  ;;  %v1468_v23 = vld [vmem:[#allocation12 + $0x120] sm:$0xff]  ;;  %v1479_v39 = vld [vmem:[#allocation12 + $0x178] sm:$0xff] }
 0x66d   :  { %3330 = vmatmul.mubr.msk.f32.gmra.mrb[18].mxu1 %vm277_vm0, %v4972_v18  ;;  %v1067_v56 = vrot.slane %v1066_v46, 2  ;;  %v1076_v57 = vrot.slane %v1075_v49, 2  ;;  %v689_v18 = vld [vmem:[#allocation18 + $0x20] sm:$0xff] }
 0x66e   :  { %3631 = vmatpush3.bf16.msra.mxu1 %v3628_v41  ;;  %v3590_v24 = vpack.c.bf16 %v691_v12, %v689_v18  ;;  %v702_v41 = vld [vmem:[#allocation18 + $0x88] sm:$0xff]  ;;  %v1464_v18 = vld [vmem:[#allocation12 + $0x100] sm:$0xff] }
 0x66f   :  { %v1068_v58 = vmax.f32 %v1066_v46, %v1067_v56  ;;  %v1077_v59 = vmax.f32 %v1075_v49, %v1076_v57  ;;  %3633 = vmatprep.subr.bf16.mxu1 %v3632_v52  ;;  %v3600_v45 = vpack.c.bf16 %v704_v42, %v702_v41  ;;  %v701_v46 = vld [vmem:[#allocation18 + $0x80] sm:$0xff]  ;;  %v703_v49 = vld [vmem:[#allocation18 + $0x90] sm:$0xff] }
 0x670   :  { %v3602_v55 = vpack.c.bf16 %v703_v49, %v701_v46  ;;  %v705_v57 = vld [vmem:[#allocation18 + $0xa0] sm:$0xff]  ;;  %v2911_v42 = vld [vmem:[#allocation11 + $0x2] ss:$0 sm:$0xff] }
 0x671   :  { %v1069_v6 = vrot.slane %v1068_v58, 1  ;;  %v1078_v63 = vrot.slane %v1077_v59, 1  ;;  %v1478_v38 = vld [vmem:[#allocation12 + $0x170] sm:$0xff] }
 0x672   :  { %3635 = vmatpush3.bf16.msra.mxu1 %v3632_v52  ;;  %v706_v52 = vld [vmem:[#allocation18 + $0xa8] sm:$0xff]  ;;  %v3684_v41 = vpack.c.bf16 %v1479_v39, %v1478_v38  ;;  %v1655_v38 = vld [vmem:[#allocation18 + $0x2d8] sm:$0xff]  ;;  %v1652_v39 = vld [vmem:[#allocation18 + $0x2c0] sm:$0xff] }
 0x673   :  { %v1070_v8 = vmax.f32 %v1068_v58, %v1069_v6  ;;  %v1079_v9 = vmax.f32 %v1077_v59, %v1078_v63  ;;  %3637 = vmatprep.subr.bf16.mxu1 %v3636_v13  ;;  %v3604_v56 = vpack.c.bf16 %v708_v54, %v706_v52  ;;  %v707_v58 = vld [vmem:[#allocation18 + $0xb0] sm:$0xff]  ;;  %v710_v59 = vld [vmem:[#allocation18 + $0xc8] sm:$0xff] }
 0x674   :  { %v3606_v60 = vpack.c.bf16 %v707_v58, %v705_v57  ;;  %v711_v6 = vld [vmem:[#allocation18 + $0xd0] sm:$0xff]  ;;  %v714_v63 = vld [vmem:[#allocation18 + $0xe8] sm:$0xff] }
 0x675   :  { %v1116_v21 = vsel %vm1115_vm1, %v1079_v9, %v1070_v8  ;;  %v3610_v5 = vpack.c.bf16 %v711_v6, %v709_v14  ;;  %v3612_v7 = vpack.c.bf16 %v716_v1, %v714_v63  ;;  %v713_v8 = vld [vmem:[#allocation18 + $0xe0] sm:$0xff]  ;;  %v715_v9 = vld [vmem:[#allocation18 + $0xf0] sm:$0xff]  ;;  %v1633_v1 = vld [vmem:[#allocation18 + $0x228] sm:$0xff] }
 0x676   :  { %1183 = vmatmul.mubr.f32.vlgmr.msra.gmra.mrb[8].mxu0 %v1116_v21  ;;  %3639 = vmatpush3.bf16.msra.mxu1 %v3636_v13  ;;  %v712_v13 = vld [vmem:[#allocation18 + $0xd8] sm:$0xff]  ;;  %v1628_v14 = vld [vmem:[#allocation18 + $0x200] sm:$0xff]  ;;  %v1630_v6 = vld [vmem:[#allocation18 + $0x210] sm:$0xff] }
 0x677   :  { %3587 = vmatpush1.bf16.msra.mxu0 %v3586_v10  ;;  %1257 = vmatprep.mubr.f32.mxu0 %v4638_v40  ;;  %v3608_v62 = vpack.c.bf16 %v712_v13, %v710_v59  ;;  %v3614_v10 = vpack.c.bf16 %v715_v9, %v713_v8  ;;  %v1629_v13 = vld [vmem:[#allocation18 + $0x208] sm:$0xff]  ;;  %v3690_v63 = vpack.c.bf16 %v1630_v6, %v1628_v14  ;;  %v1632_v8 = vld [vmem:[#allocation18 + $0x220] sm:$0xff]  ;;  %v1634_v9 = vld [vmem:[#allocation18 + $0x230] sm:$0xff] }
 0x678   :  { %3589 = vmatprep.subr.bf16.mxu0 %v3588_v11  ;;  %3641 = vmatprep.subr.bf16.mxu1 %v3640_v15  ;;  %v1465_v11 = vld [vmem:[#allocation12 + $0x108] sm:$0xff]  ;;  %v1762_v6 = vld [vmem:[#allocation21 + $0x48] sm:$0xff] }
 0x679   :  { %v3656_v12 = vpack.c.bf16 %v1465_v11, %v1464_v18  ;;  %v1637_v18 = vld [vmem:[#allocation18 + $0x248] sm:$0xff]  ;;  %v1639_v11 = vld [vmem:[#allocation18 + $0x258] sm:$0xff] }
 0x67a   :  { %3643 = vmatpush3.bf16.msra.mxu1 %v3640_v15  ;;  %v1466_v15 = vld [vmem:[#allocation12 + $0x110] sm:$0xff] }
 0x67b   :  { %3591 = vmatpush1.bf16.msra.mxu0 %v3590_v24  ;;  %3645 = vmatprep.subr.bf16.mxu1 %v3644_v26  ;;  %v3660_v22 = vpack.c.bf16 %v1467_v17, %v1466_v15  ;;  %v1469_v24 = vld [vmem:[#allocation12 + $0x128] sm:$0xff]  ;;  %v1638_v17 = vld [vmem:[#allocation18 + $0x250] sm:$0xff] }
 0x67c   :  { %3593 = vmatprep.subr.bf16.mxu0 %v3592_v27  ;;  %v1471_v27 = vld [vmem:[#allocation12 + $0x138] sm:$0xff]  ;;  %v1636_v15 = vld [vmem:[#allocation18 + $0x240] sm:$0xff] }
 0x67e   :  { %3647 = vmatpush3.bf16.msra.mxu1 %v3644_v26 }
 0x67f   :  { %3595 = vmatpush1.bf16.msra.mxu0 %v3594_v33  ;;  %3649 = vmatprep.subr.bf16.mxu1 %v3648_v35  ;;  %v1475_v33 = vld [vmem:[#allocation12 + $0x158] sm:$0xff] }
 0x680   :  { %3597 = vmatprep.subr.bf16.mxu0 %v3596_v36  ;;  %v3676_v34 = vpack.c.bf16 %v1475_v33, %v1474_v32  ;;  %v1477_v36 = vld [vmem:[#allocation12 + $0x168] sm:$0xff] }
 0x681   :  { %v1651_v32 = vld [vmem:[#allocation18 + $0x2b8] sm:$0xff] }
 0x682   :  { %3651 = vmatpush3.bf16.msra.mxu1 %v3648_v35  ;;  %v1476_v35 = vld [vmem:[#allocation12 + $0x160] sm:$0xff] }
 0x683   :  { %3599 = vmatpush1.bf16.msra.mxu0 %v3598_v43  ;;  %3653 = vmatprep.subr.bf16.mxu1 %v3652_v44  ;;  %v3680_v37 = vpack.c.bf16 %v1477_v36, %v1476_v35  ;;  %v1650_v35 = vld [vmem:[#allocation18 + $0x2b0] sm:$0xff]  ;;  %v1653_v36 = vld [vmem:[#allocation18 + $0x2c8] sm:$0xff] }
 0x684   :  { %3601 = vmatprep.subr.bf16.mxu0 %v3600_v45 }
 0x686   :  { %3655 = vmatpush3.bf16.msra.mxu1 %v3652_v44 }
 0x687   :  { %3603 = vmatpush1.bf16.msra.mxu0 %v3602_v55  ;;  %3657 = vmatprep.subr.bf16.mxu1 %v3656_v12 }
 0x688   :  { %3605 = vmatprep.subr.bf16.mxu0 %v3604_v56 }
 0x68b   :  { %3607 = vmatpush1.bf16.msra.mxu0 %v3606_v60  ;;  %v1631_v60 = vld [vmem:[#allocation18 + $0x218] sm:$0xff] }
 0x68c   :  { %3609 = vmatprep.subr.bf16.mxu0 %v3608_v62  ;;  %v3688_v62 = vpack.c.bf16 %v1631_v60, %v1629_v13  ;;  %v1753_v13 = vld [vmem:[#allocation21] sm:$0xff] }
 0x68d   :  { %v1757_v60 = vld [vmem:[#allocation21 + $0x20] sm:$0xff] }
 0x68e   :  { %v3722_v14 = vpack.c.bf16 %v1757_v60, %v1753_v13  ;;  %v1830_v13 = vld [vmem:[#allocation21 + $0x268] sm:$0xff] }
 0x68f   :  { %3611 = vmatpush1.bf16.msra.mxu0 %v3610_v5  ;;  %v1635_v5 = vld [vmem:[#allocation18 + $0x238] sm:$0xff] }
 0x690   :  { %3613 = vmatprep.subr.bf16.mxu0 %v3612_v7  ;;  %v3692_v7 = vpack.c.bf16 %v1635_v5, %v1633_v1  ;;  %v1761_v5 = vld [vmem:[#allocation21 + $0x40] sm:$0xff] }
 0x693   :  { %3615 = vmatpush1.bf16.msra.mxu0 %v3614_v10  ;;  %v3694_v10 = vpack.c.bf16 %v1634_v9, %v1632_v8  ;;  %v1770_v9 = vld [vmem:[#allocation21 + $0x88] sm:$0xff] }
 0x694   :  { %3689 = vmatprep.subr.bf16.mxu0 %v3688_v62 }
 0x696   :  { %1258 = vmatmul.mubr.f32.vlgmr.msra.gmra.mrb[8].mxu0 %v5019_v53  ;;  %v3664_v53 = vpack.c.bf16 %v1469_v24, %v1468_v23  ;;  %v1640_v24 = vld [vmem:[#allocation18 + $0x260] sm:$0xff] }
 0x697   :  { %1728 = vmatprep.mubr.f32.mxu0 %v4638_v40  ;;  %v1470_v40 = vld [vmem:[#allocation12 + $0x130] sm:$0xff]  ;;  %3691 = vmatpush1.bf16.msra.mxu0 %v3690_v63 }
 0x698   :  { %v3668_v28 = vpack.c.bf16 %v1471_v27, %v1470_v40  ;;  %3693 = vmatprep.subr.bf16.mxu0 %v3692_v7  ;;  %v1647_v40 = vld [vmem:[#allocation18 + $0x298] sm:$0xff]  ;;  %v1766_v63 = vld [vmem:[#allocation21 + $0x68] sm:$0xff]  ;;  %v1765_v7 = vld [vmem:[#allocation21 + $0x60] sm:$0xff] }
 0x699   :  { %v3724_v1 = vpack.c.bf16 %v1766_v63, %v1762_v6  ;;  %v3726_v8 = vpack.c.bf16 %v1765_v7, %v1761_v5  ;;  %v1834_v63 = vld [vmem:[#allocation21 + $0x288] sm:$0xff]  ;;  %v1833_v7 = vld [vmem:[#allocation21 + $0x280] sm:$0xff] }
 0x69b   :  { %3695 = vmatpush1.bf16.msra.mxu0 %v3694_v10  ;;  %v1774_v10 = vld [vmem:[#allocation21 + $0xa8] sm:$0xff] }
 0x73c   :  { %v3328_v19 = vpop.f32.mrb[16].mxu1 }
 0x73d   :  { %v1330_v21 = vpop.f32.mrb[17].mxu1 }
 0x73e   :  { %3364 = vmatprep.mubr.f32.mxu1 %v1330_v21  ;;  %v1641_v21 = vld [vmem:[#allocation18 + $0x268] sm:$0xff] }
 0x73f   :  { %3365 = vmatmul.mubr.f32.vlgmr.msra.gmra.mrb[20].mxu1 %v3328_v19  ;;  %v3698_v19 = vpack.c.bf16 %v1638_v17, %v1636_v15  ;;  %v1778_v17 = vld [vmem:[#allocation21 + $0xc8] sm:$0xff] }
 0x740   :  { %v3331_v25 = vpop.f32.mrb[18].mxu1  ;;  %3659 = vmatpush3.bf16.msra.mxu1 %v3656_v12  ;;  %v3696_v12 = vpack.c.bf16 %v1639_v11, %v1637_v18  ;;  %v3728_v18 = vpack.c.bf16 %v1774_v10, %v1770_v9  ;;  %v1769_v11 = vld [vmem:[#allocation21 + $0x80] sm:$0xff]  ;;  %v1842_v10 = vld [vmem:[#allocation21 + $0x2c8] sm:$0xff] }
 0x741   :  { %v1340_v26 = vpop.f32.mrb[19].mxu1  ;;  %3661 = vmatprep.subr.bf16.mxu1 %v3660_v22 }
 0x742   :  { %3367 = vmatprep.mubr.f32.mxu1 %v1340_v26  ;;  %3697 = vmatprep.subr.bf16.mxu0 %v3696_v12  ;;  %v1773_v12 = vld [vmem:[#allocation21 + $0xa0] sm:$0xff] }
 0x743   :  { %3368 = vmatmul.mubr.f32.gmra.mrb[22].mxu1 %v3331_v25  ;;  %3699 = vmatpush1.bf16.msra.mxu0 %v3698_v19  ;;  %v1642_v25 = vld [vmem:[#allocation18 + $0x270] sm:$0xff]  ;;  %v3730_v15 = vpack.c.bf16 %v1773_v12, %v1769_v11  ;;  %v1841_v12 = vld [vmem:[#allocation21 + $0x2c0] sm:$0xff] }
 0x744   :  { %3663 = vmatpush3.bf16.msra.mxu1 %v3660_v22  ;;  %v1643_v22 = vld [vmem:[#allocation18 + $0x278] sm:$0xff]  ;;  %v3702_v26 = vpack.c.bf16 %v1642_v25, %v1640_v24  ;;  %v1782_v19 = vld [vmem:[#allocation21 + $0xe8] sm:$0xff] }
 0x745   :  { %3665 = vmatprep.subr.bf16.mxu1 %v3664_v53  ;;  %v3700_v23 = vpack.c.bf16 %v1643_v22, %v1641_v21  ;;  %v3732_v21 = vpack.c.bf16 %v1782_v19, %v1778_v17  ;;  %v1777_v22 = vld [vmem:[#allocation21 + $0xc0] sm:$0xff]  ;;  %v1786_v25 = vld [vmem:[#allocation21 + $0x108] sm:$0xff] }
 0x746   :  { %v1850_v19 = vld [vmem:[#allocation21 + $0x308] sm:$0xff] }
 0x747   :  { %3701 = vmatprep.subr.bf16.mxu0 %v3700_v23  ;;  %v1781_v23 = vld [vmem:[#allocation21 + $0xe0] sm:$0xff] }
 0x748   :  { %3667 = vmatpush3.bf16.msra.mxu1 %v3664_v53  ;;  %3703 = vmatpush1.bf16.msra.mxu0 %v3702_v26  ;;  %v1645_v53 = vld [vmem:[#allocation18 + $0x288] sm:$0xff]  ;;  %v3734_v24 = vpack.c.bf16 %v1781_v23, %v1777_v22 }
 0x749   :  { %3669 = vmatprep.subr.bf16.mxu1 %v3668_v28  ;;  %v3704_v27 = vpack.c.bf16 %v1647_v40, %v1645_v53  ;;  %v1790_v26 = vld [vmem:[#allocation21 + $0x128] sm:$0xff]  ;;  %v1785_v40 = vld [vmem:[#allocation21 + $0x100] sm:$0xff] }
 0x74a   :  { %v3736_v53 = vpack.c.bf16 %v1790_v26, %v1786_v25  ;;  %v1849_v23 = vld [vmem:[#allocation21 + $0x300] sm:$0xff]  ;;  %v1858_v26 = vld [vmem:[#allocation21 + $0x348] sm:$0xff] }
 0x74b   :  { %3705 = vmatprep.subr.bf16.mxu0 %v3704_v27  ;;  %v1789_v27 = vld [vmem:[#allocation21 + $0x120] sm:$0xff] }
 0x74c   :  { %3671 = vmatpush3.bf16.msra.mxu1 %v3668_v28  ;;  %v1644_v28 = vld [vmem:[#allocation18 + $0x280] sm:$0xff] }
 0x74d   :  { %3673 = vmatprep.subr.bf16.mxu1 %v3672_v31  ;;  %v3706_v30 = vpack.c.bf16 %v1646_v29, %v1644_v28  ;;  %v3738_v28 = vpack.c.bf16 %v1789_v27, %v1785_v40  ;;  %v1794_v29 = vld [vmem:[#allocation21 + $0x148] sm:$0xff]  ;;  %v1857_v27 = vld [vmem:[#allocation21 + $0x340] sm:$0xff] }
 0x74f   :  { %3707 = vmatpush1.bf16.msra.mxu0 %v3706_v30  ;;  %v1798_v30 = vld [vmem:[#allocation21 + $0x168] sm:$0xff] }
 0x750   :  { %3675 = vmatpush3.bf16.msra.mxu1 %v3672_v31  ;;  %v1649_v31 = vld [vmem:[#allocation18 + $0x2a8] sm:$0xff] }
 0x751   :  { %3677 = vmatprep.subr.bf16.mxu1 %v3676_v34  ;;  %v3708_v33 = vpack.c.bf16 %v1651_v32, %v1649_v31  ;;  %v3740_v31 = vpack.c.bf16 %v1798_v30, %v1794_v29  ;;  %v1793_v32 = vld [vmem:[#allocation21 + $0x140] sm:$0xff]  ;;  %v1866_v30 = vld [vmem:[#allocation21 + $0x388] sm:$0xff] }
 0x753   :  { %3709 = vmatprep.subr.bf16.mxu0 %v3708_v33  ;;  %v1797_v33 = vld [vmem:[#allocation21 + $0x160] sm:$0xff] }
 0x754   :  { %3679 = vmatpush3.bf16.msra.mxu1 %v3676_v34  ;;  %v1648_v34 = vld [vmem:[#allocation18 + $0x2a0] sm:$0xff] }
 0x755   :  { %3681 = vmatprep.subr.bf16.mxu1 %v3680_v37 }
 0x758   :  { %3683 = vmatpush3.bf16.msra.mxu1 %v3680_v37  ;;  %v3710_v37 = vpack.c.bf16 %v1650_v35, %v1648_v34  ;;  %v3742_v34 = vpack.c.bf16 %v1797_v33, %v1793_v32  ;;  %v1802_v35 = vld [vmem:[#allocation21 + $0x188] sm:$0xff]  ;;  %v2912_v33 = vld [vmem:[#allocation14 + $0x2] ss:$0 sm:$0xff] }
 0x759   :  { %3685 = vmatprep.subr.bf16.mxu1 %v3684_v41 }
 0x75a   :  { %3711 = vmatpush1.bf16.msra.mxu0 %v3710_v37 }
 0x75c   :  { %3687 = vmatpush3.bf16.msra.mxu1 %v3684_v41  ;;  %v1654_v41 = vld [vmem:[#allocation18 + $0x2d0] sm:$0xff] }
 0x812   :  { %v3366_v43 = vpop.f32.mrb[20].mxu1 }
 0x813   :  { %v1446_v44 = vadd.f32 %v3366_v43, %v2911_v42  ;;  %v1440_v45 = vpop.f32.mrb[21].mxu1  ;;  %v1657_v43 = vld [vmem:[#allocation18 + $0x2e8] sm:$0xff] }
 0x814   :  { %v1441_v46 = vadd.f32 %v2911_v42, %v1440_v45  ;;  %v3714_v45 = vpack.c.bf16 %v1654_v41, %v1652_v39  ;;  %v1805_v39 = vld [vmem:[#allocation21 + $0x1a0] sm:$0xff] }
 0x815   :  { %v1460_v54 = vmax.f32 %v1446_v44, 0.0  ;;  %v1659_v44 = vld [vmem:[#allocation18 + $0x2f8] sm:$0xff] }
 0x816   :  { %v1459_v49 = vmax.f32 %v1441_v46, 0.0  ;;  %v3369_v52 = vpop.f32.mrb[22].mxu1  ;;  %v3716_v46 = vpack.c.bf16 %v1659_v44, %v1657_v43  ;;  %v1814_v43 = vld [vmem:[#allocation21 + $0x1e8] sm:$0xff] }
 0x817   :  { %v1456_v55 = vadd.f32 %v3369_v52, %v2911_v42  ;;  %v1450_v56 = vpop.f32.mrb[23].mxu1  ;;  %v1658_v52 = vld [vmem:[#allocation18 + $0x2f0] sm:$0xff] }
 0x818   :  { %v1451_v57 = vadd.f32 %v2911_v42, %v1450_v56  ;;  %3402 = vmatprep.mubr.f32.mxu1 %v1459_v49  ;;  %v3712_v42 = vpack.c.bf16 %v1655_v38, %v1653_v36  ;;  %v1656_v49 = vld [vmem:[#allocation18 + $0x2e0] sm:$0xff]  ;;  %v1758_v56 = vld [vmem:[#allocation21 + $0x28] sm:$0xff] }
 0x819   :  { %3403 = vmatmul.mubr.f32.vlgmr.msra.gmra.mrb[24].mxu1 %v1460_v54  ;;  %v1462_v59 = vmax.f32 %v1456_v55, 0.0  ;;  %v3718_v54 = vpack.c.bf16 %v1658_v52, %v1656_v49  ;;  %v1754_v55 = vld [vmem:[#allocation21 + $0x8] sm:$0xff]  ;;  %v1801_v38 = vld [vmem:[#allocation21 + $0x180] sm:$0xff] }
 0x81a   :  { %v1461_v58 = vmax.f32 %v1451_v57, 0.0  ;;  %3713 = vmatprep.subr.bf16.mxu0 %v3712_v42  ;;  %v1756_v57 = vld [vmem:[#allocation21 + $0x18] sm:$0xff]  ;;  %v1806_v36 = vld [vmem:[#allocation21 + $0x1a8] sm:$0xff]  ;;  %v3746_v41 = vpack.c.bf16 %v1805_v39, %v1801_v38 }
 0x81b   :  { %3715 = vmatpush1.bf16.msra.mxu0 %v3714_v45  ;;  %v3744_v37 = vpack.c.bf16 %v1806_v36, %v1802_v35  ;;  %v1810_v42 = vld [vmem:[#allocation21 + $0x1c8] sm:$0xff]  ;;  %v1809_v45 = vld [vmem:[#allocation21 + $0x1c0] sm:$0xff] }
 0x81c   :  { %3405 = vmatprep.mubr.f32.mxu1 %v1461_v58  ;;  %3717 = vmatprep.subr.bf16.mxu0 %v3716_v46  ;;  %v3720_v58 = vpack.c.bf16 %v1758_v56, %v1754_v55  ;;  %v3748_v44 = vpack.c.bf16 %v1814_v43, %v1810_v42  ;;  %v1813_v46 = vld [vmem:[#allocation21 + $0x1e0] sm:$0xff]  ;;  %v1818_v52 = vld [vmem:[#allocation21 + $0x208] sm:$0xff] }
 0x81d   :  { %3406 = vmatmul.mubr.f32.gmra.mrb[26].mxu1 %v1462_v59  ;;  %v1760_v59 = vld [vmem:[#allocation21 + $0x38] sm:$0xff]  ;;  %v3750_v49 = vpack.c.bf16 %v1813_v46, %v1809_v45  ;;  %v1817_v56 = vld [vmem:[#allocation21 + $0x200] sm:$0xff] }
 0x81e   :  { %v3784_v62 = vpack.c.bf16 %v1760_v59, %v1756_v57  ;;  %3721 = vmatprep.subr.bf16.mxu1 %v3720_v58  ;;  %v1821_v57 = vld [vmem:[#allocation21 + $0x220] sm:$0xff]  ;;  %v1826_v59 = vld [vmem:[#allocation21 + $0x248] sm:$0xff]  ;;  %v2914_v46 = vld [vmem:[#allocation17 + $0x2] ss:$0 sm:$0xff] }
 0x81f   :  { %3719 = vmatpush1.bf16.msra.mxu0 %v3718_v54  ;;  %3723 = vmatpush1.bf16.msra.mxu1 %v3722_v14  ;;  %v1822_v54 = vld [vmem:[#allocation21 + $0x228] sm:$0xff]  ;;  %v3754_v58 = vpack.c.bf16 %v1821_v57, %v1817_v56  ;;  %v3756_v60 = vpack.c.bf16 %v1830_v13, %v1826_v59  ;;  %v1829_v14 = vld [vmem:[#allocation21 + $0x260] sm:$0xff] }
 0x820   :  { %3785 = vmatprep.subr.bf16.mxu0 %v3784_v62  ;;  %3725 = vmatprep.subr.bf16.mxu1 %v3724_v1  ;;  %v3752_v55 = vpack.c.bf16 %v1822_v54, %v1818_v52  ;;  %v1825_v62 = vld [vmem:[#allocation21 + $0x240] sm:$0xff]  ;;  %v1838_v1 = vld [vmem:[#allocation21 + $0x2a8] sm:$0xff] }
 0x821   :  { %v3758_v6 = vpack.c.bf16 %v1829_v14, %v1825_v62  ;;  %v3760_v5 = vpack.c.bf16 %v1838_v1, %v1834_v63 }
 0x823   :  { %3727 = vmatpush1.bf16.msra.mxu1 %v3726_v8  ;;  %v1837_v8 = vld [vmem:[#allocation21 + $0x2a0] sm:$0xff] }
 0x824   :  { %3729 = vmatprep.subr.bf16.mxu1 %v3728_v18  ;;  %v3762_v9 = vpack.c.bf16 %v1837_v8, %v1833_v7  ;;  %v1846_v18 = vld [vmem:[#allocation21 + $0x2e8] sm:$0xff] }
 0x825   :  { %v3764_v11 = vpack.c.bf16 %v1846_v18, %v1842_v10 }
 0x827   :  { %3731 = vmatpush1.bf16.msra.mxu1 %v3730_v15  ;;  %v1845_v15 = vld [vmem:[#allocation21 + $0x2e0] sm:$0xff] }
 0x828   :  { %3733 = vmatprep.subr.bf16.mxu1 %v3732_v21  ;;  %v3766_v17 = vpack.c.bf16 %v1845_v15, %v1841_v12  ;;  %v1854_v21 = vld [vmem:[#allocation21 + $0x328] sm:$0xff] }
 0x829   :  { %v3768_v22 = vpack.c.bf16 %v1854_v21, %v1850_v19 }
 0x82b   :  { %3735 = vmatpush1.bf16.msra.mxu1 %v3734_v24  ;;  %v1853_v24 = vld [vmem:[#allocation21 + $0x320] sm:$0xff] }
 0x82c   :  { %3737 = vmatprep.subr.bf16.mxu1 %v3736_v53  ;;  %v3770_v25 = vpack.c.bf16 %v1853_v24, %v1849_v23  ;;  %v1862_v53 = vld [vmem:[#allocation21 + $0x368] sm:$0xff]  ;;  %v1764_v24 = vld [vmem:[#allocation21 + $0x58] sm:$0xff] }
 0x82d   :  { %v3772_v40 = vpack.c.bf16 %v1862_v53, %v1858_v26 }
 0x82f   :  { %3739 = vmatpush1.bf16.msra.mxu1 %v3738_v28  ;;  %v1861_v28 = vld [vmem:[#allocation21 + $0x360] sm:$0xff] }
 0x830   :  { %3741 = vmatprep.subr.bf16.mxu1 %v3740_v31  ;;  %v3774_v29 = vpack.c.bf16 %v1861_v28, %v1857_v27  ;;  %v1870_v31 = vld [vmem:[#allocation21 + $0x3a8] sm:$0xff]  ;;  %v1763_v27 = vld [vmem:[#allocation21 + $0x50] sm:$0xff] }
 0x831   :  { %v3776_v32 = vpack.c.bf16 %v1870_v31, %v1866_v30  ;;  %v1767_v28 = vld [vmem:[#allocation21 + $0x70] sm:$0xff]  ;;  %v1772_v30 = vld [vmem:[#allocation21 + $0x98] sm:$0xff] }
 0x832   :  { %v1776_v31 = vld [vmem:[#allocation21 + $0xb8] sm:$0xff] }
 0x833   :  { %3743 = vmatpush1.bf16.msra.mxu1 %v3742_v34 }
 0x834   :  { %3745 = vmatprep.subr.bf16.mxu1 %v3744_v37  ;;  %v2913_v37 = vld [vmem:[#allocation15 + $0x2] ss:$0 sm:$0xff] }
 0x837   :  { %3747 = vmatpush1.bf16.msra.mxu1 %v3746_v41 }
 0x838   :  { %3749 = vmatprep.subr.bf16.mxu1 %v3748_v44 }
 0x83b   :  { %3751 = vmatpush1.bf16.msra.mxu1 %v3750_v49 }
 0x83c   :  { %3753 = vmatprep.subr.bf16.mxu1 %v3752_v55 }
 0x83f   :  { %3755 = vmatpush1.bf16.msra.mxu1 %v3754_v58 }
 0x840   :  { %3757 = vmatprep.subr.bf16.mxu1 %v3756_v60 }
 0x843   :  { %3759 = vmatpush1.bf16.msra.mxu1 %v3758_v6 }
 0x844   :  { %3761 = vmatprep.subr.bf16.mxu1 %v3760_v5 }
 0x847   :  { %3763 = vmatpush1.bf16.msra.mxu1 %v3762_v9 }
 0x848   :  { %3765 = vmatprep.subr.bf16.mxu1 %v3764_v11 }
 0x84b   :  { %3767 = vmatpush1.bf16.msra.mxu1 %v3766_v17 }
 0x84c   :  { %3769 = vmatprep.subr.bf16.mxu1 %v3768_v22  ;;  %v1755_v22 = vld [vmem:[#allocation21 + $0x10] sm:$0xff] }
 0x84f   :  { %3771 = vmatpush1.bf16.msra.mxu1 %v3770_v25 }
 0x850   :  { %3773 = vmatprep.subr.bf16.mxu1 %v3772_v40 }
 0x853   :  { %3775 = vmatpush1.bf16.msra.mxu1 %v3774_v29 }
 0x854   :  { %3777 = vmatprep.subr.bf16.mxu1 %v3776_v32  ;;  %v3790_v32 = vpack.c.bf16 %v1767_v28, %v1763_v27  ;;  %v1843_v27 = vld [vmem:[#allocation21 + $0x2d0] sm:$0xff] }
 0x855   :  { %v1847_v28 = vld [vmem:[#allocation21 + $0x2f0] sm:$0xff] }
 0x8ec   :  { %v3404_v34 = vpop.f32.mrb[24].mxu1 }
 0x8ed   :  { %v1560_v35 = vadd.f32 %v3404_v34, %v2912_v33  ;;  %v1554_v36 = vpop.f32.mrb[25].mxu1  ;;  %v1771_v34 = vld [vmem:[#allocation21 + $0x90] sm:$0xff] }
 0x8ee   :  { %v1555_v38 = vadd.f32 %v2912_v33, %v1554_v36  ;;  %v1780_v36 = vld [vmem:[#allocation21 + $0xd8] sm:$0xff] }
 0x8ef   :  { %v1574_v39 = vmax.f32 %v1560_v35, 0.0  ;;  %v1775_v35 = vld [vmem:[#allocation21 + $0xb0] sm:$0xff] }
 0x8f0   :  { %v1573_v41 = vmax.f32 %v1555_v38, 0.0  ;;  %v3407_v42 = vpop.f32.mrb[26].mxu1  ;;  %v3794_v38 = vpack.c.bf16 %v1775_v35, %v1771_v34  ;;  %v1855_v34 = vld [vmem:[#allocation21 + $0x330] sm:$0xff]  ;;  %v1860_v35 = vld [vmem:[#allocation21 + $0x358] sm:$0xff] }
 0x8f1   :  { %v1586_v43 = vmul.f32 %v2913_v37, %v1574_v39  ;;  %v1570_v44 = vadd.f32 %v3407_v42, %v2912_v33  ;;  %v1564_v45 = vpop.f32.mrb[27].mxu1  ;;  %v1783_v42 = vld [vmem:[#allocation21 + $0xf0] sm:$0xff] }
 0x8f2   :  { %v1585_v49 = vmul.f32 %v2913_v37, %v1573_v41  ;;  %v1565_v52 = vadd.f32 %v2912_v33, %v1564_v45  ;;  %v3792_v33 = vpack.c.bf16 %v1776_v31, %v1772_v30  ;;  %v1779_v41 = vld [vmem:[#allocation21 + $0xd0] sm:$0xff]  ;;  %v1856_v30 = vld [vmem:[#allocation21 + $0x338] sm:$0xff]  ;;  %v3830_v31 = vpack.c.bf16 %v1847_v28, %v1843_v27  ;;  %v2081_v27 = vld [vmem:[#allocation24 + $0x60] sm:$0xff] }
 0x8f3   :  { %v1576_v54 = vmax.f32 %v1570_v44, 0.0  ;;  %v1598_v56 = vadd.f32 %v2914_v46, %v1586_v43  ;;  %v1788_v43 = vld [vmem:[#allocation21 + $0x118] sm:$0xff]  ;;  %v3798_v45 = vpack.c.bf16 %v1783_v42, %v1779_v41  ;;  %v1863_v41 = vld [vmem:[#allocation21 + $0x370] sm:$0xff] }
 0x8f4   :  { %v1575_v55 = vmax.f32 %v1565_v52, 0.0  ;;  %v1597_v58 = vadd.f32 %v2914_v46, %v1585_v49  ;;  %v1792_v44 = vld [vmem:[#allocation21 + $0x138] sm:$0xff]  ;;  %v1787_v49 = vld [vmem:[#allocation21 + $0x110] sm:$0xff] }
 0x8f5   :  { %v1588_v57 = vmul.f32 %v2913_v37, %v1576_v54  ;;  %v1602_v62 = vadd.f32 %v1598_v56, %v4994_v51  ;;  %v1606_v14 = vadd.f32 %v1598_v56, %v4996_v61  ;;  %v1791_v52 = vld [vmem:[#allocation21 + $0x130] sm:$0xff]  ;;  %v1796_v54 = vld [vmem:[#allocation21 + $0x158] sm:$0xff] }
 0x8f6   :  { %v1587_v59 = vmul.f32 %v2913_v37, %v1575_v55  ;;  %v1601_v1 = vadd.f32 %v1597_v58, %v4990_v48  ;;  %v1605_v5 = vadd.f32 %v1597_v58, %v4998_v3  ;;  %v1759_v3 = vld [vmem:[#allocation21 + $0x30] sm:$0xff]  ;;  %v1784_v37 = vld [vmem:[#allocation21 + $0xf8] sm:$0xff]  ;;  %v3802_v56 = vpack.c.bf16 %v1791_v52, %v1787_v49  ;;  %v1869_v49 = vld [vmem:[#allocation21 + $0x3a0] sm:$0xff] }
 0x8f7   :  { %v1600_v13 = vadd.f32 %v2914_v46, %v1588_v57  ;;  %v3786_v53 = vpack.c.bf16 %v1759_v3, %v1755_v22  ;;  %v3796_v39 = vpack.c.bf16 %v1784_v37, %v1780_v36  ;;  %v1800_v55 = vld [vmem:[#allocation21 + $0x178] sm:$0xff]  ;;  %v1795_v58 = vld [vmem:[#allocation21 + $0x150] sm:$0xff] }
 0x8f8   :  { %v1599_v60 = vadd.f32 %v2914_v46, %v1587_v59  ;;  %v3800_v46 = vpack.c.bf16 %v1792_v44, %v1788_v43  ;;  %v3804_v57 = vpack.c.bf16 %v1800_v55, %v1796_v54  ;;  %v1799_v59 = vld [vmem:[#allocation21 + $0x170] sm:$0xff]  ;;  %v1836_v22 = vld [vmem:[#allocation21 + $0x298] sm:$0xff] }
 0x8f9   :  { %v1604_v6 = vadd.f32 %v1600_v13, %v4992_v50  ;;  %v1608_v63 = vadd.f32 %v1600_v13, %v5000_v16  ;;  %v1804_v13 = vld [vmem:[#allocation21 + $0x198] sm:$0xff]  ;;  %v1867_v52 = vld [vmem:[#allocation21 + $0x390] sm:$0xff] }
 0x8fa   :  { %v1603_v7 = vadd.f32 %v1599_v60, %v4988_v47  ;;  %v1607_v8 = vadd.f32 %v1599_v60, %v5002_v20  ;;  %v1768_v20 = vld [vmem:[#allocation21 + $0x78] sm:$0xff]  ;;  %v1871_v55 = vld [vmem:[#allocation21 + $0x3b0] sm:$0xff] }
 0x8fb   :  { %v1610_v9 = vmax.f32 %v1602_v62, %v1604_v6  ;;  %v1619_v10 = vmax.f32 %v1606_v14, %v1608_v63  ;;  %v3788_v40 = vpack.c.bf16 %v1768_v20, %v1764_v24  ;;  %v1808_v60 = vld [vmem:[#allocation21 + $0x1b8] sm:$0xff]  ;;  %v3806_v62 = vpack.c.bf16 %v1799_v59, %v1795_v58  ;;  %v1803_v6 = vld [vmem:[#allocation21 + $0x190] sm:$0xff]  ;;  %v1878_v58 = vld [vmem:[#allocation21 + $0x3e8] sm:$0xff] }
 0x8fc   :  { %v1609_v18 = vmax.f32 %v1601_v1, %v1603_v7  ;;  %v1618_v11 = vmax.f32 %v1605_v5, %v1607_v8  ;;  %v3808_v14 = vpack.c.bf16 %v1808_v60, %v1804_v13  ;;  %v1807_v63 = vld [vmem:[#allocation21 + $0x1b0] sm:$0xff]  ;;  %v1812_v1 = vld [vmem:[#allocation21 + $0x1d8] sm:$0xff] }
 0x8fd   :  { %v1816_v5 = vld [vmem:[#allocation21 + $0x1f8] sm:$0xff]  ;;  %v3810_v7 = vpack.c.bf16 %v1807_v63, %v1803_v6  ;;  %v1835_v24 = vld [vmem:[#allocation21 + $0x290] sm:$0xff] }
 0x8fe   :  { %v1611_v12 = vmax.f32 %v1609_v18, %v1610_v9  ;;  %v1620_v51 = vmax.f32 %v1618_v11, %v1619_v10  ;;  %v3812_v8 = vpack.c.bf16 %v1816_v5, %v1812_v1  ;;  %v1811_v9 = vld [vmem:[#allocation21 + $0x1d0] sm:$0xff]  ;;  %v1820_v18 = vld [vmem:[#allocation21 + $0x218] sm:$0xff] }
 0x8ff   :  { %v1815_v10 = vld [vmem:[#allocation21 + $0x1f0] sm:$0xff]  ;;  %v1824_v11 = vld [vmem:[#allocation21 + $0x238] sm:$0xff] }
 0x900   :  { %v1612_v15 = vrot.slane %v1611_v12, 4  ;;  %v1621_v61 = vrot.slane %v1620_v51, 4  ;;  %v1840_v3 = vld [vmem:[#allocation21 + $0x2b8] sm:$0xff]  ;;  %v1839_v20 = vld [vmem:[#allocation21 + $0x2b0] sm:$0xff] }
 0x901   :  { %v1864_v36 = vld [vmem:[#allocation21 + $0x378] sm:$0xff]  ;;  %v1875_v1 = vld [vmem:[#allocation21 + $0x3d0] sm:$0xff] }
 0x902   :  { %v1613_v17 = vmax.f32 %v1611_v12, %v1612_v15  ;;  %v1622_v50 = vmax.f32 %v1620_v51, %v1621_v61  ;;  %v3814_v12 = vpack.c.bf16 %v1815_v10, %v1811_v9  ;;  %v3816_v51 = vpack.c.bf16 %v1824_v11, %v1820_v18  ;;  %v1819_v15 = vld [vmem:[#allocation21 + $0x210] sm:$0xff]  ;;  %v1868_v42 = vld [vmem:[#allocation21 + $0x398] sm:$0xff] }
 0x903   :  { %v1823_v61 = vld [vmem:[#allocation21 + $0x230] sm:$0xff]  ;;  %v1872_v43 = vld [vmem:[#allocation21 + $0x3b8] sm:$0xff] }
 0x904   :  { %v1614_v19 = vrot.slane %v1613_v17, 2  ;;  %v1623_v16 = vrot.slane %v1622_v50, 2  ;;  %v1876_v59 = vld [vmem:[#allocation21 + $0x3d8] sm:$0xff]  ;;  %v1879_v5 = vld [vmem:[#allocation21 + $0x3f0] sm:$0xff] }
 0x905   :  { %v1880_v60 = vld [vmem:[#allocation21 + $0x3f8] sm:$0xff]  ;;  %v2074_v9 = vld [vmem:[#allocation24 + $0x28] sm:$0xff] }
 0x906   :  { %v1615_v21 = vmax.f32 %v1613_v17, %v1614_v19  ;;  %v1624_v48 = vmax.f32 %v1622_v50, %v1623_v16  ;;  %v1828_v17 = vld [vmem:[#allocation21 + $0x258] sm:$0xff]  ;;  %v3818_v19 = vpack.c.bf16 %v1823_v61, %v1819_v15  ;;  %v3844_v6 = vpack.c.bf16 %v1880_v60, %v1876_v59 }
 0x907   :  { %v1832_v50 = vld [vmem:[#allocation21 + $0x278] sm:$0xff] }
 0x908   :  { %v1616_v23 = vrot.slane %v1615_v21, 1  ;;  %v1625_v47 = vrot.slane %v1624_v48, 1  ;;  %v3820_v16 = vpack.c.bf16 %v1832_v50, %v1828_v17  ;;  %v2072_v10 = vld [vmem:[#allocation24 + $0x18] sm:$0xff]  ;;  %v2069_v50 = vld [vmem:[#allocation24] sm:$0xff]  ;;  %v2095_v60 = vld [vmem:[#allocation24 + $0xd0] sm:$0xff] }
 0x909   :  { %v2076_v11 = vld [vmem:[#allocation24 + $0x38] sm:$0xff] }
 0x90a   :  { %v1617_v25 = vmax.f32 %v1615_v21, %v1616_v23  ;;  %v1626_v26 = vmax.f32 %v1624_v48, %v1625_v47  ;;  %v1827_v21 = vld [vmem:[#allocation21 + $0x250] sm:$0xff]  ;;  %v3824_v47 = vpack.c.bf16 %v1840_v3, %v1836_v22 }
 0x90b   :  { %v1831_v48 = vld [vmem:[#allocation21 + $0x270] sm:$0xff] }
 0x90c   :  { %v1662_v29 = vsel %vm1115_vm1, %v1626_v26, %v1617_v25  ;;  %v3822_v23 = vpack.c.bf16 %v1831_v48, %v1827_v21  ;;  %v1844_v25 = vld [vmem:[#allocation21 + $0x2d8] sm:$0xff]  ;;  %v2078_v3 = vld [vmem:[#allocation24 + $0x48] sm:$0xff] }
 0x90d   :  { %1729 = vmatmul.mubr.f32.vlgmr.msra.gmra.mrb[8].mxu0 %v1662_v29  ;;  %v1848_v26 = vld [vmem:[#allocation21 + $0x2f8] sm:$0xff] }
 0x90e   :  { %3787 = vmatpush1.bf16.msra.mxu0 %v3786_v53  ;;  %v3826_v53 = vpack.c.bf16 %v1839_v20, %v1835_v24  ;;  %v1852_v29 = vld [vmem:[#allocation21 + $0x318] sm:$0xff] }
 0x90f   :  { %3789 = vmatprep.subr.bf16.mxu0 %v3788_v40  ;;  %v3828_v40 = vpack.c.bf16 %v1848_v26, %v1844_v25  ;;  %v2071_v48 = vld [vmem:[#allocation24 + $0x10] sm:$0xff]  ;;  %v2080_v24 = vld [vmem:[#allocation24 + $0x58] sm:$0xff] }
 0x910   :  { %v2075_v22 = vld [vmem:[#allocation24 + $0x30] sm:$0xff]  ;;  %v2084_v20 = vld [vmem:[#allocation24 + $0x78] sm:$0xff] }
 0x912   :  { %3791 = vmatpush1.bf16.msra.mxu0 %v3790_v32  ;;  %v3832_v32 = vpack.c.bf16 %v1856_v30, %v1852_v29  ;;  %v3980_v30 = vpack.c.bf16 %v2084_v20, %v2080_v24  ;;  %v2122_v24 = vld [vmem:[#allocation24 + $0x1a8] sm:$0xff]  ;;  %v2120_v20 = vld [vmem:[#allocation24 + $0x198] sm:$0xff] }
 0x913   :  { %3793 = vmatprep.subr.bf16.mxu0 %v3792_v33  ;;  %v1851_v33 = vld [vmem:[#allocation21 + $0x310] sm:$0xff] }
 0x914   :  { %v3834_v37 = vpack.c.bf16 %v1855_v34, %v1851_v33  ;;  %v2086_v33 = vld [vmem:[#allocation24 + $0x88] sm:$0xff] }
 0x915   :  { %v2090_v34 = vld [vmem:[#allocation24 + $0xa8] sm:$0xff] }
 0x916   :  { %3795 = vmatpush1.bf16.msra.mxu0 %v3794_v38  ;;  %v3836_v38 = vpack.c.bf16 %v1864_v36, %v1860_v35  ;;  %v2088_v35 = vld [vmem:[#allocation24 + $0x98] sm:$0xff] }
 0x917   :  { %3797 = vmatprep.subr.bf16.mxu0 %v3796_v39  ;;  %v1859_v39 = vld [vmem:[#allocation21 + $0x350] sm:$0xff]  ;;  %v2092_v36 = vld [vmem:[#allocation24 + $0xb8] sm:$0xff] }
 0x918   :  { %v3838_v44 = vpack.c.bf16 %v1863_v41, %v1859_v39  ;;  %v2085_v39 = vld [vmem:[#allocation24 + $0x80] sm:$0xff] }
 0x919   :  { %v2089_v41 = vld [vmem:[#allocation24 + $0xa0] sm:$0xff] }
 0x91a   :  { %3799 = vmatpush1.bf16.msra.mxu0 %v3798_v45  ;;  %v3840_v45 = vpack.c.bf16 %v1872_v43, %v1868_v42  ;;  %v3856_v42 = vpack.c.bf16 %v2090_v34, %v2086_v33  ;;  %v3984_v43 = vpack.c.bf16 %v2092_v36, %v2088_v35  ;;  %v2130_v33 = vld [vmem:[#allocation24 + $0x1e8] sm:$0xff]  ;;  %v2128_v34 = vld [vmem:[#allocation24 + $0x1d8] sm:$0xff] }
 0x91b   :  { %3801 = vmatprep.subr.bf16.mxu0 %v3800_v46  ;;  %v1865_v46 = vld [vmem:[#allocation21 + $0x380] sm:$0xff] }
 0x91c   :  { %v3778_v54 = vpack.c.bf16 %v1869_v49, %v1865_v46  ;;  %v2094_v46 = vld [vmem:[#allocation24 + $0xc8] sm:$0xff]  ;;  %v2132_v35 = vld [vmem:[#allocation24 + $0x1f8] sm:$0xff] }
 0x91d   :  { %v2098_v49 = vld [vmem:[#allocation24 + $0xe8] sm:$0xff] }
 0x91e   :  { %3803 = vmatpush1.bf16.msra.mxu0 %v3802_v56  ;;  %v3842_v56 = vpack.c.bf16 %v1871_v55, %v1867_v52  ;;  %3779 = vmatpush1.bf16.msra.mxu1 %v3778_v54  ;;  %v2096_v52 = vld [vmem:[#allocation24 + $0xd8] sm:$0xff]  ;;  %v3858_v55 = vpack.c.bf16 %v2089_v41, %v2085_v39  ;;  %v3860_v59 = vpack.c.bf16 %v2098_v49, %v2094_v46  ;;  %v2129_v39 = vld [vmem:[#allocation24 + $0x1e0] sm:$0xff]  ;;  %v2138_v46 = vld [vmem:[#allocation24 + $0x228] sm:$0xff] }
 0x91f   :  { %3805 = vmatprep.subr.bf16.mxu0 %v3804_v57  ;;  %v1874_v57 = vld [vmem:[#allocation21 + $0x3c8] sm:$0xff]  ;;  %v2100_v54 = vld [vmem:[#allocation24 + $0xf8] sm:$0xff] }
 0x920   :  { %v3780_v13 = vpack.c.bf16 %v1878_v58, %v1874_v57  ;;  %v2093_v57 = vld [vmem:[#allocation24 + $0xc0] sm:$0xff]  ;;  %v2136_v49 = vld [vmem:[#allocation24 + $0x218] sm:$0xff] }
 0x921   :  { %v2097_v58 = vld [vmem:[#allocation24 + $0xe0] sm:$0xff] }
 0x922   :  { %3807 = vmatpush1.bf16.msra.mxu0 %v3806_v62  ;;  %v1873_v62 = vld [vmem:[#allocation21 + $0x3c0] sm:$0xff]  ;;  %3781 = vmatprep.subr.bf16.mxu1 %v3780_v13  ;;  %v3988_v13 = vpack.c.bf16 %v2100_v54, %v2096_v52 }
 0x923   :  { %3809 = vmatprep.subr.bf16.mxu0 %v3808_v14  ;;  %v1877_v14 = vld [vmem:[#allocation21 + $0x3e0] sm:$0xff] }
 0x924   :  { %v3782_v63 = vpack.c.bf16 %v1877_v14, %v1873_v62  ;;  %v2099_v62 = vld [vmem:[#allocation24 + $0xf0] sm:$0xff]  ;;  %v2102_v14 = vld [vmem:[#allocation24 + $0x108] sm:$0xff]  ;;  %v2140_v52 = vld [vmem:[#allocation24 + $0x238] sm:$0xff] }
 0x926   :  { %3811 = vmatpush1.bf16.msra.mxu0 %v3810_v7  ;;  %v3846_v7 = vpack.c.bf16 %v1879_v5, %v1875_v1  ;;  %3783 = vmatpush1.bf16.msra.mxu1 %v3782_v63  ;;  %v2104_v63 = vld [vmem:[#allocation24 + $0x118] sm:$0xff]  ;;  %v3862_v5 = vpack.c.bf16 %v2097_v58, %v2093_v57  ;;  %v2137_v57 = vld [vmem:[#allocation24 + $0x220] sm:$0xff] }
 0x927   :  { %3813 = vmatprep.subr.bf16.mxu0 %v3812_v8  ;;  %v2070_v8 = vld [vmem:[#allocation24 + $0x8] sm:$0xff]  ;;  %v2108_v1 = vld [vmem:[#allocation24 + $0x138] sm:$0xff] }
 0x928   :  { %v3848_v18 = vpack.c.bf16 %v2074_v9, %v2070_v8  ;;  %v2101_v8 = vld [vmem:[#allocation24 + $0x100] sm:$0xff] }
 0x929   :  { %v2105_v9 = vld [vmem:[#allocation24 + $0x120] sm:$0xff] }
 0x92a   :  { %3815 = vmatpush1.bf16.msra.mxu0 %v3814_v12  ;;  %v3976_v12 = vpack.c.bf16 %v2076_v11, %v2072_v10  ;;  %3849 = vmatprep.subr.bf16.mxu1 %v3848_v18  ;;  %v3992_v18 = vpack.c.bf16 %v2108_v1, %v2104_v63  ;;  %v2103_v11 = vld [vmem:[#allocation24 + $0x110] sm:$0xff]  ;;  %v2148_v63 = vld [vmem:[#allocation24 + $0x278] sm:$0xff] }
 0x92b   :  { %3817 = vmatprep.subr.bf16.mxu0 %v3816_v51  ;;  %v1737_v51 = vld [vmem:[#allocation20] sm:$0x3] }
 0x92c   :  { %v1742_v15 = vrot.slane %v1737_v51, %v4981_v2  ;;  %v1746_v61 = vrot.slane %v1737_v51, %v4985_v4  ;;  %v2110_v51 = vld [vmem:[#allocation24 + $0x148] sm:$0xff] }
 0x92e   :  { %3819 = vmatpush1.bf16.msra.mxu0 %v3818_v19  ;;  %v2073_v19 = vld [vmem:[#allocation24 + $0x20] sm:$0xff] }
 0x92f   :  { %3821 = vmatprep.subr.bf16.mxu0 %v3820_v16  ;;  %v3850_v26 = vpack.c.bf16 %v2073_v19, %v2069_v50  ;;  %v3866_v50 = vpack.c.bf16 %v2105_v9, %v2101_v8  ;;  %v2145_v8 = vld [vmem:[#allocation24 + $0x260] sm:$0xff] }
 0x932   :  { %3823 = vmatpush1.bf16.msra.mxu0 %v3822_v23 }
 0x933   :  { %3825 = vmatprep.subr.bf16.mxu0 %v3824_v47  ;;  %v2082_v47 = vld [vmem:[#allocation24 + $0x68] sm:$0xff] }
 0x934   :  { %v3852_v29 = vpack.c.bf16 %v2082_v47, %v2078_v3  ;;  %v2111_v3 = vld [vmem:[#allocation24 + $0x150] sm:$0xff]  ;;  %v2118_v47 = vld [vmem:[#allocation24 + $0x188] sm:$0xff] }
 0x936   :  { %3827 = vmatpush1.bf16.msra.mxu0 %v3826_v53  ;;  %v3978_v53 = vpack.c.bf16 %v2075_v22, %v2071_v48 }
 0x937   :  { %3829 = vmatprep.subr.bf16.mxu0 %v3828_v40  ;;  %v2077_v40 = vld [vmem:[#allocation24 + $0x40] sm:$0xff] }
 0x93a   :  { %3831 = vmatpush1.bf16.msra.mxu0 %v3830_v31  ;;  %v2079_v31 = vld [vmem:[#allocation24 + $0x50] sm:$0xff] }
 0x93b   :  { %3833 = vmatprep.subr.bf16.mxu0 %v3832_v32  ;;  %v2083_v32 = vld [vmem:[#allocation24 + $0x70] sm:$0xff] }
 0x93e   :  { %3835 = vmatpush1.bf16.msra.mxu0 %v3834_v37  ;;  %v3854_v37 = vpack.c.bf16 %v2081_v27, %v2077_v40  ;;  %v2117_v40 = vld [vmem:[#allocation24 + $0x180] sm:$0xff] }
 0x93f   :  { %3837 = vmatprep.subr.bf16.mxu0 %v3836_v38  ;;  %v3982_v38 = vpack.c.bf16 %v2083_v32, %v2079_v31  ;;  %v2121_v27 = vld [vmem:[#allocation24 + $0x1a0] sm:$0xff]  ;;  %v2123_v31 = vld [vmem:[#allocation24 + $0x1b0] sm:$0xff]  ;;  %v2126_v32 = vld [vmem:[#allocation24 + $0x1c8] sm:$0xff] }
 0x940   :  { %v3874_v36 = vpack.c.bf16 %v2121_v27, %v2117_v40  ;;  %v3876_v41 = vpack.c.bf16 %v2130_v33, %v2126_v32  ;;  %v2157_v40 = vld [vmem:[#allocation24 + $0x2c0] sm:$0xff]  ;;  %v2166_v33 = vld [vmem:[#allocation24 + $0x308] sm:$0xff] }
 0x941   :  { %v2161_v27 = vld [vmem:[#allocation24 + $0x2e0] sm:$0xff] }
 0x942   :  { %3839 = vmatpush1.bf16.msra.mxu0 %v3838_v44  ;;  %v2087_v44 = vld [vmem:[#allocation24 + $0x90] sm:$0xff] }
 0x943   :  { %3841 = vmatprep.subr.bf16.mxu0 %v3840_v45  ;;  %v2091_v45 = vld [vmem:[#allocation24 + $0xb0] sm:$0xff] }
 0x946   :  { %3843 = vmatpush1.bf16.msra.mxu0 %v3842_v56  ;;  %v3986_v56 = vpack.c.bf16 %v2091_v45, %v2087_v44  ;;  %v2131_v44 = vld [vmem:[#allocation24 + $0x1f0] sm:$0xff]  ;;  %v2134_v45 = vld [vmem:[#allocation24 + $0x208] sm:$0xff] }
 0x947   :  { %3845 = vmatprep.subr.bf16.mxu0 %v3844_v6  ;;  %v2106_v6 = vld [vmem:[#allocation24 + $0x128] sm:$0xff]  ;;  %v3880_v58 = vpack.c.bf16 %v2138_v46, %v2134_v45 }
 0x948   :  { %v3864_v10 = vpack.c.bf16 %v2106_v6, %v2102_v14  ;;  %v2146_v14 = vld [vmem:[#allocation24 + $0x268] sm:$0xff]  ;;  %v2144_v6 = vld [vmem:[#allocation24 + $0x258] sm:$0xff] }
 0x949   :  { %v2174_v46 = vld [vmem:[#allocation24 + $0x348] sm:$0xff] }
 0x94a   :  { %3847 = vmatpush1.bf16.msra.mxu0 %v3846_v7  ;;  %v3990_v7 = vpack.c.bf16 %v2099_v62, %v2095_v60  ;;  %v2139_v60 = vld [vmem:[#allocation24 + $0x230] sm:$0xff]  ;;  %v2142_v62 = vld [vmem:[#allocation24 + $0x248] sm:$0xff] }
 0x94b   :  { %3977 = vmatprep.subr.bf16.mxu0 %v3976_v12  ;;  %v2107_v12 = vld [vmem:[#allocation24 + $0x130] sm:$0xff]  ;;  %v3884_v9 = vpack.c.bf16 %v2146_v14, %v2142_v62  ;;  %v2182_v62 = vld [vmem:[#allocation24 + $0x388] sm:$0xff] }
 0x94c   :  { %v3994_v19 = vpack.c.bf16 %v2107_v12, %v2103_v11  ;;  %v2147_v11 = vld [vmem:[#allocation24 + $0x270] sm:$0xff]  ;;  %v2150_v12 = vld [vmem:[#allocation24 + $0x288] sm:$0xff] }
 0x9e0   :  { %v1730_v17 = vpop.f32.mrb[8].mxu0 }
 0x9e1   :  { %v1749_v16 = vadd.f32 %v1742_v15, %v1730_v17  ;;  %v1732_v21 = vpop.f32.mrb[9].mxu0  ;;  %v2114_v15 = vld [vmem:[#allocation24 + $0x168] sm:$0xff]  ;;  %v2116_v17 = vld [vmem:[#allocation24 + $0x178] sm:$0xff] }
 0x9e2   :  { %v1750_v23 = vadd.f32 %v1746_v61, %v1732_v21  ;;  %v2112_v61 = vld [vmem:[#allocation24 + $0x158] sm:$0xff]  ;;  %v2113_v21 = vld [vmem:[#allocation24 + $0x160] sm:$0xff]  ;;  %v3868_v48 = vpack.c.bf16 %v2114_v15, %v2110_v51  ;;  %v2154_v51 = vld [vmem:[#allocation24 + $0x2a8] sm:$0xff] }
 0x9e3   :  { %v1751_v28 = vmax.f32 %v1749_v16, 0.0  ;;  %v2109_v16 = vld [vmem:[#allocation24 + $0x140] sm:$0xff]  ;;  %v3996_v22 = vpack.c.bf16 %v2116_v17, %v2112_v61  ;;  %v2152_v15 = vld [vmem:[#allocation24 + $0x298] sm:$0xff] }
 0x9e4   :  { %v1752_v25 = vmax.f32 %v1750_v23, 0.0  ;;  %v2115_v23 = vld [vmem:[#allocation24 + $0x170] sm:$0xff]  ;;  %v2156_v61 = vld [vmem:[#allocation24 + $0x2b8] sm:$0xff] }
 0x9e6   :  { %1967 = vmatprep.mubr.f32.mxu1 %v1752_v25  ;;  %2038 = vmatprep.mubr.f32.mxu0 %v1752_v25  ;;  %v2124_v25 = vld [vmem:[#allocation24 + $0x1b8] sm:$0xff] }
 0x9e7   :  { %1968 = vmatmul.mubr.f32.vlgmr.msra.gmra.mrb[28].mxu1 %v1751_v28  ;;  %2039 = vmatmul.mubr.f32.vlgmr.msra.gmra.mrb[10].mxu0 %v1751_v28  ;;  %v3872_v28 = vpack.c.bf16 %v2122_v24, %v2118_v47  ;;  %v2158_v24 = vld [vmem:[#allocation24 + $0x2c8] sm:$0xff] }
 0x9e8   :  { %3851 = vmatpush1.bf16.msra.mxu1 %v3850_v26  ;;  %3979 = vmatpush1.bf16.msra.mxu0 %v3978_v53  ;;  %v3870_v26 = vpack.c.bf16 %v2113_v21, %v2109_v16  ;;  %v3998_v53 = vpack.c.bf16 %v2115_v23, %v2111_v3  ;;  %v3888_v16 = vpack.c.bf16 %v2154_v51, %v2150_v12  ;;  %v2155_v3 = vld [vmem:[#allocation24 + $0x2b0] sm:$0xff]  ;;  %v2190_v12 = vld [vmem:[#allocation24 + $0x3c8] sm:$0xff] }
 0x9e9   :  { %3853 = vmatprep.subr.bf16.mxu1 %v3852_v29  ;;  %3981 = vmatprep.subr.bf16.mxu0 %v3980_v30  ;;  %v4000_v29 = vpack.c.bf16 %v2124_v25, %v2120_v20  ;;  %v2119_v30 = vld [vmem:[#allocation24 + $0x190] sm:$0xff]  ;;  %v4016_v21 = vpack.c.bf16 %v2156_v61, %v2152_v15  ;;  %v2162_v20 = vld [vmem:[#allocation24 + $0x2e8] sm:$0xff]  ;;  %v2160_v25 = vld [vmem:[#allocation24 + $0x2d8] sm:$0xff] }
 0x9ea   :  { %v2194_v51 = vld [vmem:[#allocation24 + $0x3e8] sm:$0xff] }
 0x9eb   :  { %v3908_v61 = vpack.c.bf16 %v2194_v51, %v2190_v12  ;;  %v2218_v51 = vld [vmem:[#allocation24 + $0x4a8] sm:$0xff] }
 0x9ec   :  { %3855 = vmatpush1.bf16.msra.mxu1 %v3854_v37  ;;  %3983 = vmatpush1.bf16.msra.mxu0 %v3982_v38  ;;  %v4002_v37 = vpack.c.bf16 %v2123_v31, %v2119_v30  ;;  %v2125_v38 = vld [vmem:[#allocation24 + $0x1c0] sm:$0xff]  ;;  %v2159_v30 = vld [vmem:[#allocation24 + $0x2d0] sm:$0xff] }
 0x9ed   :  { %3857 = vmatprep.subr.bf16.mxu1 %v3856_v42  ;;  %3985 = vmatprep.subr.bf16.mxu0 %v3984_v43  ;;  %v4004_v42 = vpack.c.bf16 %v2132_v35, %v2128_v34  ;;  %v2127_v43 = vld [vmem:[#allocation24 + $0x1d0] sm:$0xff]  ;;  %v3878_v54 = vpack.c.bf16 %v2129_v39, %v2125_v38  ;;  %v2170_v34 = vld [vmem:[#allocation24 + $0x328] sm:$0xff]  ;;  %v2168_v35 = vld [vmem:[#allocation24 + $0x318] sm:$0xff] }
 0x9ee   :  { %v2163_v31 = vld [vmem:[#allocation24 + $0x2f0] sm:$0xff]  ;;  %v2165_v38 = vld [vmem:[#allocation24 + $0x300] sm:$0xff] }
 0x9ef   :  { %v4022_v32 = vpack.c.bf16 %v2163_v31, %v2159_v30  ;;  %v2169_v39 = vld [vmem:[#allocation24 + $0x320] sm:$0xff] }
 0x9f0   :  { %3859 = vmatpush1.bf16.msra.mxu1 %v3858_v55  ;;  %3987 = vmatpush1.bf16.msra.mxu0 %v3986_v56  ;;  %v4006_v55 = vpack.c.bf16 %v2131_v44, %v2127_v43  ;;  %v2133_v56 = vld [vmem:[#allocation24 + $0x200] sm:$0xff]  ;;  %v2167_v43 = vld [vmem:[#allocation24 + $0x310] sm:$0xff] }
 0x9f1   :  { %3861 = vmatprep.subr.bf16.mxu1 %v3860_v59  ;;  %3989 = vmatprep.subr.bf16.mxu0 %v3988_v13  ;;  %v4008_v59 = vpack.c.bf16 %v2140_v52, %v2136_v49  ;;  %v2135_v13 = vld [vmem:[#allocation24 + $0x210] sm:$0xff]  ;;  %v3882_v1 = vpack.c.bf16 %v2137_v57, %v2133_v56  ;;  %v2178_v49 = vld [vmem:[#allocation24 + $0x368] sm:$0xff]  ;;  %v2176_v52 = vld [vmem:[#allocation24 + $0x358] sm:$0xff] }
 0x9f2   :  { %v2171_v44 = vld [vmem:[#allocation24 + $0x330] sm:$0xff]  ;;  %v2173_v56 = vld [vmem:[#allocation24 + $0x340] sm:$0xff] }
 0x9f3   :  { %v4026_v45 = vpack.c.bf16 %v2171_v44, %v2167_v43  ;;  %v2177_v57 = vld [vmem:[#allocation24 + $0x360] sm:$0xff] }
 0x9f4   :  { %3863 = vmatpush1.bf16.msra.mxu1 %v3862_v5  ;;  %3991 = vmatpush1.bf16.msra.mxu0 %v3990_v7  ;;  %v4010_v5 = vpack.c.bf16 %v2139_v60, %v2135_v13  ;;  %v2141_v7 = vld [vmem:[#allocation24 + $0x240] sm:$0xff]  ;;  %v2175_v13 = vld [vmem:[#allocation24 + $0x350] sm:$0xff] }
 0x9f5   :  { %3865 = vmatprep.subr.bf16.mxu1 %v3864_v10  ;;  %3993 = vmatprep.subr.bf16.mxu0 %v3992_v18  ;;  %v4012_v10 = vpack.c.bf16 %v2148_v63, %v2144_v6  ;;  %v2143_v18 = vld [vmem:[#allocation24 + $0x250] sm:$0xff]  ;;  %v3886_v17 = vpack.c.bf16 %v2145_v8, %v2141_v7  ;;  %v2186_v6 = vld [vmem:[#allocation24 + $0x3a8] sm:$0xff]  ;;  %v2184_v63 = vld [vmem:[#allocation24 + $0x398] sm:$0xff] }
 0x9f6   :  { %v2179_v60 = vld [vmem:[#allocation24 + $0x370] sm:$0xff]  ;;  %v2181_v8 = vld [vmem:[#allocation24 + $0x380] sm:$0xff] }
 0x9f7   :  { %v4030_v14 = vpack.c.bf16 %v2179_v60, %v2175_v13  ;;  %v2210_v13 = vld [vmem:[#allocation24 + $0x468] sm:$0xff]  ;;  %v2208_v60 = vld [vmem:[#allocation24 + $0x458] sm:$0xff] }
 0x9f8   :  { %3867 = vmatpush1.bf16.msra.mxu1 %v3866_v50  ;;  %3995 = vmatpush1.bf16.msra.mxu0 %v3994_v19  ;;  %v4014_v50 = vpack.c.bf16 %v2147_v11, %v2143_v18  ;;  %v2149_v19 = vld [vmem:[#allocation24 + $0x280] sm:$0xff]  ;;  %v2187_v11 = vld [vmem:[#allocation24 + $0x3b0] sm:$0xff] }
 0x9f9   :  { %3869 = vmatprep.subr.bf16.mxu1 %v3868_v48  ;;  %3997 = vmatprep.subr.bf16.mxu0 %v3996_v22  ;;  %v2153_v48 = vld [vmem:[#allocation24 + $0x2a0] sm:$0xff]  ;;  %v2151_v22 = vld [vmem:[#allocation24 + $0x290] sm:$0xff] }
 0x9fa   :  { %v3890_v23 = vpack.c.bf16 %v2153_v48, %v2149_v19  ;;  %v4018_v47 = vpack.c.bf16 %v2155_v3, %v2151_v22  ;;  %v2189_v19 = vld [vmem:[#allocation24 + $0x3c0] sm:$0xff]  ;;  %v2191_v48 = vld [vmem:[#allocation24 + $0x3d0] sm:$0xff] }
 0x9fb   :  { %v2195_v22 = vld [vmem:[#allocation24 + $0x3f0] sm:$0xff] }
 0x9fc   :  { %3871 = vmatpush1.bf16.msra.mxu1 %v3870_v26  ;;  %3999 = vmatpush1.bf16.msra.mxu0 %v3998_v53  ;;  %v3892_v26 = vpack.c.bf16 %v2162_v20, %v2158_v24  ;;  %v2164_v53 = vld [vmem:[#allocation24 + $0x2f8] sm:$0xff]  ;;  %v2202_v24 = vld [vmem:[#allocation24 + $0x428] sm:$0xff] }
 0x9fd   :  { %3873 = vmatprep.subr.bf16.mxu1 %v3872_v28  ;;  %4001 = vmatprep.subr.bf16.mxu0 %v4000_v29  ;;  %v4020_v28 = vpack.c.bf16 %v2164_v53, %v2160_v25  ;;  %v3894_v29 = vpack.c.bf16 %v2161_v27, %v2157_v40  ;;  %v2200_v20 = vld [vmem:[#allocation24 + $0x418] sm:$0xff]  ;;  %v1897_v27 = vsub.s32 3, %v4978_v0 }
 0x9fe   :  { %v5053_v40 = vld [vmem:[#allocation23] sm:$0xf] }
 0x9ff   :  { %v1898_v30 = vrot.slane %v5053_v40, %v1897_v27 }
 0xa00   :  { %3875 = vmatpush1.bf16.msra.mxu1 %v3874_v36  ;;  %4003 = vmatpush1.bf16.msra.mxu0 %v4002_v37  ;;  %v3896_v36 = vpack.c.bf16 %v2170_v34, %v2166_v33  ;;  %v2172_v37 = vld [vmem:[#allocation24 + $0x338] sm:$0xff] }
 0xa01   :  { %3877 = vmatprep.subr.bf16.mxu1 %v3876_v41  ;;  %4005 = vmatprep.subr.bf16.mxu0 %v4004_v42  ;;  %v4024_v41 = vpack.c.bf16 %v2172_v37, %v2168_v35  ;;  %v3898_v42 = vpack.c.bf16 %v2169_v39, %v2165_v38 }
 0xa04   :  { %3879 = vmatpush1.bf16.msra.mxu1 %v3878_v54  ;;  %4007 = vmatpush1.bf16.msra.mxu0 %v4006_v55  ;;  %v3900_v54 = vpack.c.bf16 %v2178_v49, %v2174_v46  ;;  %v2180_v55 = vld [vmem:[#allocation24 + $0x378] sm:$0xff]  ;;  %v2197_v46 = vld [vmem:[#allocation24 + $0x400] sm:$0xff] }
 0xa05   :  { %3881 = vmatprep.subr.bf16.mxu1 %v3880_v58  ;;  %4009 = vmatprep.subr.bf16.mxu0 %v4008_v59  ;;  %v4028_v58 = vpack.c.bf16 %v2180_v55, %v2176_v52  ;;  %v3902_v59 = vpack.c.bf16 %v2177_v57, %v2173_v56  ;;  %v2201_v49 = vld [vmem:[#allocation24 + $0x420] sm:$0xff]  ;;  %v2199_v52 = vld [vmem:[#allocation24 + $0x410] sm:$0xff]  ;;  %v2206_v57 = vld [vmem:[#allocation24 + $0x448] sm:$0xff] }
 0xa08   :  { %3883 = vmatpush1.bf16.msra.mxu1 %v3882_v1  ;;  %4011 = vmatpush1.bf16.msra.mxu0 %v4010_v5  ;;  %v2188_v1 = vld [vmem:[#allocation24 + $0x3b8] sm:$0xff]  ;;  %v3904_v5 = vpack.c.bf16 %v2186_v6, %v2182_v62 }
 0xa09   :  { %3885 = vmatprep.subr.bf16.mxu1 %v3884_v9  ;;  %4013 = vmatprep.subr.bf16.mxu0 %v4012_v10  ;;  %v4032_v7 = vpack.c.bf16 %v2188_v1, %v2184_v63  ;;  %v2185_v9 = vld [vmem:[#allocation24 + $0x3a0] sm:$0xff]  ;;  %v2183_v10 = vld [vmem:[#allocation24 + $0x390] sm:$0xff]  ;;  %v2212_v62 = vld [vmem:[#allocation24 + $0x478] sm:$0xff] }
 0xa0a   :  { %v3906_v18 = vpack.c.bf16 %v2185_v9, %v2181_v8  ;;  %v4034_v15 = vpack.c.bf16 %v2187_v11, %v2183_v10  ;;  %v2205_v1 = vld [vmem:[#allocation24 + $0x440] sm:$0xff]  ;;  %v2207_v8 = vld [vmem:[#allocation24 + $0x450] sm:$0xff]  ;;  %v2214_v10 = vld [vmem:[#allocation24 + $0x488] sm:$0xff]  ;;  %v3916_v11 = vpack.c.bf16 %v2210_v13, %v2206_v57  ;;  %v4044_v12 = vpack.c.bf16 %v2212_v62, %v2208_v60 }
 0xa0b   :  { %v2211_v9 = vld [vmem:[#allocation24 + $0x470] sm:$0xff]  ;;  %v2241_v13 = vld [vmem:[#allocation24 + $0x560] sm:$0xff] }
 0xa0c   :  { %3887 = vmatpush1.bf16.msra.mxu1 %v3886_v17  ;;  %4015 = vmatpush1.bf16.msra.mxu0 %v4014_v50  ;;  %v2192_v17 = vld [vmem:[#allocation24 + $0x3d8] sm:$0xff] }
 0xa0d   :  { %3889 = vmatprep.subr.bf16.mxu1 %v3888_v16  ;;  %4017 = vmatprep.subr.bf16.mxu0 %v4016_v21  ;;  %v2196_v50 = vld [vmem:[#allocation24 + $0x3f8] sm:$0xff]  ;;  %v2193_v21 = vld [vmem:[#allocation24 + $0x3e0] sm:$0xff] }
 0xa0e   :  { %v4036_v16 = vpack.c.bf16 %v2196_v50, %v2192_v17  ;;  %v3910_v3 = vpack.c.bf16 %v2193_v21, %v2189_v19  ;;  %v4046_v19 = vpack.c.bf16 %v2211_v9, %v2207_v8  ;;  %v2217_v21 = vld [vmem:[#allocation24 + $0x4a0] sm:$0xff] }
 0xa10   :  { %3891 = vmatpush1.bf16.msra.mxu1 %v3890_v23  ;;  %4019 = vmatpush1.bf16.msra.mxu0 %v4018_v47  ;;  %v4038_v23 = vpack.c.bf16 %v2195_v22, %v2191_v48  ;;  %v2198_v47 = vld [vmem:[#allocation24 + $0x408] sm:$0xff]  ;;  %v3920_v48 = vpack.c.bf16 %v2218_v51, %v2214_v10  ;;  %v2245_v10 = vld [vmem:[#allocation24 + $0x580] sm:$0xff]  ;;  %v2247_v51 = vld [vmem:[#allocation24 + $0x590] sm:$0xff] }
 0xa11   :  { %3893 = vmatprep.subr.bf16.mxu1 %v3892_v26  ;;  %4021 = vmatprep.subr.bf16.mxu0 %v4020_v28  ;;  %v3912_v25 = vpack.c.bf16 %v2202_v24, %v2198_v47  ;;  %v2204_v26 = vld [vmem:[#allocation24 + $0x438] sm:$0xff]  ;;  %v1886_v28 = vrot.slane %v5053_v40, %v4981_v2  ;;  %v2222_v47 = vld [vmem:[#allocation24 + $0x4c8] sm:$0xff] }
 0xa12   :  { %v4040_v53 = vpack.c.bf16 %v2204_v26, %v2200_v20  ;;  %v2226_v24 = vld [vmem:[#allocation24 + $0x4e8] sm:$0xff]  ;;  %v2224_v20 = vld [vmem:[#allocation24 + $0x4d8] sm:$0xff] }
 0xa14   :  { %3895 = vmatpush1.bf16.msra.mxu1 %v3894_v29  ;;  %4023 = vmatpush1.bf16.msra.mxu0 %v4022_v32  ;;  %v1890_v29 = vrot.slane %v5053_v40, %v4985_v4 }
 0xa15   :  { %3897 = vmatprep.subr.bf16.mxu1 %v3896_v36  ;;  %4025 = vmatprep.subr.bf16.mxu0 %v4024_v41 }
 0xa18   :  { %3899 = vmatpush1.bf16.msra.mxu1 %v3898_v42  ;;  %4027 = vmatpush1.bf16.msra.mxu0 %v4026_v45 }
 0xa19   :  { %3901 = vmatprep.subr.bf16.mxu1 %v3900_v54  ;;  %4029 = vmatprep.subr.bf16.mxu0 %v4028_v58  ;;  %v2203_v54 = vld [vmem:[#allocation24 + $0x430] sm:$0xff] }
 0xa1a   :  { %v4042_v6 = vpack.c.bf16 %v2203_v54, %v2199_v52  ;;  %v2238_v52 = vld [vmem:[#allocation24 + $0x548] sm:$0xff] }
 0xa1b   :  { %v2242_v54 = vld [vmem:[#allocation24 + $0x568] sm:$0xff] }
 0xa1c   :  { %3903 = vmatpush1.bf16.msra.mxu1 %v3902_v59  ;;  %4031 = vmatpush1.bf16.msra.mxu0 %v4030_v14  ;;  %v3914_v14 = vpack.c.bf16 %v2201_v49, %v2197_v46  ;;  %v2231_v46 = vld [vmem:[#allocation24 + $0x510] sm:$0xff]  ;;  %v3932_v60 = vpack.c.bf16 %v2242_v54, %v2238_v52 }
 0xa1d   :  { %3905 = vmatprep.subr.bf16.mxu1 %v3904_v5  ;;  %4033 = vmatprep.subr.bf16.mxu0 %v4032_v7  ;;  %v2209_v5 = vld [vmem:[#allocation24 + $0x460] sm:$0xff]  ;;  %v2235_v49 = vld [vmem:[#allocation24 + $0x530] sm:$0xff] }
 0xa1e   :  { %v3918_v50 = vpack.c.bf16 %v2209_v5, %v2205_v1  ;;  %v2250_v1 = vld [vmem:[#allocation24 + $0x5a8] sm:$0xff]  ;;  %v2248_v5 = vld [vmem:[#allocation24 + $0x598] sm:$0xff] }
 0xa20   :  { %3907 = vmatpush1.bf16.msra.mxu1 %v3906_v18  ;;  %4035 = vmatpush1.bf16.msra.mxu0 %v4034_v15  ;;  %v2216_v15 = vld [vmem:[#allocation24 + $0x498] sm:$0xff] }
 0xa21   :  { %3909 = vmatprep.subr.bf16.mxu1 %v3908_v61  ;;  %4037 = vmatprep.subr.bf16.mxu0 %v4036_v16  ;;  %v2220_v61 = vld [vmem:[#allocation24 + $0x4b8] sm:$0xff]  ;;  %v2213_v16 = vld [vmem:[#allocation24 + $0x480] sm:$0xff] }
 0xa22   :  { %v4048_v22 = vpack.c.bf16 %v2220_v61, %v2216_v15  ;;  %v3922_v26 = vpack.c.bf16 %v2217_v21, %v2213_v16  ;;  %v2251_v15 = vld [vmem:[#allocation24 + $0x5b0] sm:$0xff]  ;;  %v2254_v61 = vld [vmem:[#allocation24 + $0x5c8] sm:$0xff] }
 0xa23   :  { %v4066_v21 = vpack.c.bf16 %v2251_v15, %v2247_v51  ;;  %v2285_v51 = vld [vmem:[#allocation24 + $0x6c0] sm:$0xff] }
 0xa24   :  { %3911 = vmatpush1.bf16.msra.mxu1 %v3910_v3  ;;  %4039 = vmatpush1.bf16.msra.mxu0 %v4038_v23  ;;  %v2215_v3 = vld [vmem:[#allocation24 + $0x490] sm:$0xff]  ;;  %v2289_v15 = vld [vmem:[#allocation24 + $0x6e0] sm:$0xff] }
 0xa25   :  { %3913 = vmatprep.subr.bf16.mxu1 %v3912_v25  ;;  %4041 = vmatprep.subr.bf16.mxu0 %v4040_v53  ;;  %v2219_v23 = vld [vmem:[#allocation24 + $0x4b0] sm:$0xff]  ;;  %v2228_v25 = vld [vmem:[#allocation24 + $0x4f8] sm:$0xff] }
 0xa26   :  { %v4050_v53 = vpack.c.bf16 %v2219_v23, %v2215_v3 }
 0xaba   :  { %v1969_v31 = vpop.f32.mrb[28].mxu1  ;;  %v5063_v32 = vpop.f32.mrb[10].mxu0 }
 0xabb   :  { %v1970_v33 = vadd.f32 %v1969_v31, %v1886_v28  ;;  %v1971_v34 = vpop.f32.mrb[29].mxu1  ;;  %v2042_v35 = vpop.f32.mrb[11].mxu0  ;;  %v2221_v28 = vld [vmem:[#allocation24 + $0x4c0] sm:$0xff]  ;;  %v4052_v31 = vpack.c.bf16 %v2228_v25, %v2224_v20  ;;  %v2262_v20 = vld [vmem:[#allocation24 + $0x608] sm:$0xff] }
 0xabc   :  { %v1972_v36 = vadd.f32 %v1971_v34, %v1890_v29  ;;  %v2043_v37 = vadd.f32 %v2042_v35, %v1898_v30  ;;  %v2225_v29 = vld [vmem:[#allocation24 + $0x4e0] sm:$0xff]  ;;  %v3924_v30 = vpack.c.bf16 %v2226_v24, %v2222_v47  ;;  %v2227_v34 = vld [vmem:[#allocation24 + $0x4f0] sm:$0xff]  ;;  %v2230_v35 = vld [vmem:[#allocation24 + $0x508] sm:$0xff] }
 0xabd   :  { %v2049_v38 = vmin.f32 %v1970_v33, 0.0  ;;  %vm2045_vm3 = vcmp.gt.f32.partialorder %v1970_v33, 0.0  ;;  %v2255_v47 = vld [vmem:[#allocation24 + $0x5d0] sm:$0xff]  ;;  %v2266_v25 = vld [vmem:[#allocation24 + $0x628] sm:$0xff] }
 0xabe   :  { %v2050_v39 = vmin.f32 %v1972_v36, 0.0  ;;  %v2052_v41 = vmin.f32 %v2043_v37, 0.0  ;;  %vm2046_vm2 = vcmp.gt.f32.partialorder %v1972_v36, 0.0  ;;  %vm2048_vm4 = vcmp.gt.f32.partialorder %v2043_v37, 0.0  ;;  %v2259_v24 = vld [vmem:[#allocation24 + $0x5f0] sm:$0xff] }
 0xabf   :  { %v2053_v42 = vmul.f32 1.442695, %v2049_v38  ;;  %v2236_v38 = vld [vmem:[#allocation24 + $0x538] sm:$0xff] }
 0xac0   :  { %v2055_v43 = vmul.f32 1.442695, %v2050_v39  ;;  %v2059_v44 = vmul.f32 1.442695, %v2052_v41  ;;  %v3926_v39 = vpack.c.bf16 %v2225_v29, %v2221_v28  ;;  %v4070_v29 = vpack.c.bf16 %v2259_v24, %v2255_v47  ;;  %v2293_v47 = vld [vmem:[#allocation24 + $0x700] sm:$0xff] }
 0xac1   :  { %4205 = vpow2.f32 %v2053_v42  ;;  %v2229_v42 = vld [vmem:[#allocation24 + $0x500] sm:$0xff] }
 0xac2   :  { %4207 = vpow2.f32 %v2055_v43  ;;  %v2233_v43 = vld [vmem:[#allocation24 + $0x520] sm:$0xff] }
 0xac3   :  { %4209 = vpow2.f32 %v2059_v44  ;;  %v3930_v57 = vpack.c.bf16 %v2233_v43, %v2229_v42  ;;  %v2276_v42 = vld [vmem:[#allocation24 + $0x678] sm:$0xff]  ;;  %v2297_v24 = vld [vmem:[#allocation24 + $0x720] sm:$0xff] }
 0xacb   :  { %v4206_v45 = vpop.eup %4205 }
 0xacc   :  { %v4208_v55 = vpop.eup %4207  ;;  %v2915_v56 = vadd.f32 -1.0, %v4206_v45 }
 0xacd   :  { %v4210_v58 = vpop.eup %4209  ;;  %v2916_v59 = vadd.f32 -1.0, %v4208_v55  ;;  %v2240_v55 = vld [vmem:[#allocation24 + $0x558] sm:$0xff] }
 0xace   :  { %v2918_v63 = vadd.f32 -1.0, %v4210_v58  ;;  %v2065_v18 = vsel %vm2045_vm3, %v1970_v33, %v2915_v56  ;;  %v2223_v33 = vld [vmem:[#allocation24 + $0x4d0] sm:$0xff]  ;;  %v2244_v56 = vld [vmem:[#allocation24 + $0x578] sm:$0xff]  ;;  %v4058_v58 = vpack.c.bf16 %v2235_v49, %v2231_v46  ;;  %v2273_v46 = vld [vmem:[#allocation24 + $0x660] sm:$0xff] }
 0xacf   :  { %v2066_v7 = vsel %vm2046_vm2, %v1972_v36, %v2916_v59  ;;  %v2234_v36 = vld [vmem:[#allocation24 + $0x528] sm:$0xff]  ;;  %v4054_v41 = vpack.c.bf16 %v2227_v34, %v2223_v33  ;;  %v2237_v59 = vld [vmem:[#allocation24 + $0x540] sm:$0xff]  ;;  %v4060_v62 = vpack.c.bf16 %v2244_v56, %v2240_v55  ;;  %v1893_v33 = vsub.s32 2, %v4978_v0  ;;  %v2271_v55 = vld [vmem:[#allocation24 + $0x650] sm:$0xff] }
 0xad0   :  { %2411 = vmatprep.mubr.f32.mxu1 %v2066_v7  ;;  %2553 = vmatprep.mubr.f32.mxu0 %v2066_v7  ;;  %v2068_v17 = vsel %vm2048_vm4, %v2043_v37, %v2918_v63  ;;  %v2232_v37 = vld [vmem:[#allocation24 + $0x518] sm:$0xff]  ;;  %v3928_v44 = vpack.c.bf16 %v2234_v36, %v2230_v35  ;;  %v2246_v63 = vld [vmem:[#allocation24 + $0x588] sm:$0xff]  ;;  %v3934_v8 = vpack.c.bf16 %v2241_v13, %v2237_v59  ;;  %v2263_v36 = vld [vmem:[#allocation24 + $0x610] sm:$0xff] }
 0xad1   :  { %2412 = vmatmul.mubr.f32.vlgmr.msra.gmra.mrb[30].mxu1 %v2065_v18  ;;  %2554 = vmatmul.mubr.f32.vlgmr.msra.gmra.mrb[12].mxu0 %v2065_v18  ;;  %v4056_v45 = vpack.c.bf16 %v2236_v38, %v2232_v37  ;;  %v2252_v7 = vld [vmem:[#allocation24 + $0x5b8] sm:$0xff]  ;;  %v2249_v18 = vld [vmem:[#allocation24 + $0x5a0] sm:$0xff]  ;;  %v3944_v34 = vpack.c.bf16 %v2266_v25, %v2262_v20  ;;  %v2267_v37 = vld [vmem:[#allocation24 + $0x630] sm:$0xff]  ;;  %v1894_v49 = vrot.slane %v5053_v40, %v1893_v33 }
 0xad2   :  { %3915 = vmatpush1.bf16.msra.mxu1 %v3914_v14  ;;  %4043 = vmatpush1.bf16.msra.mxu0 %v4042_v6  ;;  %v2239_v14 = vld [vmem:[#allocation24 + $0x550] sm:$0xff]  ;;  %v3938_v16 = vpack.c.bf16 %v2249_v18, %v2245_v10  ;;  %v2270_v38 = vld [vmem:[#allocation24 + $0x648] sm:$0xff]  ;;  %v2280_v59 = vld [vmem:[#allocation24 + $0x698] sm:$0xff] }
 0xad3   :  { %2482 = vmatprep.mubr.f32.mxu1 %v2068_v17  ;;  %2624 = vmatprep.mubr.f32.mxu0 %v2068_v17  ;;  %v2243_v6 = vld [vmem:[#allocation24 + $0x570] sm:$0xff]  ;;  %v2258_v17 = vld [vmem:[#allocation24 + $0x5e8] sm:$0xff]  ;;  %v2284_v13 = vld [vmem:[#allocation24 + $0x6b8] sm:$0xff] }
 0xad4   :  { %3917 = vmatprep.subr.bf16.mxu1 %v3916_v11  ;;  %4045 = vmatprep.subr.bf16.mxu0 %v4044_v12  ;;  %v4062_v9 = vpack.c.bf16 %v2243_v6, %v2239_v14  ;;  %v3936_v11 = vpack.c.bf16 %v2250_v1, %v2246_v63  ;;  %v4064_v12 = vpack.c.bf16 %v2252_v7, %v2248_v5  ;;  %v2275_v56 = vld [vmem:[#allocation24 + $0x670] sm:$0xff]  ;;  %v2277_v14 = vld [vmem:[#allocation24 + $0x680] sm:$0xff]  ;;  %v2288_v10 = vld [vmem:[#allocation24 + $0x6d8] sm:$0xff] }
 0xad5   :  { %v3940_v3 = vpack.c.bf16 %v2258_v17, %v2254_v61  ;;  %v2281_v6 = vld [vmem:[#allocation24 + $0x6a0] sm:$0xff]  ;;  %v5070_v63 = vadd.f32 %v5063_v32, %v1894_v49  ;;  %v4080_v1 = vpack.c.bf16 %v2284_v13, %v2280_v59  ;;  %v2279_v5 = vld [vmem:[#allocation24 + $0x690] sm:$0xff]  ;;  %v2292_v18 = vld [vmem:[#allocation24 + $0x6f8] sm:$0xff] }
 0xad6   :  { %3919 = vmatpush1.bf16.msra.mxu1 %v3918_v50  ;;  %4047 = vmatpush1.bf16.msra.mxu0 %v4046_v19  ;;  %v2256_v50 = vld [vmem:[#allocation24 + $0x5d8] sm:$0xff]  ;;  %v2283_v7 = vld [vmem:[#allocation24 + $0x6b0] sm:$0xff]  ;;  %v4084_v17 = vpack.c.bf16 %v2292_v18, %v2288_v10 }
 0xad7   :  { %3921 = vmatprep.subr.bf16.mxu1 %v3920_v48  ;;  %4049 = vmatprep.subr.bf16.mxu0 %v4048_v22  ;;  %v2260_v19 = vld [vmem:[#allocation24 + $0x5f8] sm:$0xff]  ;;  %v2253_v48 = vld [vmem:[#allocation24 + $0x5c0] sm:$0xff]  ;;  %v2051_v61 = vmin.f32 %v5070_v63, 0.0  ;;  %v2311_v59 = vld [vmem:[#allocation24 + $0x790] sm:$0xff]  ;;  %vm2047_vm5 = vcmp.gt.f32.partialorder %v5070_v63, 0.0 }
 0xad8   :  { %v2257_v22 = vld [vmem:[#allocation24 + $0x5e0] sm:$0xff]  ;;  %v4068_v23 = vpack.c.bf16 %v2260_v19, %v2256_v50  ;;  %v2287_v50 = vld [vmem:[#allocation24 + $0x6d0] sm:$0xff]  ;;  %v2316_v49 = vld [vmem:[#allocation24 + $0x7b8] sm:$0xff] }
 0xad9   :  { %v3942_v28 = vpack.c.bf16 %v2257_v22, %v2253_v48  ;;  %v2291_v19 = vld [vmem:[#allocation24 + $0x6f0] sm:$0xff]  ;;  %v2296_v48 = vld [vmem:[#allocation24 + $0x718] sm:$0xff]  ;;  %v2057_v20 = vmul.f32 1.442695, %v2051_v61 }
 0xada   :  { %3923 = vmatpush1.bf16.msra.mxu1 %v3922_v26  ;;  %4051 = vmatpush1.bf16.msra.mxu0 %v4050_v53  ;;  %v2264_v26 = vld [vmem:[#allocation24 + $0x618] sm:$0xff]  ;;  %v2315_v13 = vld [vmem:[#allocation24 + $0x7b0] sm:$0xff] }
 0xadb   :  { %3925 = vmatprep.subr.bf16.mxu1 %v3924_v30  ;;  %4053 = vmatprep.subr.bf16.mxu0 %v4052_v31  ;;  %v2268_v53 = vld [vmem:[#allocation24 + $0x638] sm:$0xff]  ;;  %v2261_v30 = vld [vmem:[#allocation24 + $0x600] sm:$0xff]  ;;  %4211 = vpow2.f32 %v2057_v20  ;;  %v2319_v10 = vld [vmem:[#allocation24 + $0x7d0] sm:$0xff] }
 0xadc   :  { %v2265_v31 = vld [vmem:[#allocation24 + $0x620] sm:$0xff]  ;;  %v4072_v35 = vpack.c.bf16 %v2268_v53, %v2264_v26  ;;  %v2300_v22 = vld [vmem:[#allocation24 + $0x738] sm:$0xff]  ;;  %v2295_v53 = vld [vmem:[#allocation24 + $0x710] sm:$0xff] }
 0xadd   :  { %v3946_v43 = vpack.c.bf16 %v2265_v31, %v2261_v30  ;;  %v4088_v26 = vpack.c.bf16 %v2300_v22, %v2296_v48  ;;  %v2306_v30 = vld [vmem:[#allocation24 + $0x768] sm:$0xff]  ;;  %v2304_v31 = vld [vmem:[#allocation24 + $0x758] sm:$0xff]  ;;  %v2323_v18 = vld [vmem:[#allocation24 + $0x7f0] sm:$0xff] }
 0xade   :  { %3927 = vmatpush1.bf16.msra.mxu1 %v3926_v39  ;;  %4055 = vmatpush1.bf16.msra.mxu0 %v4054_v41  ;;  %v2274_v39 = vld [vmem:[#allocation24 + $0x668] sm:$0xff]  ;;  %v2272_v41 = vld [vmem:[#allocation24 + $0x658] sm:$0xff] }
 0xadf   :  { %3929 = vmatprep.subr.bf16.mxu1 %v3928_v44  ;;  %4057 = vmatprep.subr.bf16.mxu0 %v4056_v45  ;;  %v4074_v44 = vpack.c.bf16 %v2267_v37, %v2263_v36  ;;  %v2269_v45 = vld [vmem:[#allocation24 + $0x640] sm:$0xff]  ;;  %v3948_v52 = vpack.c.bf16 %v2274_v39, %v2270_v38  ;;  %v4076_v54 = vpack.c.bf16 %v2276_v42, %v2272_v41  ;;  %v2303_v42 = vld [vmem:[#allocation24 + $0x750] sm:$0xff] }
 0xae0   :  { %v2301_v37 = vld [vmem:[#allocation24 + $0x740] sm:$0xff]  ;;  %v2688_v22 = vld [vmem:[#allocation27 + $0x108] sm:$0xff] }
 0xae1   :  { %v2305_v38 = vld [vmem:[#allocation24 + $0x760] sm:$0xff] }
 0xae2   :  { %3931 = vmatpush1.bf16.msra.mxu1 %v3930_v57  ;;  %4059 = vmatpush1.bf16.msra.mxu0 %v4058_v58  ;;  %v2278_v57 = vld [vmem:[#allocation24 + $0x688] sm:$0xff]  ;;  %v2706_v20 = vld [vmem:[#allocation27 + $0x198] sm:$0xff] }
 0xae3   :  { %3933 = vmatprep.subr.bf16.mxu1 %v3932_v60  ;;  %4061 = vmatprep.subr.bf16.mxu0 %v4060_v62  ;;  %v2282_v58 = vld [vmem:[#allocation24 + $0x6a8] sm:$0xff]  ;;  %v3950_v60 = vpack.c.bf16 %v2273_v46, %v2269_v45  ;;  %v4078_v62 = vpack.c.bf16 %v2275_v56, %v2271_v55  ;;  %v2312_v46 = vld [vmem:[#allocation24 + $0x798] sm:$0xff]  ;;  %v2309_v55 = vld [vmem:[#allocation24 + $0x780] sm:$0xff] }
 0xae4   :  { %v3952_v40 = vpack.c.bf16 %v2282_v58, %v2278_v57  ;;  %v2314_v45 = vld [vmem:[#allocation24 + $0x7a8] sm:$0xff]  ;;  %v2313_v56 = vld [vmem:[#allocation24 + $0x7a0] sm:$0xff]  ;;  %v4096_v58 = vpack.c.bf16 %v2316_v49, %v2312_v46 }
 0xae5   :  { %v4212_v61 = vpop.eup %4211  ;;  %v2687_v48 = vld [vmem:[#allocation27 + $0x100] sm:$0xff]  ;;  %v2660_v46 = vld [vmem:[#allocation27 + $0x28] sm:$0xff] }
 0xae6   :  { %3935 = vmatpush1.bf16.msra.mxu1 %v3934_v8  ;;  %4063 = vmatpush1.bf16.msra.mxu0 %v4062_v9  ;;  %v2286_v8 = vld [vmem:[#allocation24 + $0x6c8] sm:$0xff] }
 0xae7   :  { %3937 = vmatprep.subr.bf16.mxu1 %v3936_v11  ;;  %4065 = vmatprep.subr.bf16.mxu0 %v4064_v12  ;;  %v2290_v9 = vld [vmem:[#allocation24 + $0x6e8] sm:$0xff]  ;;  %v3954_v11 = vpack.c.bf16 %v2281_v6, %v2277_v14  ;;  %v4082_v12 = vpack.c.bf16 %v2283_v7, %v2279_v5  ;;  %v2320_v14 = vld [vmem:[#allocation24 + $0x7d8] sm:$0xff]  ;;  %v2317_v5 = vld [vmem:[#allocation24 + $0x7c0] sm:$0xff] }
 0xae8   :  { %v3956_v32 = vpack.c.bf16 %v2290_v9, %v2286_v8  ;;  %v2324_v6 = vld [vmem:[#allocation24 + $0x7f8] sm:$0xff]  ;;  %v2321_v7 = vld [vmem:[#allocation24 + $0x7e0] sm:$0xff] }
 0xae9   :  { %v4100_v9 = vpack.c.bf16 %v2324_v6, %v2320_v14  ;;  %v2693_v6 = vld [vmem:[#allocation27 + $0x130] sm:$0xff] }
 0xaea   :  { %3939 = vmatpush1.bf16.msra.mxu1 %v3938_v16  ;;  %4067 = vmatpush1.bf16.msra.mxu0 %v4066_v21  ;;  %v2294_v16 = vld [vmem:[#allocation24 + $0x708] sm:$0xff] }
 0xaeb   :  { %3941 = vmatprep.subr.bf16.mxu1 %v3940_v3  ;;  %4069 = vmatprep.subr.bf16.mxu0 %v4068_v23  ;;  %v2298_v21 = vld [vmem:[#allocation24 + $0x728] sm:$0xff]  ;;  %v3958_v3 = vpack.c.bf16 %v2289_v15, %v2285_v51  ;;  %v4086_v23 = vpack.c.bf16 %v2291_v19, %v2287_v50 }
 0xaec   :  { %v3960_v25 = vpack.c.bf16 %v2298_v21, %v2294_v16  ;;  %v2703_v51 = vld [vmem:[#allocation27 + $0x180] sm:$0xff]  ;;  %v2704_v15 = vld [vmem:[#allocation27 + $0x188] sm:$0xff] }
 0xaed   :  { %v2655_v50 = vld [vmem:[#allocation27] sm:$0xff]  ;;  %v2656_v19 = vld [vmem:[#allocation27 + $0x8] sm:$0xff]  ;;  %v4136_v21 = vpack.c.bf16 %v2704_v15, %v2703_v51 }
 0xaee   :  { %3943 = vmatpush1.bf16.msra.mxu1 %v3942_v28  ;;  %4071 = vmatpush1.bf16.msra.mxu0 %v4070_v29  ;;  %v2299_v28 = vld [vmem:[#allocation24 + $0x730] sm:$0xff]  ;;  %v2302_v29 = vld [vmem:[#allocation24 + $0x748] sm:$0xff] }
 0xaef   :  { %3945 = vmatprep.subr.bf16.mxu1 %v3944_v34  ;;  %4073 = vmatprep.subr.bf16.mxu0 %v4072_v35  ;;  %v2308_v34 = vld [vmem:[#allocation24 + $0x778] sm:$0xff]  ;;  %v3962_v35 = vpack.c.bf16 %v2297_v24, %v2293_v47  ;;  %v4090_v36 = vpack.c.bf16 %v2299_v28, %v2295_v53  ;;  %v3964_v39 = vpack.c.bf16 %v2306_v30, %v2302_v29  ;;  %v2695_v15 = vld [vmem:[#allocation27 + $0x140] sm:$0xff] }
 0xaf0   :  { %v4092_v41 = vpack.c.bf16 %v2308_v34, %v2304_v31  ;;  %v2674_v47 = vld [vmem:[#allocation27 + $0x98] sm:$0xff]  ;;  %v2705_v24 = vld [vmem:[#allocation27 + $0x190] sm:$0xff] }
 0xaf1   :  { %v2657_v53 = vld [vmem:[#allocation27 + $0x10] sm:$0xff]  ;;  %v2658_v28 = vld [vmem:[#allocation27 + $0x18] sm:$0xff]  ;;  %v4140_v30 = vpack.c.bf16 %v2706_v20, %v2705_v24  ;;  %v2683_v20 = vld [vmem:[#allocation27 + $0xe0] sm:$0xff] }
 0xaf2   :  { %3947 = vmatpush1.bf16.msra.mxu1 %v3946_v43  ;;  %4075 = vmatpush1.bf16.msra.mxu0 %v4074_v44  ;;  %v2307_v43 = vld [vmem:[#allocation24 + $0x770] sm:$0xff]  ;;  %v2310_v44 = vld [vmem:[#allocation24 + $0x788] sm:$0xff]  ;;  %v2690_v34 = vld [vmem:[#allocation27 + $0x118] sm:$0xff] }
 0xaf3   :  { %3949 = vmatprep.subr.bf16.mxu1 %v3948_v52  ;;  %4077 = vmatprep.subr.bf16.mxu0 %v4076_v54  ;;  %v3966_v52 = vpack.c.bf16 %v2305_v38, %v2301_v37  ;;  %v4094_v54 = vpack.c.bf16 %v2307_v43, %v2303_v42  ;;  %v3968_v57 = vpack.c.bf16 %v2314_v45, %v2310_v44  ;;  %v2689_v31 = vld [vmem:[#allocation27 + $0x110] sm:$0xff]  ;;  %v2676_v37 = vld [vmem:[#allocation27 + $0xa8] sm:$0xff]  ;;  %v2707_v38 = vld [vmem:[#allocation27 + $0x1a0] sm:$0xff] }
 0xaf4   :  { %v4142_v42 = vpack.c.bf16 %v2690_v34, %v2689_v31  ;;  %v2659_v45 = vld [vmem:[#allocation27 + $0x20] sm:$0xff]  ;;  %v2698_v24 = vld [vmem:[#allocation27 + $0x158] sm:$0xff]  ;;  %v2668_v34 = vld [vmem:[#allocation27 + $0x68] sm:$0xff] }
 0xaf5   :  { %v4114_v49 = vpack.c.bf16 %v2660_v46, %v2659_v45  ;;  %v2667_v31 = vld [vmem:[#allocation27 + $0x60] sm:$0xff]  ;;  %v2669_v45 = vld [vmem:[#allocation27 + $0x70] sm:$0xff] }
 0xaf6   :  { %3951 = vmatpush1.bf16.msra.mxu1 %v3950_v60  ;;  %4079 = vmatpush1.bf16.msra.mxu0 %v4078_v62  ;;  %v2318_v60 = vld [vmem:[#allocation24 + $0x7c8] sm:$0xff] }
 0xaf7   :  { %3953 = vmatprep.subr.bf16.mxu1 %v3952_v40  ;;  %4081 = vmatprep.subr.bf16.mxu0 %v4080_v1  ;;  %v2322_v62 = vld [vmem:[#allocation24 + $0x7e8] sm:$0xff]  ;;  %v3970_v40 = vpack.c.bf16 %v2313_v56, %v2309_v55  ;;  %v4098_v1 = vpack.c.bf16 %v2315_v13, %v2311_v59  ;;  %v2677_v55 = vld [vmem:[#allocation27 + $0xb0] sm:$0xff]  ;;  %v2678_v56 = vld [vmem:[#allocation27 + $0xb8] sm:$0xff] }
 0xaf8   :  { %v3972_v8 = vpack.c.bf16 %v2322_v62, %v2318_v60  ;;  %v2710_v59 = vld [vmem:[#allocation27 + $0x1b8] sm:$0xff]  ;;  %v2661_v13 = vld [vmem:[#allocation27 + $0x30] sm:$0xff] }
 0xaf9   :  { %v2662_v60 = vld [vmem:[#allocation27 + $0x38] sm:$0xff] }
 0xafa   :  { %3955 = vmatpush1.bf16.msra.mxu1 %v3954_v11  ;;  %4083 = vmatpush1.bf16.msra.mxu0 %v4082_v12  ;;  %v2671_v11 = vld [vmem:[#allocation27 + $0x80] sm:$0xff]  ;;  %v2672_v12 = vld [vmem:[#allocation27 + $0x88] sm:$0xff]  ;;  %v4118_v14 = vpack.c.bf16 %v2662_v60, %v2661_v13 }
 0xafb   :  { %3957 = vmatprep.subr.bf16.mxu1 %v3956_v32  ;;  %4085 = vmatprep.subr.bf16.mxu0 %v4084_v17  ;;  %v3974_v32 = vpack.c.bf16 %v2321_v7, %v2317_v5  ;;  %v4102_v17 = vpack.c.bf16 %v2323_v18, %v2319_v10  ;;  %v4104_v16 = vpack.c.bf16 %v2672_v12, %v2671_v11  ;;  %v2679_v5 = vld [vmem:[#allocation27 + $0xc0] sm:$0xff]  ;;  %v2680_v7 = vld [vmem:[#allocation27 + $0xc8] sm:$0xff] }
 0xafc   :  { %v2712_v10 = vld [vmem:[#allocation27 + $0x1c8] sm:$0xff]  ;;  %v2663_v18 = vld [vmem:[#allocation27 + $0x40] sm:$0xff] }
 0xafd   :  { %v2664_v11 = vld [vmem:[#allocation27 + $0x48] sm:$0xff] }
 0xafe   :  { %3959 = vmatpush1.bf16.msra.mxu1 %v3958_v3  ;;  %4087 = vmatpush1.bf16.msra.mxu0 %v4086_v23  ;;  %v2673_v3 = vld [vmem:[#allocation27 + $0x90] sm:$0xff]  ;;  %v2917_v23 = vadd.f32 -1.0, %v4212_v61  ;;  %v4122_v51 = vpack.c.bf16 %v2664_v11, %v2663_v18  ;;  %v2696_v61 = vld [vmem:[#allocation27 + $0x148] sm:$0xff] }
 0xaff   :  { %3961 = vmatprep.subr.bf16.mxu1 %v3960_v25  ;;  %4089 = vmatprep.subr.bf16.mxu0 %v4088_v26  ;;  %v4106_v25 = vpack.c.bf16 %v2656_v19, %v2655_v50  ;;  %v4138_v26 = vpack.c.bf16 %v2688_v22, %v2687_v48  ;;  %v4108_v29 = vpack.c.bf16 %v2674_v47, %v2673_v3  ;;  %v2682_v50 = vld [vmem:[#allocation27 + $0xd8] sm:$0xff]  ;;  %v2713_v19 = vld [vmem:[#allocation27 + $0x1d0] sm:$0xff] }
 0xb00   :  { %v2665_v48 = vld [vmem:[#allocation27 + $0x50] sm:$0xff]  ;;  %v2666_v22 = vld [vmem:[#allocation27 + $0x58] sm:$0xff] }
 0xb01   :  { %v2697_v47 = vld [vmem:[#allocation27 + $0x150] sm:$0xff] }
 0xb02   :  { %3963 = vmatpush1.bf16.msra.mxu1 %v3962_v35  ;;  %4091 = vmatpush1.bf16.msra.mxu0 %v4090_v36  ;;  %v2675_v35 = vld [vmem:[#allocation27 + $0xa0] sm:$0xff]  ;;  %v2067_v36 = vsel %vm2047_vm5, %v5070_v63, %v2917_v23  ;;  %v4126_v23 = vpack.c.bf16 %v2666_v22, %v2665_v48 }
 0xb03   :  { %3965 = vmatprep.subr.bf16.mxu1 %v3964_v39  ;;  %4093 = vmatprep.subr.bf16.mxu0 %v4092_v41  ;;  %v2708_v39 = vld [vmem:[#allocation27 + $0x1a8] sm:$0xff]  ;;  %v4110_v41 = vpack.c.bf16 %v2658_v28, %v2657_v53  ;;  %v4112_v43 = vpack.c.bf16 %v2676_v37, %v2675_v35  ;;  %v2691_v63 = vld [vmem:[#allocation27 + $0x120] sm:$0xff] }
 0xb04   :  { %v4144_v44 = vpack.c.bf16 %v2708_v39, %v2707_v38  ;;  %v2715_v53 = vld [vmem:[#allocation27 + $0x1e0] sm:$0xff]  ;;  %v2716_v28 = vld [vmem:[#allocation27 + $0x1e8] sm:$0xff]  ;;  %v2685_v38 = vld [vmem:[#allocation27 + $0xf0] sm:$0xff] }
 0xb05   :  { %v2699_v35 = vld [vmem:[#allocation27 + $0x160] sm:$0xff]  ;;  %v2700_v37 = vld [vmem:[#allocation27 + $0x168] sm:$0xff]  ;;  %v2686_v39 = vld [vmem:[#allocation27 + $0xf8] sm:$0xff] }
 0xb06   :  { %3967 = vmatpush1.bf16.msra.mxu1 %v3966_v52  ;;  %4095 = vmatpush1.bf16.msra.mxu0 %v4094_v54  ;;  %v2692_v52 = vld [vmem:[#allocation27 + $0x128] sm:$0xff] }
 0xb07   :  { %3969 = vmatprep.subr.bf16.mxu1 %v3968_v57  ;;  %4097 = vmatprep.subr.bf16.mxu0 %v4096_v58  ;;  %v4146_v54 = vpack.c.bf16 %v2692_v52, %v2691_v63  ;;  %v2709_v57 = vld [vmem:[#allocation27 + $0x1b0] sm:$0xff]  ;;  %v4116_v58 = vpack.c.bf16 %v2678_v56, %v2677_v55  ;;  %v2670_v63 = vld [vmem:[#allocation27 + $0x78] sm:$0xff] }
 0xb08   :  { %v4148_v62 = vpack.c.bf16 %v2710_v59, %v2709_v57  ;;  %v2702_v52 = vld [vmem:[#allocation27 + $0x178] sm:$0xff] }
 0xb09   :  { %v2325_v56 = vld [vmem:[#allocation26] sm:$0xf] }
 0xb0a   :  { %3971 = vmatpush1.bf16.msra.mxu1 %v3970_v40  ;;  %4099 = vmatpush1.bf16.msra.mxu0 %v4098_v1  ;;  %v2694_v40 = vld [vmem:[#allocation27 + $0x138] sm:$0xff]  ;;  %v2330_v57 = vrot.slane %v2325_v56, %v4981_v2  ;;  %v2334_v59 = vrot.slane %v2325_v56, %v4985_v4  ;;  %v2342_v13 = vrot.slane %v2325_v56, %v1897_v27 }
 0xb0b   :  { %3973 = vmatprep.subr.bf16.mxu1 %v3972_v8  ;;  %4101 = vmatprep.subr.bf16.mxu0 %v4100_v9  ;;  %v4150_v1 = vpack.c.bf16 %v2694_v40, %v2693_v6  ;;  %v2711_v8 = vld [vmem:[#allocation27 + $0x1c0] sm:$0xff]  ;;  %v4120_v9 = vpack.c.bf16 %v2680_v7, %v2679_v5 }
 0xb0c   :  { %v4152_v12 = vpack.c.bf16 %v2712_v10, %v2711_v8 }
 0xb0e   :  { %3975 = vmatpush1.bf16.msra.mxu1 %v3974_v32  ;;  %4103 = vmatpush1.bf16.msra.mxu0 %v4102_v17  ;;  %v4154_v32 = vpack.c.bf16 %v2696_v61, %v2695_v15  ;;  %v2681_v17 = vld [vmem:[#allocation27 + $0xd0] sm:$0xff] }
 0xb0f   :  { %4105 = vmatprep.subr.bf16.mxu1 %v4104_v16  ;;  %4137 = vmatprep.subr.bf16.mxu0 %v4136_v21  ;;  %v4124_v16 = vpack.c.bf16 %v2682_v50, %v2681_v17  ;;  %v2714_v21 = vld [vmem:[#allocation27 + $0x1d8] sm:$0xff] }
 0xb10   :  { %v4156_v3 = vpack.c.bf16 %v2714_v21, %v2713_v19 }
 0xb11   :  { %2483 = vmatmul.mubr.f32.vlgmr.msra.gmra.mrb[30].mxu1 %v2067_v36  ;;  %2625 = vmatmul.mubr.f32.vlgmr.msra.gmra.mrb[12].mxu0 %v2067_v36  ;;  %v4130_v36 = vpack.c.bf16 %v2668_v34, %v2667_v31 }
 0xb12   :  { %4107 = vmatpush3.bf16.msra.mxu1 %v4106_v25  ;;  %4139 = vmatpush3.bf16.msra.mxu0 %v4138_v26  ;;  %v4158_v25 = vpack.c.bf16 %v2698_v24, %v2697_v47  ;;  %v2684_v26 = vld [vmem:[#allocation27 + $0xe8] sm:$0xff] }
 0xb13   :  { %4109 = vmatprep.subr.bf16.mxu1 %v4108_v29  ;;  %4141 = vmatprep.subr.bf16.mxu0 %v4140_v30  ;;  %v4128_v29 = vpack.c.bf16 %v2684_v26, %v2683_v20  ;;  %v4160_v30 = vpack.c.bf16 %v2716_v28, %v2715_v53 }
 0xb16   :  { %4111 = vmatpush3.bf16.msra.mxu1 %v4110_v41  ;;  %4143 = vmatpush3.bf16.msra.mxu0 %v4142_v42  ;;  %v4162_v41 = vpack.c.bf16 %v2700_v37, %v2699_v35  ;;  %v4132_v42 = vpack.c.bf16 %v2686_v39, %v2685_v38 }
 0xb17   :  { %4113 = vmatprep.subr.bf16.mxu1 %v4112_v43  ;;  %4145 = vmatprep.subr.bf16.mxu0 %v4144_v44  ;;  %v2717_v43 = vld [vmem:[#allocation27 + $0x1f0] sm:$0xff]  ;;  %v2718_v44 = vld [vmem:[#allocation27 + $0x1f8] sm:$0xff] }
 0xb18   :  { %v4164_v46 = vpack.c.bf16 %v2718_v44, %v2717_v43 }
 0xb1a   :  { %4115 = vmatpush3.bf16.msra.mxu1 %v4114_v49  ;;  %4147 = vmatpush3.bf16.msra.mxu0 %v4146_v54  ;;  %v2701_v49 = vld [vmem:[#allocation27 + $0x170] sm:$0xff]  ;;  %v4134_v54 = vpack.c.bf16 %v2670_v63, %v2669_v45 }
 0xb1b   :  { %4117 = vmatprep.subr.bf16.mxu1 %v4116_v58  ;;  %4149 = vmatprep.subr.bf16.mxu0 %v4148_v62  ;;  %v4166_v55 = vpack.c.bf16 %v2702_v52, %v2701_v49  ;;  %v2338_v58 = vrot.slane %v2325_v56, %v1893_v33 }
 0xb1e   :  { %4119 = vmatpush3.bf16.msra.mxu1 %v4118_v14  ;;  %4151 = vmatpush3.bf16.msra.mxu0 %v4150_v1 }
 0xb1f   :  { %4121 = vmatprep.subr.bf16.mxu1 %v4120_v9  ;;  %4153 = vmatprep.subr.bf16.mxu0 %v4152_v12 }
 0xb22   :  { %4123 = vmatpush3.bf16.msra.mxu1 %v4122_v51  ;;  %4155 = vmatpush3.bf16.msra.mxu0 %v4154_v32 }
 0xb23   :  { %4125 = vmatprep.subr.bf16.mxu1 %v4124_v16  ;;  %4157 = vmatprep.subr.bf16.mxu0 %v4156_v3  ;;  %v2923_v3 = vld [vmem:[#allocation2] ss:$0 sm:$0xff] }
 0xb26   :  { %4127 = vmatpush3.bf16.msra.mxu1 %v4126_v23  ;;  %4159 = vmatpush3.bf16.msra.mxu0 %v4158_v25 }
 0xb27   :  { %4129 = vmatprep.subr.bf16.mxu1 %v4128_v29  ;;  %4161 = vmatprep.subr.bf16.mxu0 %v4160_v30 }
 0xb2a   :  { %4131 = vmatpush3.bf16.msra.mxu1 %v4130_v36  ;;  %4163 = vmatpush3.bf16.msra.mxu0 %v4162_v41 }
 0xb2b   :  { %4133 = vmatprep.subr.bf16.mxu1 %v4132_v42  ;;  %4165 = vmatprep.subr.bf16.mxu0 %v4164_v46 }
 0xb2e   :  { %4135 = vmatpush3.bf16.msra.mxu1 %v4134_v54  ;;  %4167 = vmatpush3.bf16.msra.mxu0 %v4166_v55 }
 0xbe4   :  { %v2484_v60 = vpop.f32.mrb[30].mxu1  ;;  %v2626_v62 = vpop.f32.mrb[12].mxu0 }
 0xbe5   :  { %v4168_v14 = vadd.f32 %v2484_v60, %v2330_v57  ;;  %v4170_v6 = vadd.f32 %v2626_v62, %v2338_v58  ;;  %v2486_v40 = vpop.f32.mrb[31].mxu1  ;;  %v2628_v1 = vpop.f32.mrb[13].mxu0 }
 0xbe6   :  { %v4169_v5 = vadd.f32 %v2486_v40, %v2334_v59  ;;  %v4171_v7 = vadd.f32 %v2628_v1, %v2342_v13 }
 0xbe7   :  { %v2635_v8 = vmin.f32 %v4168_v14, 0.0  ;;  %v2637_v9 = vmin.f32 %v4170_v6, 0.0  ;;  %vm2631_vm7 = vcmp.gt.f32.partialorder %v4168_v14, 0.0  ;;  %vm2633_vm9 = vcmp.gt.f32.partialorder %v4170_v6, 0.0 }
 0xbe8   :  { %v2636_v10 = vmin.f32 %v4169_v5, 0.0  ;;  %v2638_v2 = vmin.f32 %v4171_v7, 0.0  ;;  %vm2632_vm6 = vcmp.gt.f32.partialorder %v4169_v5, 0.0  ;;  %vm2634_vm8 = vcmp.gt.f32.partialorder %v4171_v7, 0.0 }
 0xbe9   :  { %v2639_v18 = vmul.f32 1.442695, %v2635_v8  ;;  %v2643_v11 = vmul.f32 1.442695, %v2637_v9 }
 0xbea   :  { %v2641_v33 = vmul.f32 1.442695, %v2636_v10  ;;  %v2645_v12 = vmul.f32 1.442695, %v2638_v2 }
 0xbeb   :  { %4213 = vpow2.f32 %v2639_v18 }
 0xbec   :  { %4215 = vpow2.f32 %v2643_v11 }
 0xbed   :  { %4217 = vpow2.f32 %v2641_v33 }
 0xbee   :  { %4219 = vpow2.f32 %v2645_v12 }
 0xbf5   :  { %v4214_v0 = vpop.eup %4213 }
 0xbf6   :  { %v4216_v4 = vpop.eup %4215  ;;  %v2919_v51 = vadd.f32 -1.0, %v4214_v0 }
 0xbf7   :  { %v4218_v27 = vpop.eup %4217  ;;  %v2921_v32 = vadd.f32 -1.0, %v4216_v4 }
 0xbf8   :  { %v4220_v15 = vpop.eup %4219  ;;  %v2920_v61 = vadd.f32 -1.0, %v4218_v27  ;;  %v2651_v16 = vsel %vm2631_vm7, %v4168_v14, %v2919_v51 }
 0xbf9   :  { %v2922_v17 = vadd.f32 -1.0, %v4220_v15  ;;  %v2653_v21 = vsel %vm2633_vm9, %v4170_v6, %v2921_v32 }
 0xbfa   :  { %v2652_v50 = vsel %vm2632_vm6, %v4169_v5, %v2920_v61 }
 0xbfb   :  { %2790 = vmatprep.mubr.f32.mxu1 %v2652_v50  ;;  %v2654_v19 = vsel %vm2634_vm8, %v4171_v7, %v2922_v17 }
 0xbfc   :  { %2860 = vmatprep.mubr.f32.mxu0 %v2654_v19  ;;  %2791 = vmatmul.mubr.f32.vlgmr.msra.gmra.mrb[32].mxu1 %v2651_v16 }
 0xbfd   :  { %2861 = vmatmul.mubr.f32.vlgmr.msra.gmra.mrb[14].mxu0 %v2653_v21 }
 0xccf   :  { %v3100_v48 = vpop.f32.mrb[32].mxu1 }
 0xcd0   :  { %v3135_v22 = vpop.f32.mrb[14].mxu0  ;;  %v3101_v23 = vpop.f32.mrb[33].mxu1 }
 0xcd1   :  { %v3102_v47 = vadd.f32 %v3101_v23, %v3100_v48  ;;  %v3136_v24 = vpop.f32.mrb[15].mxu0 }
 0xcd2   :  { %v3137_v20 = vadd.f32 %v3136_v24, %v3135_v22 }
 0xcd3   :  { %v2793_v25 = vadd.f32 %v3102_v47, %v2923_v3 }
 0xcd5   :  { %v2863_v26 = vadd.f32 %v3137_v20, %v2793_v25 }
 0xcd7   :  { %2867 = vst.msk [vmem:[#allocation29] sm:$0x3] %vm2866_vm10, %v2863_v26 }
 0xcd8   :  { %4584 = shalt.err (!%p4581_p6)
}
 0xcd9   :  { %s4585_s6 = scalar_lea.hbm %s5110_s17, 32 }
 0xcda   :  { %p4586_p7 = scmp.ne.s32.totalorder %s5110_s17, %s4585_s6  ;;  %p4589_p8 = scmp.lt.u32.totalorder %s4585_s6, %s5110_s17 }
 0xcdc   :  { %p4591_p9 = pnand %p4589_p8, %p4586_p7 }
 0xcde   :  { %4594 = shalt.err (!%p4591_p9)
}
 0xcdf   :  { %2877 = dma.vmem_to_hbm [thread:$0]  %s2875_s23, 32, %s5110_s17, [#allocation5]  }
 0xce0   :  { %4613 = dma.done.wait [#allocation5], 32  }
 0xce1   :  { %4614 = vsyncadd [#allocation5], 4294967264 }
 0xce2   :  { %2881 = vsyncpa [#allocation4], 1 }
 0xce3   :  { %2882 = vsyncpa [#allocation7], 1 }
 0xce4   :  { %2883 = vsyncpa [#allocation10], 1 }
 0xce5   :  { %2884 = vsyncpa [#allocation13], 1 }
 0xce6   :  { %2885 = vsyncpa [#allocation16], 1 }
 0xce7   :  { %2886 = vsyncpa [#allocation19], 1 }
 0xce8   :  { %2887 = vsyncpa [#allocation22], 1 }
 0xce9   :  { %2888 = vsyncpa [#allocation25], 1 }
 0xcea   :  { %2889 = vsyncpa [#allocation28], 1 }
 0xceb   :  { %2890 = vsyncpa [#allocation5], 1 }

</bundles_post_ra>
